<compile_context>
chip_gen: v6e
topology: v6e:2x2x1
jax: 0.10.0
libtpu: 0.0.40
codegen_flags: <defaults>
</compile_context>

<pallas_src>
import functools

import jax
import jax.numpy as jnp
from jax.experimental import pallas as pl
from jax.experimental.pallas import tpu as pltpu

GN_EPS = 1e-5  # cfg.GROUP_NORM.EPSILON default


# --------------------------------------------------------------------------- #
# In-kernel GroupNorm on a (C, M) f32 tile                                      #
# --------------------------------------------------------------------------- #
def _group_norm(t, a, gamma, beta, eps):
    """`a` is (C, C) with a[c,c'] = 1/(cpg*M) iff same group, else 0, so
    a @ [sum | sumsq] yields per-channel group mean and group E[x^2]."""
    s1 = jnp.sum(t, axis=1, keepdims=True)                        # (C, 1)
    s2 = jnp.sum(t * t, axis=1, keepdims=True)                    # (C, 1)
    # pack [s1 | s2] into one (C, 2) RHS (no concatenate) -> single small matmul
    lane = jax.lax.broadcasted_iota(jnp.int32, (1, 2), 1)
    stats = jnp.where(lane == 0, s1, s2)                          # (C, 2)
    g = jnp.dot(a, stats, preferred_element_type=jnp.float32)     # (C, 2)
    gm = g[:, 0:1]                                                # group mean
    var = g[:, 1:2] - gm * gm                                     # E[x^2] - mean^2
    inv = jax.lax.rsqrt(var + eps)
    scale = gamma * inv                                           # fold gamma in
    shift = beta - gm * scale
    return t * scale + shift


# --------------------------------------------------------------------------- #
# Fused bottleneck kernel (one batch sample per grid step)                      #
# --------------------------------------------------------------------------- #
def _bottleneck_kernel(x_ref, w1_ref, w2_ref, w3_ref, a_mid_ref, a_out_ref,
                       g1_ref, b1_ref, g2_ref, b2_ref, g3_ref, b3_ref,
                       o_ref, pad_ref, col_ref, *, H, W, PAD, eps):
    M = H * W
    Cmid = w1_ref.shape[0]

    # ---- conv1 (1x1, bf16 MXU) + gn1 + relu (f32) -----------------------
    t = jnp.dot(w1_ref[...], x_ref[...].astype(jnp.bfloat16),
                preferred_element_type=jnp.float32)                       # (Cmid, M)
    t = jnp.maximum(_group_norm(t, a_mid_ref[...], g1_ref[...], b1_ref[...], eps), 0.0)

    # ---- conv2 (3x3, pad=1): im2col staging + single K = 9*Cmid matmul ---
    # zero only the halo slices; the interior is fully overwritten below
    pad_ref[:, :PAD] = jnp.zeros((Cmid, PAD), pad_ref.dtype)
    pad_ref[:, PAD + M:] = jnp.zeros((Cmid, PAD), pad_ref.dtype)
    pad_ref[:, PAD:PAD + M] = t.astype(pad_ref.dtype)                     # bf16 store

    col = jax.lax.broadcasted_iota(jnp.int32, (1, M), 1) % W              # w of lane
    left_ok = col >= 1                                                    # dx = -1
    right_ok = col < (W - 1)                                              # dx = +1
    for dy in (-1, 0, 1):
        for dx in (-1, 0, 1):
            off = PAD + dy * W + dx
            win = pad_ref[:, off:off + M]                                  # (Cmid, M)
            if dx == -1:
                win = jnp.where(left_ok, win, 0)                           # kill wrap
            elif dx == 1:
                win = jnp.where(right_ok, win, 0)
            k = (dy + 1) * 3 + (dx + 1)
            col_ref[k * Cmid:(k + 1) * Cmid, :] = win                      # stage tap
    t = jnp.dot(w2_ref[...], col_ref[...], preferred_element_type=jnp.float32)
    t = jnp.maximum(_group_norm(t, a_mid_ref[...], g2_ref[...], b2_ref[...], eps), 0.0)

    # ---- conv3 (1x1, bf16 MXU) + gn3 -------------------------------------
    t = jnp.dot(w3_ref[...], t.astype(jnp.bfloat16),
                preferred_element_type=jnp.float32)                        # (Cout, M)
    t = _group_norm(t, a_out_ref[...], g3_ref[...], b3_ref[...], eps)

    # ---- identity residual (re-read x, full precision) + relu ------------
    o_ref[...] = jnp.maximum(t + x_ref[...].astype(jnp.float32), 0.0).astype(o_ref.dtype)


# --------------------------------------------------------------------------- #
# Wrapper                                                                       #
# --------------------------------------------------------------------------- #
def _group_avg_matrix(C, G, M):
    cpg = C // G
    gid = jnp.arange(C) // cpg
    same = (gid[:, None] == gid[None, :]).astype(jnp.float32)
    return same / float(cpg * M)


def bottleneck_gn_forward(x, params, groups_mid, groups_out, eps=GN_EPS):
    """x: (N, Cin, H, W) NCHW. Returns (N, Cout, H, W)."""
    N, Cin, H, W = x.shape
    M = H * W
    w1 = params["w1"][:, :, 0, 0].astype(jnp.bfloat16)             # (Cmid, Cin)
    w3 = params["w3"][:, :, 0, 0].astype(jnp.bfloat16)             # (Cout, Cmid)
    Cmid, Cout = w1.shape[0], w3.shape[0]
    assert Cin == Cout, "identity residual requires inplanes == outplanes"
    # torch (O, I, 3, 3) -> im2col layout (O, (ky*3+kx)*Cmid + i), matching slab order
    w2 = jnp.transpose(params["w2"], (0, 2, 3, 1)).reshape(Cmid, 9 * Cmid)
    w2 = w2.astype(jnp.bfloat16)

    a_mid = _group_avg_matrix(Cmid, groups_mid, M)
    a_out = _group_avg_matrix(Cout, groups_out, M)
    g1 = params["g1"].reshape(Cmid, 1).astype(jnp.float32)
    b1 = params["b1"].reshape(Cmid, 1).astype(jnp.float32)
    g2 = params["g2"].reshape(Cmid, 1).astype(jnp.float32)
    b2 = params["b2"].reshape(Cmid, 1).astype(jnp.float32)
    g3 = params["g3"].reshape(Cout, 1).astype(jnp.float32)
    b3 = params["b3"].reshape(Cout, 1).astype(jnp.float32)

    PAD = max(128, -(-(W + 1) // 128) * 128)                       # lane-aligned halo
    x2 = x.reshape(N, Cin, M)                                      # no transpose

    # explicit VMEM budget (feedback): blocks double-buffered + scratch + headroom
    footprint = (2 * (Cin * M * 4 + Cout * M * 4)                  # x / out blocks
                 + 2 * 2 * (w1.size + w2.size + w3.size)           # bf16 weights
                 + 2 * 4 * (a_mid.size + a_out.size + 3 * (Cmid + Cout))
                 + 2 * Cmid * (M + 2 * PAD)                        # bf16 pad scratch
                 + 2 * 9 * Cmid * M)                               # bf16 im2col slab
    vmem_limit = int(min(max(2 * footprint, 16 << 20) + (8 << 20), 100 << 20))

    def const2(shape):
        return pl.BlockSpec(shape, lambda n: (0, 0))

    out = pl.pallas_call(
        functools.partial(_bottleneck_kernel, H=H, W=W, PAD=PAD, eps=eps),
        out_shape=jax.ShapeDtypeStruct((N, Cout, M), x.dtype),
        grid_spec=pltpu.PrefetchScalarGridSpec(
            num_scalar_prefetch=0,
            grid=(N,),
            in_specs=[
                pl.BlockSpec((None, Cin, M), lambda n: (n, 0, 0)),  # x (per sample)
                const2((Cmid, Cin)),                                # w1 (bf16)
                const2((Cmid, 9 * Cmid)),                           # w2 im2col (bf16)
                const2((Cout, Cmid)),                               # w3 (bf16)
                const2((Cmid, Cmid)),                               # group-avg (mid)
                const2((Cout, Cout)),                               # group-avg (out)
                const2((Cmid, 1)), const2((Cmid, 1)),               # gn1 gamma / beta
                const2((Cmid, 1)), const2((Cmid, 1)),               # gn2 gamma / beta
                const2((Cout, 1)), const2((Cout, 1)),               # gn3 gamma / beta
            ],
            out_specs=pl.BlockSpec((None, Cout, M), lambda n: (n, 0, 0)),
            scratch_shapes=[
                pltpu.VMEM((Cmid, M + 2 * PAD), jnp.bfloat16),      # padded line buf
                pltpu.VMEM((9 * Cmid, M), jnp.bfloat16),            # im2col slab
            ],
        ),
        compiler_params=pltpu.CompilerParams(
            dimension_semantics=("parallel",),
            vmem_limit_bytes=vmem_limit),
    )(x2, w1, w2, w3, a_mid, a_out, g1, b1, g2, b2, g3, b3)

    return out.reshape(N, Cout, H, W)


# --------------------------------------------------------------------------- #
# Pure-JAX reference (for validation)                                           #
# --------------------------------------------------------------------------- #
def _group_norm_ref(x, gamma, beta, groups, eps):
    N, C, H, W = x.shape
    xg = x.reshape(N, groups, -1)
    mean = xg.mean(axis=2, keepdims=True)
    var = xg.var(axis=2, keepdims=True)
    xn = ((xg - mean) * jax.lax.rsqrt(var + eps)).reshape(N, C, H, W)
    return xn * gamma[None, :, None, None] + beta[None, :, None, None]


def bottleneck_gn_reference(x, params, groups_mid, groups_out, eps=GN_EPS):
    dn = ("NCHW", "OIHW", "NCHW")
    t = jax.lax.conv_general_dilated(x, params["w1"], (1, 1), "VALID",
                                     dimension_numbers=dn)
    t = jax.nn.relu(_group_norm_ref(t, params["g1"], params["b1"], groups_mid, eps))
    t = jax.lax.conv_general_dilated(t, params["w2"], (1, 1), ((1, 1), (1, 1)),
                                     dimension_numbers=dn)
    t = jax.nn.relu(_group_norm_ref(t, params["g2"], params["b2"], groups_mid, eps))
    t = jax.lax.conv_general_dilated(t, params["w3"], (1, 1), "VALID",
                                     dimension_numbers=dn)
    t = _group_norm_ref(t, params["g3"], params["b3"], groups_out, eps)
    return jax.nn.relu(t + x)


if __name__ == "__main__":
    key = jax.random.PRNGKey(0)
    N, H, W = 2, 16, 16
    inplanes, innerplanes, outplanes = 128, 32, 128        # expansion = 4
    groups_mid, groups_out = 8, 32                         # GroupNorm group counts

    ks = jax.random.split(key, 10)
    params = dict(
        w1=0.1 * jax.random.normal(ks[0], (innerplanes, inplanes, 1, 1), jnp.float32),
        w2=0.1 * jax.random.normal(ks[1], (innerplanes, innerplanes, 3, 3), jnp.float32),
        w3=0.1 * jax.random.normal(ks[2], (outplanes, innerplanes, 1, 1), jnp.float32),
        g1=1.0 + 0.1 * jax.random.normal(ks[3], (innerplanes,), jnp.float32),
        b1=0.1 * jax.random.normal(ks[4], (innerplanes,), jnp.float32),
        g2=1.0 + 0.1 * jax.random.normal(ks[5], (innerplanes,), jnp.float32),
        b2=0.1 * jax.random.normal(ks[6], (innerplanes,), jnp.float32),
        g3=1.0 + 0.1 * jax.random.normal(ks[7], (outplanes,), jnp.float32),
        b3=0.1 * jax.random.normal(ks[8], (outplanes,), jnp.float32),
    )
    x = jax.random.normal(ks[9], (N, inplanes, H, W), jnp.float32)

    fwd = jax.jit(lambda x_, p_: bottleneck_gn_forward(x_, p_, groups_mid, groups_out))
    out = jax.block_until_ready(fwd(x, params))

    ref = jax.block_until_ready(
        bottleneck_gn_reference(x, params, groups_mid, groups_out))

    assert out.shape == ref.shape, (out.shape, ref.shape)
    # bf16 MXU operands (per perf review) => looser tolerance than pure-f32 reference
    if not bool(jnp.allclose(out, ref, rtol=5e-2, atol=5e-2)):
        err = float(jnp.max(jnp.abs(out - ref)))
        raise AssertionError(f"Pallas output does not match reference (max err {err})")

    print("KERNEL_OK")
</pallas_src>

<mosaic_0001>
module attributes {stable_mosaic.version = 11 : i64} {
  func.func @_bottleneck_kernel(%arg0: i32, %arg1: memref<1x128x256xf32, #tpu.memory_space<vmem>>, %arg2: memref<32x128xbf16, #tpu.memory_space<vmem>>, %arg3: memref<32x288xbf16, #tpu.memory_space<vmem>>, %arg4: memref<128x32xbf16, #tpu.memory_space<vmem>>, %arg5: memref<32x32xf32, #tpu.memory_space<vmem>>, %arg6: memref<128x128xf32, #tpu.memory_space<vmem>>, %arg7: memref<32x1xf32, #tpu.memory_space<vmem>>, %arg8: memref<32x1xf32, #tpu.memory_space<vmem>>, %arg9: memref<32x1xf32, #tpu.memory_space<vmem>>, %arg10: memref<32x1xf32, #tpu.memory_space<vmem>>, %arg11: memref<128x1xf32, #tpu.memory_space<vmem>>, %arg12: memref<128x1xf32, #tpu.memory_space<vmem>>, %arg13: memref<1x128x256xf32, #tpu.memory_space<vmem>>, %arg14: memref<32x512xbf16, #tpu.memory_space<vmem>>, %arg15: memref<288x256xbf16, #tpu.memory_space<vmem>>) attributes {dimension_semantics = [#tpu.dimension_semantics<parallel>], iteration_bounds = array<i64: 2>, scalar_prefetch = 0 : i64, scratch_operands = 2 : i64, tpu.core_type = #tpu.core_type<tc>, window_params = [{transform_indices = @transform_0, window_bounds = array<i64: 1, 128, 256>}, {pipeline_mode = #tpu.pipeline_mode<synchronous>, transform_indices = @transform_1, window_bounds = array<i64: 32, 128>}, {pipeline_mode = #tpu.pipeline_mode<synchronous>, transform_indices = @transform_2, window_bounds = array<i64: 32, 288>}, {pipeline_mode = #tpu.pipeline_mode<synchronous>, transform_indices = @transform_3, window_bounds = array<i64: 128, 32>}, {pipeline_mode = #tpu.pipeline_mode<synchronous>, transform_indices = @transform_4, window_bounds = array<i64: 32, 32>}, {pipeline_mode = #tpu.pipeline_mode<synchronous>, transform_indices = @transform_5, window_bounds = array<i64: 128, 128>}, {pipeline_mode = #tpu.pipeline_mode<synchronous>, transform_indices = @transform_6, window_bounds = array<i64: 32, 1>}, {pipeline_mode = #tpu.pipeline_mode<synchronous>, transform_indices = @transform_7, window_bounds = array<i64: 32, 1>}, {pipeline_mode = #tpu.pipeline_mode<synchronous>, transform_indices = @transform_8, window_bounds = array<i64: 32, 1>}, {pipeline_mode = #tpu.pipeline_mode<synchronous>, transform_indices = @transform_9, window_bounds = array<i64: 32, 1>}, {pipeline_mode = #tpu.pipeline_mode<synchronous>, transform_indices = @transform_10, window_bounds = array<i64: 128, 1>}, {pipeline_mode = #tpu.pipeline_mode<synchronous>, transform_indices = @transform_11, window_bounds = array<i64: 128, 1>}, {transform_indices = @transform_12, window_bounds = array<i64: 1, 128, 256>}]} {
    %c0 = arith.constant 0 : index
    %c0_0 = arith.constant 0 : index
    %0 = vector.load %arg2[%c0, %c0_0] : memref<32x128xbf16, #tpu.memory_space<vmem>>, vector<32x128xbf16>
    %c0_1 = arith.constant 0 : index
    %c0_2 = arith.constant 0 : index
    %c0_3 = arith.constant 0 : index
    %1 = vector.load %arg1[%c0_1, %c0_2, %c0_3] : memref<1x128x256xf32, #tpu.memory_space<vmem>>, vector<1x128x256xf32>
    %2 = vector.shape_cast %1 : vector<1x128x256xf32> to vector<128x256xf32>
    %3 = arith.truncf %2 : vector<128x256xf32> to vector<128x256xbf16>
    %cst = arith.constant dense<0.000000e+00> : vector<32x256xf32>
    %4 = tpu.matmul %0, %3, %cst {dimension_numbers = #tpu.dot_dimension_numbers<[1], [0], [0], [1], [0, 0, 1, 1], [], []>} : vector<32x128xbf16>, vector<128x256xbf16>, vector<32x256xf32> -> vector<32x256xf32>
    %c0_4 = arith.constant 0 : index
    %c0_5 = arith.constant 0 : index
    %5 = vector.load %arg5[%c0_4, %c0_5] : memref<32x32xf32, #tpu.memory_space<vmem>>, vector<32x32xf32>
    %c0_6 = arith.constant 0 : index
    %c0_7 = arith.constant 0 : index
    %6 = vector.load %arg7[%c0_6, %c0_7] : memref<32x1xf32, #tpu.memory_space<vmem>>, vector<32x1xf32>
    %c0_8 = arith.constant 0 : index
    %c0_9 = arith.constant 0 : index
    %7 = vector.load %arg8[%c0_8, %c0_9] : memref<32x1xf32, #tpu.memory_space<vmem>>, vector<32x1xf32>
    %cst_10 = arith.constant dense<0.000000e+00> : vector<32xf32>
    %8 = vector.multi_reduction <add>, %4, %cst_10 [1] : vector<32x256xf32> to vector<32xf32>
    %9 = vector.shape_cast %8 : vector<32xf32> to vector<32x1xf32>
    %10 = arith.mulf %4, %4 : vector<32x256xf32>
    %cst_11 = arith.constant dense<0.000000e+00> : vector<32xf32>
    %11 = vector.multi_reduction <add>, %10, %cst_11 [1] : vector<32x256xf32> to vector<32xf32>
    %12 = vector.shape_cast %11 : vector<32xf32> to vector<32x1xf32>
    %13 = tpu.iota {dimensions = array<i32: 1>} : vector<1x2xi32>
    %c0_i32 = arith.constant 0 : i32
    %14 = vector.broadcast %c0_i32 : i32 to vector<1x2xi32>
    %15 = arith.cmpi eq, %13, %14 : vector<1x2xi32>
    %16 = vector.shape_cast %15 : vector<1x2xi1> to vector<1x2xi1>
    %17 = vector.broadcast %16 : vector<1x2xi1> to vector<32x2xi1>
    %18 = vector.shape_cast %9 : vector<32x1xf32> to vector<32x1xf32>
    %19 = vector.broadcast %18 : vector<32x1xf32> to vector<32x2xf32>
    %20 = vector.shape_cast %12 : vector<32x1xf32> to vector<32x1xf32>
    %21 = vector.broadcast %20 : vector<32x1xf32> to vector<32x2xf32>
    %22 = arith.select %17, %19, %21 : vector<32x2xi1>, vector<32x2xf32>
    %cst_12 = arith.constant dense<0.000000e+00> : vector<32x2xf32>
    %23 = tpu.matmul %5, %22, %cst_12 {dimension_numbers = #tpu.dot_dimension_numbers<[1], [0], [0], [1], [0, 0, 1, 1], [], []>} : vector<32x32xf32>, vector<32x2xf32>, vector<32x2xf32> -> vector<32x2xf32>
    %24 = vector.extract_strided_slice %23 {offsets = [0, 0], sizes = [32, 1], strides = [1, 1]} : vector<32x2xf32> to vector<32x1xf32>
    %25 = vector.extract_strided_slice %23 {offsets = [0, 1], sizes = [32, 1], strides = [1, 1]} : vector<32x2xf32> to vector<32x1xf32>
    %26 = arith.mulf %24, %24 : vector<32x1xf32>
    %27 = arith.subf %25, %26 : vector<32x1xf32>
    %cst_13 = arith.constant 9.99999974E-6 : f32
    %28 = vector.broadcast %cst_13 : f32 to vector<32x1xf32>
    %29 = arith.addf %27, %28 : vector<32x1xf32>
    %30 = math.rsqrt %29 : vector<32x1xf32>
    %31 = arith.mulf %6, %30 : vector<32x1xf32>
    %32 = arith.mulf %24, %31 : vector<32x1xf32>
    %33 = arith.subf %7, %32 : vector<32x1xf32>
    %34 = vector.broadcast %31 : vector<32x1xf32> to vector<32x256xf32>
    %35 = arith.mulf %4, %34 : vector<32x256xf32>
    %36 = vector.broadcast %33 : vector<32x1xf32> to vector<32x256xf32>
    %37 = arith.addf %35, %36 : vector<32x256xf32>
    %cst_14 = arith.constant 0.000000e+00 : f32
    %38 = vector.broadcast %cst_14 : f32 to vector<32x256xf32>
    %39 = arith.maximumf %37, %38 : vector<32x256xf32>
    %cst_15 = arith.constant 0.000000e+00 : bf16
    %40 = vector.broadcast %cst_15 : bf16 to vector<32x128xbf16>
    %c0_16 = arith.constant 0 : index
    %c0_17 = arith.constant 0 : index
    %41 = vector.load %arg14[%c0_16, %c0_17] : memref<32x512xbf16, #tpu.memory_space<vmem>>, vector<32x128xbf16>
    tpu.vector_store %arg14[%c0_16, %c0_17], %40 {strides = array<i32>} : memref<32x512xbf16, #tpu.memory_space<vmem>>, vector<32x128xbf16>,
    %cst_18 = arith.constant 0.000000e+00 : bf16
    %42 = vector.broadcast %cst_18 : bf16 to vector<32x128xbf16>
    %c0_19 = arith.constant 0 : index
    %c384 = arith.constant 384 : index
    %43 = vector.load %arg14[%c0_19, %c384] : memref<32x512xbf16, #tpu.memory_space<vmem>>, vector<32x128xbf16>
    tpu.vector_store %arg14[%c0_19, %c384], %42 {strides = array<i32>} : memref<32x512xbf16, #tpu.memory_space<vmem>>, vector<32x128xbf16>,
    %44 = arith.truncf %39 : vector<32x256xf32> to vector<32x256xbf16>
    %c0_20 = arith.constant 0 : index
    %c128 = arith.constant 128 : index
    %45 = vector.load %arg14[%c0_20, %c128] : memref<32x512xbf16, #tpu.memory_space<vmem>>, vector<32x256xbf16>
    tpu.vector_store %arg14[%c0_20, %c128], %44 {strides = array<i32>} : memref<32x512xbf16, #tpu.memory_space<vmem>>, vector<32x256xbf16>,
    %46 = tpu.iota {dimensions = array<i32: 1>} : vector<1x256xi32>
    %c16_i32 = arith.constant 16 : i32
    %c0_i32_21 = arith.constant 0 : i32
    %47 = arith.cmpi eq, %c16_i32, %c0_i32_21 : i32
    %c1_i32 = arith.constant 1 : i32
    %48 = arith.select %47, %c1_i32, %c16_i32 : i32
    %49 = vector.broadcast %48 : i32 to vector<1x256xi32>
    %50 = arith.remsi %46, %49 : vector<1x256xi32>
    %c0_i32_22 = arith.constant 0 : i32
    %51 = vector.broadcast %c0_i32_22 : i32 to vector<1x256xi32>
    %52 = arith.cmpi ne, %50, %51 : vector<1x256xi32>
    %c0_i32_23 = arith.constant 0 : i32
    %53 = vector.broadcast %c0_i32_23 : i32 to vector<1x256xi32>
    %54 = arith.cmpi slt, %50, %53 : vector<1x256xi32>
    %c0_i32_24 = arith.constant 0 : i32
    %55 = arith.cmpi slt, %48, %c0_i32_24 : i32
    %56 = vector.broadcast %55 : i1 to vector<1x256xi1>
    %57 = vector.broadcast %56 : vector<1x256xi1> to vector<1x256xi1>
    %58 = arith.xori %54, %57 : vector<1x256xi1>
    %59 = arith.andi %58, %52 : vector<1x256xi1>
    %60 = vector.broadcast %48 : i32 to vector<1x256xi32>
    %61 = arith.addi %50, %60 : vector<1x256xi32>
    %62 = arith.select %59, %61, %50 : vector<1x256xi1>, vector<1x256xi32>
    %c1_i32_25 = arith.constant 1 : i32
    %63 = vector.broadcast %c1_i32_25 : i32 to vector<1x256xi32>
    %64 = arith.cmpi sge, %62, %63 : vector<1x256xi32>
    %c15_i32 = arith.constant 15 : i32
    %65 = vector.broadcast %c15_i32 : i32 to vector<1x256xi32>
    %66 = arith.cmpi slt, %62, %65 : vector<1x256xi32>
    %c0_26 = arith.constant 0 : index
    %c111 = arith.constant 111 : index
    %67 = vector.load %arg14[%c0_26, %c111] : memref<32x512xbf16, #tpu.memory_space<vmem>>, vector<32x256xbf16>
    %c0_i32_27 = arith.constant 0 : i32
    %68 = arith.sitofp %c0_i32_27 : i32 to bf16
    %69 = vector.shape_cast %64 : vector<1x256xi1> to vector<1x256xi1>
    %70 = vector.broadcast %69 : vector<1x256xi1> to vector<32x256xi1>
    %71 = vector.broadcast %68 : bf16 to vector<32x256xbf16>
    %72 = arith.select %70, %67, %71 : vector<32x256xi1>, vector<32x256xbf16>
    %c0_28 = arith.constant 0 : index
    %c0_29 = arith.constant 0 : index
    %73 = vector.load %arg15[%c0_28, %c0_29] : memref<288x256xbf16, #tpu.memory_space<vmem>>, vector<32x256xbf16>
    tpu.vector_store %arg15[%c0_28, %c0_29], %72 {strides = array<i32>} : memref<288x256xbf16, #tpu.memory_space<vmem>>, vector<32x256xbf16>,
    %c0_30 = arith.constant 0 : index
    %c112 = arith.constant 112 : index
    %74 = vector.load %arg14[%c0_30, %c112] : memref<32x512xbf16, #tpu.memory_space<vmem>>, vector<32x256xbf16>
    %c32 = arith.constant 32 : index
    %c0_31 = arith.constant 0 : index
    %75 = vector.load %arg15[%c32, %c0_31] : memref<288x256xbf16, #tpu.memory_space<vmem>>, vector<32x256xbf16>
    tpu.vector_store %arg15[%c32, %c0_31], %74 {strides = array<i32>} : memref<288x256xbf16, #tpu.memory_space<vmem>>, vector<32x256xbf16>,
    %c0_32 = arith.constant 0 : index
    %c113 = arith.constant 113 : index
    %76 = vector.load %arg14[%c0_32, %c113] : memref<32x512xbf16, #tpu.memory_space<vmem>>, vector<32x256xbf16>
    %c0_i32_33 = arith.constant 0 : i32
    %77 = arith.sitofp %c0_i32_33 : i32 to bf16
    %78 = vector.shape_cast %66 : vector<1x256xi1> to vector<1x256xi1>
    %79 = vector.broadcast %78 : vector<1x256xi1> to vector<32x256xi1>
    %80 = vector.broadcast %77 : bf16 to vector<32x256xbf16>
    %81 = arith.select %79, %76, %80 : vector<32x256xi1>, vector<32x256xbf16>
    %c64 = arith.constant 64 : index
    %c0_34 = arith.constant 0 : index
    %82 = vector.load %arg15[%c64, %c0_34] : memref<288x256xbf16, #tpu.memory_space<vmem>>, vector<32x256xbf16>
    tpu.vector_store %arg15[%c64, %c0_34], %81 {strides = array<i32>} : memref<288x256xbf16, #tpu.memory_space<vmem>>, vector<32x256xbf16>,
    %c0_35 = arith.constant 0 : index
    %c127 = arith.constant 127 : index
    %83 = vector.load %arg14[%c0_35, %c127] : memref<32x512xbf16, #tpu.memory_space<vmem>>, vector<32x256xbf16>
    %c0_i32_36 = arith.constant 0 : i32
    %84 = arith.sitofp %c0_i32_36 : i32 to bf16
    %85 = vector.shape_cast %64 : vector<1x256xi1> to vector<1x256xi1>
    %86 = vector.broadcast %85 : vector<1x256xi1> to vector<32x256xi1>
    %87 = vector.broadcast %84 : bf16 to vector<32x256xbf16>
    %88 = arith.select %86, %83, %87 : vector<32x256xi1>, vector<32x256xbf16>
    %c96 = arith.constant 96 : index
    %c0_37 = arith.constant 0 : index
    %89 = vector.load %arg15[%c96, %c0_37] : memref<288x256xbf16, #tpu.memory_space<vmem>>, vector<32x256xbf16>
    tpu.vector_store %arg15[%c96, %c0_37], %88 {strides = array<i32>} : memref<288x256xbf16, #tpu.memory_space<vmem>>, vector<32x256xbf16>,
    %c0_38 = arith.constant 0 : index
    %c128_39 = arith.constant 128 : index
    %90 = vector.load %arg14[%c0_38, %c128_39] : memref<32x512xbf16, #tpu.memory_space<vmem>>, vector<32x256xbf16>
    %c128_40 = arith.constant 128 : index
    %c0_41 = arith.constant 0 : index
    %91 = vector.load %arg15[%c128_40, %c0_41] : memref<288x256xbf16, #tpu.memory_space<vmem>>, vector<32x256xbf16>
    tpu.vector_store %arg15[%c128_40, %c0_41], %90 {strides = array<i32>} : memref<288x256xbf16, #tpu.memory_space<vmem>>, vector<32x256xbf16>,
    %c0_42 = arith.constant 0 : index
    %c129 = arith.constant 129 : index
    %92 = vector.load %arg14[%c0_42, %c129] : memref<32x512xbf16, #tpu.memory_space<vmem>>, vector<32x256xbf16>
    %c0_i32_43 = arith.constant 0 : i32
    %93 = arith.sitofp %c0_i32_43 : i32 to bf16
    %94 = vector.shape_cast %66 : vector<1x256xi1> to vector<1x256xi1>
    %95 = vector.broadcast %94 : vector<1x256xi1> to vector<32x256xi1>
    %96 = vector.broadcast %93 : bf16 to vector<32x256xbf16>
    %97 = arith.select %95, %92, %96 : vector<32x256xi1>, vector<32x256xbf16>
    %c160 = arith.constant 160 : index
    %c0_44 = arith.constant 0 : index
    %98 = vector.load %arg15[%c160, %c0_44] : memref<288x256xbf16, #tpu.memory_space<vmem>>, vector<32x256xbf16>
    tpu.vector_store %arg15[%c160, %c0_44], %97 {strides = array<i32>} : memref<288x256xbf16, #tpu.memory_space<vmem>>, vector<32x256xbf16>,
    %c0_45 = arith.constant 0 : index
    %c143 = arith.constant 143 : index
    %99 = vector.load %arg14[%c0_45, %c143] : memref<32x512xbf16, #tpu.memory_space<vmem>>, vector<32x256xbf16>
    %c0_i32_46 = arith.constant 0 : i32
    %100 = arith.sitofp %c0_i32_46 : i32 to bf16
    %101 = vector.shape_cast %64 : vector<1x256xi1> to vector<1x256xi1>
    %102 = vector.broadcast %101 : vector<1x256xi1> to vector<32x256xi1>
    %103 = vector.broadcast %100 : bf16 to vector<32x256xbf16>
    %104 = arith.select %102, %99, %103 : vector<32x256xi1>, vector<32x256xbf16>
    %c192 = arith.constant 192 : index
    %c0_47 = arith.constant 0 : index
    %105 = vector.load %arg15[%c192, %c0_47] : memref<288x256xbf16, #tpu.memory_space<vmem>>, vector<32x256xbf16>
    tpu.vector_store %arg15[%c192, %c0_47], %104 {strides = array<i32>} : memref<288x256xbf16, #tpu.memory_space<vmem>>, vector<32x256xbf16>,
    %c0_48 = arith.constant 0 : index
    %c144 = arith.constant 144 : index
    %106 = vector.load %arg14[%c0_48, %c144] : memref<32x512xbf16, #tpu.memory_space<vmem>>, vector<32x256xbf16>
    %c224 = arith.constant 224 : index
    %c0_49 = arith.constant 0 : index
    %107 = vector.load %arg15[%c224, %c0_49] : memref<288x256xbf16, #tpu.memory_space<vmem>>, vector<32x256xbf16>
    tpu.vector_store %arg15[%c224, %c0_49], %106 {strides = array<i32>} : memref<288x256xbf16, #tpu.memory_space<vmem>>, vector<32x256xbf16>,
    %c0_50 = arith.constant 0 : index
    %c145 = arith.constant 145 : index
    %108 = vector.load %arg14[%c0_50, %c145] : memref<32x512xbf16, #tpu.memory_space<vmem>>, vector<32x256xbf16>
    %c0_i32_51 = arith.constant 0 : i32
    %109 = arith.sitofp %c0_i32_51 : i32 to bf16
    %110 = vector.shape_cast %66 : vector<1x256xi1> to vector<1x256xi1>
    %111 = vector.broadcast %110 : vector<1x256xi1> to vector<32x256xi1>
    %112 = vector.broadcast %109 : bf16 to vector<32x256xbf16>
    %113 = arith.select %111, %108, %112 : vector<32x256xi1>, vector<32x256xbf16>
    %c256 = arith.constant 256 : index
    %c0_52 = arith.constant 0 : index
    %114 = vector.load %arg15[%c256, %c0_52] : memref<288x256xbf16, #tpu.memory_space<vmem>>, vector<32x256xbf16>
    tpu.vector_store %arg15[%c256, %c0_52], %113 {strides = array<i32>} : memref<288x256xbf16, #tpu.memory_space<vmem>>, vector<32x256xbf16>,
    %c0_53 = arith.constant 0 : index
    %c0_54 = arith.constant 0 : index
    %115 = vector.load %arg3[%c0_53, %c0_54] : memref<32x288xbf16, #tpu.memory_space<vmem>>, vector<32x288xbf16>
    %c0_55 = arith.constant 0 : index
    %c0_56 = arith.constant 0 : index
    %116 = vector.load %arg15[%c0_55, %c0_56] : memref<288x256xbf16, #tpu.memory_space<vmem>>, vector<288x256xbf16>
    %cst_57 = arith.constant dense<0.000000e+00> : vector<32x256xf32>
    %117 = tpu.matmul %115, %116, %cst_57 {dimension_numbers = #tpu.dot_dimension_numbers<[1], [0], [0], [1], [0, 0, 1, 1], [], []>} : vector<32x288xbf16>, vector<288x256xbf16>, vector<32x256xf32> -> vector<32x256xf32>
    %c0_58 = arith.constant 0 : index
    %c0_59 = arith.constant 0 : index
    %118 = vector.load %arg5[%c0_58, %c0_59] : memref<32x32xf32, #tpu.memory_space<vmem>>, vector<32x32xf32>
    %c0_60 = arith.constant 0 : index
    %c0_61 = arith.constant 0 : index
    %119 = vector.load %arg9[%c0_60, %c0_61] : memref<32x1xf32, #tpu.memory_space<vmem>>, vector<32x1xf32>
    %c0_62 = arith.constant 0 : index
    %c0_63 = arith.constant 0 : index
    %120 = vector.load %arg10[%c0_62, %c0_63] : memref<32x1xf32, #tpu.memory_space<vmem>>, vector<32x1xf32>
    %cst_64 = arith.constant dense<0.000000e+00> : vector<32xf32>
    %121 = vector.multi_reduction <add>, %117, %cst_64 [1] : vector<32x256xf32> to vector<32xf32>
    %122 = vector.shape_cast %121 : vector<32xf32> to vector<32x1xf32>
    %123 = arith.mulf %117, %117 : vector<32x256xf32>
    %cst_65 = arith.constant dense<0.000000e+00> : vector<32xf32>
    %124 = vector.multi_reduction <add>, %123, %cst_65 [1] : vector<32x256xf32> to vector<32xf32>
    %125 = vector.shape_cast %124 : vector<32xf32> to vector<32x1xf32>
    %126 = tpu.iota {dimensions = array<i32: 1>} : vector<1x2xi32>
    %c0_i32_66 = arith.constant 0 : i32
    %127 = vector.broadcast %c0_i32_66 : i32 to vector<1x2xi32>
    %128 = arith.cmpi eq, %126, %127 : vector<1x2xi32>
    %129 = vector.shape_cast %128 : vector<1x2xi1> to vector<1x2xi1>
    %130 = vector.broadcast %129 : vector<1x2xi1> to vector<32x2xi1>
    %131 = vector.shape_cast %122 : vector<32x1xf32> to vector<32x1xf32>
    %132 = vector.broadcast %131 : vector<32x1xf32> to vector<32x2xf32>
    %133 = vector.shape_cast %125 : vector<32x1xf32> to vector<32x1xf32>
    %134 = vector.broadcast %133 : vector<32x1xf32> to vector<32x2xf32>
    %135 = arith.select %130, %132, %134 : vector<32x2xi1>, vector<32x2xf32>
    %cst_67 = arith.constant dense<0.000000e+00> : vector<32x2xf32>
    %136 = tpu.matmul %118, %135, %cst_67 {dimension_numbers = #tpu.dot_dimension_numbers<[1], [0], [0], [1], [0, 0, 1, 1], [], []>} : vector<32x32xf32>, vector<32x2xf32>, vector<32x2xf32> -> vector<32x2xf32>
    %137 = vector.extract_strided_slice %136 {offsets = [0, 0], sizes = [32, 1], strides = [1, 1]} : vector<32x2xf32> to vector<32x1xf32>
    %138 = vector.extract_strided_slice %136 {offsets = [0, 1], sizes = [32, 1], strides = [1, 1]} : vector<32x2xf32> to vector<32x1xf32>
    %139 = arith.mulf %137, %137 : vector<32x1xf32>
    %140 = arith.subf %138, %139 : vector<32x1xf32>
    %cst_68 = arith.constant 9.99999974E-6 : f32
    %141 = vector.broadcast %cst_68 : f32 to vector<32x1xf32>
    %142 = arith.addf %140, %141 : vector<32x1xf32>
    %143 = math.rsqrt %142 : vector<32x1xf32>
    %144 = arith.mulf %119, %143 : vector<32x1xf32>
    %145 = arith.mulf %137, %144 : vector<32x1xf32>
    %146 = arith.subf %120, %145 : vector<32x1xf32>
    %147 = vector.broadcast %144 : vector<32x1xf32> to vector<32x256xf32>
    %148 = arith.mulf %117, %147 : vector<32x256xf32>
    %149 = vector.broadcast %146 : vector<32x1xf32> to vector<32x256xf32>
    %150 = arith.addf %148, %149 : vector<32x256xf32>
    %cst_69 = arith.constant 0.000000e+00 : f32
    %151 = vector.broadcast %cst_69 : f32 to vector<32x256xf32>
    %152 = arith.maximumf %150, %151 : vector<32x256xf32>
    %c0_70 = arith.constant 0 : index
    %c0_71 = arith.constant 0 : index
    %153 = vector.load %arg4[%c0_70, %c0_71] : memref<128x32xbf16, #tpu.memory_space<vmem>>, vector<128x32xbf16>
    %154 = arith.truncf %152 : vector<32x256xf32> to vector<32x256xbf16>
    %cst_72 = arith.constant dense<0.000000e+00> : vector<128x256xf32>
    %155 = tpu.matmul %153, %154, %cst_72 {dimension_numbers = #tpu.dot_dimension_numbers<[1], [0], [0], [1], [0, 0, 1, 1], [], []>} : vector<128x32xbf16>, vector<32x256xbf16>, vector<128x256xf32> -> vector<128x256xf32>
    %c0_73 = arith.constant 0 : index
    %c0_74 = arith.constant 0 : index
    %156 = vector.load %arg6[%c0_73, %c0_74] : memref<128x128xf32, #tpu.memory_space<vmem>>, vector<128x128xf32>
    %c0_75 = arith.constant 0 : index
    %c0_76 = arith.constant 0 : index
    %157 = vector.load %arg11[%c0_75, %c0_76] : memref<128x1xf32, #tpu.memory_space<vmem>>, vector<128x1xf32>
    %c0_77 = arith.constant 0 : index
    %c0_78 = arith.constant 0 : index
    %158 = vector.load %arg12[%c0_77, %c0_78] : memref<128x1xf32, #tpu.memory_space<vmem>>, vector<128x1xf32>
    %cst_79 = arith.constant dense<0.000000e+00> : vector<128xf32>
    %159 = vector.multi_reduction <add>, %155, %cst_79 [1] : vector<128x256xf32> to vector<128xf32>
    %160 = vector.shape_cast %159 : vector<128xf32> to vector<128x1xf32>
    %161 = arith.mulf %155, %155 : vector<128x256xf32>
    %cst_80 = arith.constant dense<0.000000e+00> : vector<128xf32>
    %162 = vector.multi_reduction <add>, %161, %cst_80 [1] : vector<128x256xf32> to vector<128xf32>
    %163 = vector.shape_cast %162 : vector<128xf32> to vector<128x1xf32>
    %164 = tpu.iota {dimensions = array<i32: 1>} : vector<1x2xi32>
    %c0_i32_81 = arith.constant 0 : i32
    %165 = vector.broadcast %c0_i32_81 : i32 to vector<1x2xi32>
    %166 = arith.cmpi eq, %164, %165 : vector<1x2xi32>
    %167 = vector.shape_cast %166 : vector<1x2xi1> to vector<1x2xi1>
    %168 = vector.broadcast %167 : vector<1x2xi1> to vector<128x2xi1>
    %169 = vector.shape_cast %160 : vector<128x1xf32> to vector<128x1xf32>
    %170 = vector.broadcast %169 : vector<128x1xf32> to vector<128x2xf32>
    %171 = vector.shape_cast %163 : vector<128x1xf32> to vector<128x1xf32>
    %172 = vector.broadcast %171 : vector<128x1xf32> to vector<128x2xf32>
    %173 = arith.select %168, %170, %172 : vector<128x2xi1>, vector<128x2xf32>
    %cst_82 = arith.constant dense<0.000000e+00> : vector<128x2xf32>
    %174 = tpu.matmul %156, %173, %cst_82 {dimension_numbers = #tpu.dot_dimension_numbers<[1], [0], [0], [1], [0, 0, 1, 1], [], []>} : vector<128x128xf32>, vector<128x2xf32>, vector<128x2xf32> -> vector<128x2xf32>
    %175 = vector.extract_strided_slice %174 {offsets = [0, 0], sizes = [128, 1], strides = [1, 1]} : vector<128x2xf32> to vector<128x1xf32>
    %176 = vector.extract_strided_slice %174 {offsets = [0, 1], sizes = [128, 1], strides = [1, 1]} : vector<128x2xf32> to vector<128x1xf32>
    %177 = arith.mulf %175, %175 : vector<128x1xf32>
    %178 = arith.subf %176, %177 : vector<128x1xf32>
    %cst_83 = arith.constant 9.99999974E-6 : f32
    %179 = vector.broadcast %cst_83 : f32 to vector<128x1xf32>
    %180 = arith.addf %178, %179 : vector<128x1xf32>
    %181 = math.rsqrt %180 : vector<128x1xf32>
    %182 = arith.mulf %157, %181 : vector<128x1xf32>
    %183 = arith.mulf %175, %182 : vector<128x1xf32>
    %184 = arith.subf %158, %183 : vector<128x1xf32>
    %185 = vector.broadcast %182 : vector<128x1xf32> to vector<128x256xf32>
    %186 = arith.mulf %155, %185 : vector<128x256xf32>
    %187 = vector.broadcast %184 : vector<128x1xf32> to vector<128x256xf32>
    %188 = arith.addf %186, %187 : vector<128x256xf32>
    %c0_84 = arith.constant 0 : index
    %c0_85 = arith.constant 0 : index
    %c0_86 = arith.constant 0 : index
    %189 = vector.load %arg1[%c0_84, %c0_85, %c0_86] : memref<1x128x256xf32, #tpu.memory_space<vmem>>, vector<1x128x256xf32>
    %190 = vector.shape_cast %189 : vector<1x128x256xf32> to vector<128x256xf32>
    %191 = arith.addf %188, %190 : vector<128x256xf32>
    %cst_87 = arith.constant 0.000000e+00 : f32
    %192 = vector.broadcast %cst_87 : f32 to vector<128x256xf32>
    %193 = arith.maximumf %191, %192 : vector<128x256xf32>
    %c0_88 = arith.constant 0 : index
    %c0_89 = arith.constant 0 : index
    %c0_90 = arith.constant 0 : index
    %194 = vector.load %arg13[%c0_88, %c0_89, %c0_90] : memref<1x128x256xf32, #tpu.memory_space<vmem>>, vector<1x128x256xf32>
    %195 = vector.shape_cast %194 : vector<1x128x256xf32> to vector<128x256xf32>
    %196 = vector.shape_cast %193 : vector<128x256xf32> to vector<1x128x256xf32>
    tpu.vector_store %arg13[%c0_88, %c0_89, %c0_90], %196 {strides = array<i32>} : memref<1x128x256xf32, #tpu.memory_space<vmem>>, vector<1x128x256xf32>,
    return
  }
  func.func @transform_0(%arg0: i32) -> (i32, i32, i32) {
    %c0_i32 = arith.constant 0 : i32
    %c0_i32_0 = arith.constant 0 : i32
    %c0_i32_1 = arith.constant 0 : i32
    return %arg0, %c0_i32, %c0_i32_0 : i32, i32, i32
  }
  func.func @transform_1(%arg0: i32) -> (i32, i32) {
    %c0_i32 = arith.constant 0 : i32
    %c0_i32_0 = arith.constant 0 : i32
    %c0_i32_1 = arith.constant 0 : i32
    return %c0_i32, %c0_i32_0 : i32, i32
  }
  func.func @transform_2(%arg0: i32) -> (i32, i32) {
    %c0_i32 = arith.constant 0 : i32
    %c0_i32_0 = arith.constant 0 : i32
    %c0_i32_1 = arith.constant 0 : i32
    return %c0_i32, %c0_i32_0 : i32, i32
  }
  func.func @transform_3(%arg0: i32) -> (i32, i32) {
    %c0_i32 = arith.constant 0 : i32
    %c0_i32_0 = arith.constant 0 : i32
    %c0_i32_1 = arith.constant 0 : i32
    return %c0_i32, %c0_i32_0 : i32, i32
  }
  func.func @transform_4(%arg0: i32) -> (i32, i32) {
    %c0_i32 = arith.constant 0 : i32
    %c0_i32_0 = arith.constant 0 : i32
    %c0_i32_1 = arith.constant 0 : i32
    return %c0_i32, %c0_i32_0 : i32, i32
  }
  func.func @transform_5(%arg0: i32) -> (i32, i32) {
    %c0_i32 = arith.constant 0 : i32
    %c0_i32_0 = arith.constant 0 : i32
    %c0_i32_1 = arith.constant 0 : i32
    return %c0_i32, %c0_i32_0 : i32, i32
  }
  func.func @transform_6(%arg0: i32) -> (i32, i32) {
    %c0_i32 = arith.constant 0 : i32
    %c0_i32_0 = arith.constant 0 : i32
    %c0_i32_1 = arith.constant 0 : i32
    return %c0_i32, %c0_i32_0 : i32, i32
  }
  func.func @transform_7(%arg0: i32) -> (i32, i32) {
    %c0_i32 = arith.constant 0 : i32
    %c0_i32_0 = arith.constant 0 : i32
    %c0_i32_1 = arith.constant 0 : i32
    return %c0_i32, %c0_i32_0 : i32, i32
  }
  func.func @transform_8(%arg0: i32) -> (i32, i32) {
    %c0_i32 = arith.constant 0 : i32
    %c0_i32_0 = arith.constant 0 : i32
    %c0_i32_1 = arith.constant 0 : i32
    return %c0_i32, %c0_i32_0 : i32, i32
  }
  func.func @transform_9(%arg0: i32) -> (i32, i32) {
    %c0_i32 = arith.constant 0 : i32
    %c0_i32_0 = arith.constant 0 : i32
    %c0_i32_1 = arith.constant 0 : i32
    return %c0_i32, %c0_i32_0 : i32, i32
  }
  func.func @transform_10(%arg0: i32) -> (i32, i32) {
    %c0_i32 = arith.constant 0 : i32
    %c0_i32_0 = arith.constant 0 : i32
    %c0_i32_1 = arith.constant 0 : i32
    return %c0_i32, %c0_i32_0 : i32, i32
  }
  func.func @transform_11(%arg0: i32) -> (i32, i32) {
    %c0_i32 = arith.constant 0 : i32
    %c0_i32_0 = arith.constant 0 : i32
    %c0_i32_1 = arith.constant 0 : i32
    return %c0_i32, %c0_i32_0 : i32, i32
  }
  func.func @transform_12(%arg0: i32) -> (i32, i32, i32) {
    %c0_i32 = arith.constant 0 : i32
    %c0_i32_0 = arith.constant 0 : i32
    %c0_i32_1 = arith.constant 0 : i32
    return %arg0, %c0_i32, %c0_i32_0 : i32, i32, i32
  }
}

</mosaic_0001>

<bundles_post_ra>
// kernel: _lambda_.1
= control target key start
LH: loop header
LB: loop body
LE: loop exit
PB: predicated region body
PF: predicated region fallthrough
CT: control target
= control target key end

     0   :  { %s3685_s21 = smov 0   ;;  %s5012_s0 = inlined_call_operand.vmem [shape: f32[2,128,256], index: 0, kind: input, shape index: {}]   ;;  %s5013_s1 = inlined_call_operand.vmem [shape: bf16[32,128], index: 1, kind: input, shape index: {}]   ;;  %s5014_s2 = inlined_call_operand.vmem [shape: bf16[32,288], index: 2, kind: input, shape index: {}]   ;;  %s5015_s3 = inlined_call_operand.vmem [shape: bf16[128,32], index: 3, kind: input, shape index: {}]   ;;  %s5016_s4 = inlined_call_operand.vmem [shape: f32[32,32], index: 4, kind: input, shape index: {}]   ;;  %s5017_s5 = inlined_call_operand.vmem [shape: f32[128,128], index: 5, kind: input, shape index: {}]   ;;  %s5018_s6 = inlined_call_operand.vmem [shape: f32[32,1], index: 6, kind: input, shape index: {}]   ;;  %s5019_s7 = inlined_call_operand.vmem [shape: f32[32,1], index: 7, kind: input, shape index: {}]   ;;  %s5020_s8 = inlined_call_operand.vmem [shape: f32[32,1], index: 8, kind: input, shape index: {}]   ;;  %s5021_s9 = inlined_call_operand.vmem [shape: f32[32,1], index: 9, kind: input, shape index: {}]   ;;  %s5022_s10 = inlined_call_operand.vmem [shape: f32[128,1], index: 10, kind: input, shape index: {}]   ;;  %s5023_s11 = inlined_call_operand.vmem [shape: f32[128,1], index: 11, kind: input, shape index: {}]   ;;  %s5024_s12 = inlined_call_operand.vmem [shape: f32[2,128,256], index: 12, kind: output, shape index: {}]  }
   0x1 LB: > { %s3251_s22 = sadd.s32 4294967295, %s3609_s21   ;;  %p3255_p0 = scmp.ge.s32.totalorder %s3609_s21, 1  ;;  %s3609_s21 = sphi %s3685_s21, %s22_s21  }
   0x2   : > { %p362_p1 = scmp.lt.s32.totalorder %s3609_s21, 3 }
   0x4   : > { %p363_p2 = pnand %p3255_p0, %p362_p1 }
   0x5   : > { %p404_p3 = scmp.lt.s32.totalorder (!%p363_p2), %s3251_s22, 1  ;;  %s3612_s24 = smov (!%p363_p2), 1  }
   0x6   : > { %366 = sbr.rel (%p363_p2) target bundleno = 3297 (0xce1), region = 68  ;;  %s3613_s25 = smov (!%p363_p2), 127  }
   0x7   : > { %s3614_s13 = smov (!%p363_p2), 113   ;;  %s3615_s14 = smov (!%p363_p2), 111  }
   0x8   : > { %s3616_s15 = smov (!%p363_p2), 15   ;;  %s3617_s16 = smov (!%p363_p2), 17  }
   0x9   : > { %s3618_s17 = smov (!%p363_p2), 16   ;;  %s3619_s18 = smov (!%p363_p2), 112  }
   0xb   : > { %v3611_v0 = vmov 0   ;;  %s5038_s22 = smov (!%p404_p3, %s3251_s22), 1  ;;  %v3533_v49 = vld [vmem:[%s5013_s1] sm:$0xff]   ;;  %v3534_v50 = vld [vmem:[%s5013_s1 + $0x8] sm:$0xff]   ;;  %vm587_vm0 = vcmask 261120   ;;  %vm1099_vm8 = vcmask 1039360  }
   0xc   : > { %513 = vmatprep.mubr.bf16.mxu0 %v3611_v0  ;;  %809 = vst [vmem:[#allocation2] sm:$0xf] %v3611_v0  ;;  %810 = vst [vmem:[#allocation2 + $0x10] sm:$0xf] %v3611_v0  ;;  %3492 = vset.pattern.permute.xlu1 %v3611_v0  ;;  %s3336_s23 = sshll.u32 %s5038_s22, 8  ;;  %vm1027_vm9 = vcmask 924672  }
   0xd   : > { %811 = vst [vmem:[#allocation2 + $0x20] sm:$0xf] %v3611_v0  ;;  %812 = vst [vmem:[#allocation2 + $0x30] sm:$0xf] %v3611_v0  ;;  %3491 = vset.pattern.permute.xlu0 %v3611_v0  ;;  %s3712_s26 = scalar_lea.vmem %s5012_s0, %s3336_s23  ;;  %vm891_vm14 = vcmask 908288  }
   0xe   : > { %813 = vst [vmem:[#allocation2 + $0xc] sm:$0xf] %v3611_v0  ;;  %814 = vst [vmem:[#allocation2 + $0x1c] sm:$0xf] %v3611_v0  ;;  %v450_v1 = vld [vmem:[%s3712_s26 + $0xe8] sm:$0xff]  ;;  %v452_v2 = vld [vmem:[%s3712_s26 + $0xf8] sm:$0xff] }
   0xf   : > { %815 = vst [vmem:[#allocation2 + $0x2c] sm:$0xf] %v3611_v0  ;;  %816 = vst [vmem:[#allocation2 + $0x3c] sm:$0xf] %v3611_v0  ;;  %v449_v3 = vld [vmem:[%s3712_s26 + $0xe0] sm:$0xff]  ;;  %v468_v4 = vpack.c.bf16 %v452_v2, %v450_v1  ;;  %v451_v5 = vld [vmem:[%s3712_s26 + $0xf0] sm:$0xff] }
  0x10   : > { %v446_v6 = vld [vmem:[%s3712_s26 + $0xc8] sm:$0xff]  ;;  %v448_v7 = vld [vmem:[%s3712_s26 + $0xd8] sm:$0xff]  ;;  %v467_v8 = vpack.c.bf16 %v451_v5, %v449_v3  ;;  %v445_v10 = vld [vmem:[%s3712_s26 + $0xc0] sm:$0xff] }
  0x11   : > { %v466_v9 = vpack.c.bf16 %v448_v7, %v446_v6  ;;  %v447_v11 = vld [vmem:[%s3712_s26 + $0xd0] sm:$0xff]  ;;  %v442_v12 = vld [vmem:[%s3712_s26 + $0xa8] sm:$0xff]  ;;  %481 = vmatprep.subr.bf16.mxu0 %v468_v4  ;;  %v444_v13 = vld [vmem:[%s3712_s26 + $0xb8] sm:$0xff] }
  0x12   : > { %482 = vmatpush1.bf16.msra.mxu0 %v467_v8  ;;  %v465_v14 = vpack.c.bf16 %v447_v11, %v445_v10  ;;  %v464_v15 = vpack.c.bf16 %v444_v13, %v442_v12  ;;  %v441_v16 = vld [vmem:[%s3712_s26 + $0xa0] sm:$0xff]  ;;  %v443_v17 = vld [vmem:[%s3712_s26 + $0xb0] sm:$0xff]  ;;  %v438_v18 = vld [vmem:[%s3712_s26 + $0x88] sm:$0xff] }
  0x13   : > { %483 = vmatprep.subr.bf16.mxu0 %v466_v9  ;;  %v440_v19 = vld [vmem:[%s3712_s26 + $0x98] sm:$0xff]  ;;  %v463_v20 = vpack.c.bf16 %v443_v17, %v441_v16  ;;  %v437_v22 = vld [vmem:[%s3712_s26 + $0x80] sm:$0xff]  ;;  %v439_v23 = vld [vmem:[%s3712_s26 + $0x90] sm:$0xff] }
  0x14   : > { %v462_v21 = vpack.c.bf16 %v440_v19, %v438_v18  ;;  %v434_v24 = vld [vmem:[%s3712_s26 + $0x68] sm:$0xff]  ;;  %v436_v25 = vld [vmem:[%s3712_s26 + $0x78] sm:$0xff]  ;;  %v433_v26 = vld [vmem:[%s3712_s26 + $0x60] sm:$0xff]  ;;  %v461_v28 = vpack.c.bf16 %v439_v23, %v437_v22 }
  0x15   : > { %v435_v27 = vld [vmem:[%s3712_s26 + $0x70] sm:$0xff]  ;;  %v430_v29 = vld [vmem:[%s3712_s26 + $0x48] sm:$0xff]  ;;  %v432_v30 = vld [vmem:[%s3712_s26 + $0x58] sm:$0xff]  ;;  %v460_v31 = vpack.c.bf16 %v436_v25, %v434_v24 }
  0x16   : > { %484 = vmatpush1.bf16.msra.mxu0 %v465_v14  ;;  %v459_v32 = vpack.c.bf16 %v435_v27, %v433_v26  ;;  %v458_v33 = vpack.c.bf16 %v432_v30, %v430_v29  ;;  %v429_v34 = vld [vmem:[%s3712_s26 + $0x40] sm:$0xff]  ;;  %v431_v35 = vld [vmem:[%s3712_s26 + $0x50] sm:$0xff]  ;;  %v426_v36 = vld [vmem:[%s3712_s26 + $0x28] sm:$0xff]  ;;  %v578_v14 = vlaneseq }
  0x17   : > { %485 = vmatprep.subr.bf16.mxu0 %v464_v15  ;;  %v428_v37 = vld [vmem:[%s3712_s26 + $0x38] sm:$0xff]  ;;  %v457_v38 = vpack.c.bf16 %v431_v35, %v429_v34  ;;  %v425_v40 = vld [vmem:[%s3712_s26 + $0x20] sm:$0xff]  ;;  %v427_v41 = vld [vmem:[%s3712_s26 + $0x30] sm:$0xff] }
  0x18   : > { %v456_v39 = vpack.c.bf16 %v428_v37, %v426_v36  ;;  %v422_v42 = vld [vmem:[%s3712_s26 + $0x8] sm:$0xff]  ;;  %v424_v43 = vld [vmem:[%s3712_s26 + $0x18] sm:$0xff]  ;;  %v455_v44 = vpack.c.bf16 %v427_v41, %v425_v40  ;;  %v421_v46 = vld [vmem:[%s3712_s26] sm:$0xff]  ;;  %v3798_v17 = vand.u32 127, %v578_v14 }
  0x19   : > { %v454_v45 = vpack.c.bf16 %v424_v43, %v422_v42  ;;  %v423_v47 = vld [vmem:[%s3712_s26 + $0x10] sm:$0xff]  ;;  %v534_v12 = vld [vmem:[%s5016_s4] sm:$0xff]  ;;  %v535_v27 = vld [vmem:[%s5016_s4 + $0x8] sm:$0xff] }
  0x1a   : > { %486 = vmatpush1.bf16.msra.mxu0 %v463_v20  ;;  %v453_v48 = vpack.c.bf16 %v423_v47, %v421_v46  ;;  %3398 = vmatprep.mubr.msk.f32.mxu1 %vm587_vm0, %v534_v12  ;;  %vm580_vm1 = vcmp.eq.s32.totalorder %v3798_v17, 0  ;;  %v537_v29 = vld [vmem:[%s5016_s4 + $0x18] sm:$0xff]  ;;  %v850_v14 = vand.u32 15, %v3798_v17 }
  0x1b   : > { %487 = vmatprep.subr.bf16.mxu0 %v462_v21 }
  0x1c   : > { %vm870_vm2 = vcmp.ge.s32.totalorder %v850_v14, 1  ;;  %vm872_vm4 = vcmp.lt.s32.totalorder %v850_v14, 15 }
  0x1e   : > { %488 = vmatpush1.bf16.msra.mxu0 %v461_v28  ;;  %v536_v28 = vld [vmem:[%s5016_s4 + $0x10] sm:$0xff] }
  0x1f   : > { %489 = vmatprep.subr.bf16.mxu0 %v460_v31 }
  0x22   : > { %490 = vmatpush1.bf16.msra.mxu0 %v459_v32 }
  0x23   : > { %491 = vmatprep.subr.bf16.mxu0 %v458_v33 }
  0x26   : > { %492 = vmatpush1.bf16.msra.mxu0 %v457_v38 }
  0x27   : > { %493 = vmatprep.subr.bf16.mxu0 %v456_v39 }
  0x2a   : > { %494 = vmatpush1.bf16.msra.mxu0 %v455_v44 }
  0x2b   : > { %495 = vmatprep.subr.bf16.mxu0 %v454_v45 }
  0x2e   : > { %496 = vmatpush1.bf16.msra.mxu0 %v453_v48 }
  0x31   : > { %514 = vmatmul.mubr.bf16.vlgmr.msra.gmra.mxu0 %v3533_v49 }
  0x32   : > { %523 = vmatprep.mubr.bf16.mxu0 %v3611_v0 }
  0x39   : > { %524 = vmatmul.mubr.bf16.gmra.mxu0 %v3534_v50 }
  0x3a   : > { %1780 = vmatprep.mubr.bf16.mxu0 %v3611_v0 }
  0xf1   : > { %v3754_v51 = vpop.f32.mrf.mxu0 }
  0xf2   : > { %v558_v8 = vmul.f32 %v3754_v51, %v3754_v51 }
  0xf3   : > { %v3756_v52 = vpop.f32.mrf.mxu0 }
  0xf4   : > { %v559_v7 = vmul.f32 %v3756_v52, %v3756_v52  ;;  %v546_v11 = vadd.f32 %v3756_v52, %v3754_v51 }
  0xf5   : > { %v3758_v53 = vpop.f32.mrf.mxu0 }
  0xf6   : > { %v560_v3 = vmul.f32 %v3758_v53, %v3758_v53  ;;  %v566_v9 = vadd.f32 %v559_v7, %v558_v8 }
  0xf7   : > { %v3760_v54 = vpop.f32.mrf.mxu0 }
  0xf8   : > { %v561_v1 = vmul.f32 %v3760_v54, %v3760_v54  ;;  %v549_v10 = vadd.f32 %v3760_v54, %v3758_v53 }
  0xf9   : > { %v3762_v55 = vpop.f32.mrf.mxu0 }
  0xfa   : > { %v562_v60 = vmul.f32 %v3762_v55, %v3762_v55  ;;  %v569_v5 = vadd.f32 %v561_v1, %v560_v3  ;;  %v540_v1 = vld [vmem:[%s5018_s6 + $0x10] sm:$0xff]  ;;  %v541_v3 = vld [vmem:[%s5018_s6 + $0x18] sm:$0xff] }
  0xfb   : > { %v3764_v56 = vpop.f32.mrf.mxu0 }
  0xfc   : > { %v552_v57 = vadd.f32 %v3764_v56, %v3762_v55  ;;  %v563_v58 = vmul.f32 %v3764_v56, %v3764_v56 }
  0xfd   : > { %v3770_v59 = vpop.f32.mrf.mxu0 }
  0xfe   : > { %553 = vadd.xlane.f32.xlu1 %v552_v57  ;;  %v572_v62 = vadd.f32 %v563_v58, %v562_v60  ;;  %v564_v4 = vmul.f32 %v3770_v59, %v3770_v59 }
  0xff   : > { %v3774_v61 = vpop.f32.mrf.mxu0 }
 0x100   : > { %v555_v63 = vadd.f32 %v3774_v61, %v3770_v59  ;;  %v565_v2 = vmul.f32 %v3774_v61, %v3774_v61 }
 0x102   : > { %573 = vadd.xlane.f32.xlu1 %v572_v62  ;;  %556 = vadd.xlane.f32.xlu0 %v555_v63  ;;  %v575_v6 = vadd.f32 %v565_v2, %v564_v4  ;;  %v538_v2 = vld [vmem:[%s5018_s6] sm:$0xff] }
 0x106   : > { %570 = vadd.xlane.f32.xlu1 %v569_v5  ;;  %576 = vadd.xlane.f32.xlu0 %v575_v6  ;;  %v539_v5 = vld [vmem:[%s5018_s6 + $0x8] sm:$0xff] }
 0x10a   : > { %567 = vadd.xlane.f32.xlu1 %v566_v9  ;;  %550 = vadd.xlane.f32.xlu0 %v549_v10  ;;  %v845_v9 = vadd.s32 128, %v3798_v17  ;;  %v2271_v17 = vld [vmem:[%s5017_s5 + $0x20] sm:$0xff] }
 0x10e   : > { %547 = vadd.xlane.f32.xlu0 %v546_v11 }
 0x187   : > { %v554_v13 = vpop.xlane.xlu1 %553 }
 0x18b   : > { %v574_v15 = vpop.xlane.xlu1 %573  ;;  %v557_v16 = vpop.xlane.xlu0 %556 }
 0x18c   : > { %v585_v21 = vsel %vm580_vm1, %v554_v13, %v574_v15  ;;  %v544_v13 = vld [vmem:[%s5019_s7 + $0x10] sm:$0xff]  ;;  %v857_v15 = vand.u32 15, %v845_v9 }
 0x18e   : > { %vm871_vm3 = vcmp.ge.s32.totalorder %v857_v15, 1  ;;  %vm873_vm5 = vcmp.lt.s32.totalorder %v857_v15, 15 }
 0x18f   : > { %v577_v18 = vpop.xlane.xlu0 %576  ;;  %v571_v20 = vpop.xlane.xlu1 %570  ;;  %vm886_vm6 = vmpackc.low %vm871_vm3, %vm870_vm2  ;;  %vm1072_vm3 = vcmask 121856  }
 0x190   : > { %v586_v19 = vsel %vm580_vm1, %v557_v16, %v577_v18  ;;  %v545_v18 = vld [vmem:[%s5019_s7 + $0x18] sm:$0xff]  ;;  %vm1022_vm7 = vmpackc.low %vm873_vm5, %vm872_vm4 }
 0x191   : > { %3390 = vmatprep.subr.mxu1 %v586_v19 }
 0x192   : > { %3391 = vmatpush3.msra.mxu1 %v586_v19 }
 0x193   : > { %3392 = vmatprep.subr.mxu1 %v585_v21  ;;  %v551_v22 = vpop.xlane.xlu0 %550  ;;  %v568_v24 = vpop.xlane.xlu1 %567 }
 0x194   : > { %3393 = vmatpush3.msra.mxu1 %v585_v21  ;;  %v584_v23 = vsel %vm580_vm1, %v551_v22, %v571_v20  ;;  %v542_v21 = vld [vmem:[%s5019_s7] sm:$0xff] }
 0x195   : > { %3394 = vmatprep.subr.mxu1 %v584_v23 }
 0x196   : > { %3395 = vmatpush3.msra.mxu1 %v584_v23 }
 0x197   : > { %v548_v25 = vpop.xlane.xlu0 %547 }
 0x198   : > { %v583_v26 = vsel %vm580_vm1, %v548_v25, %v568_v24  ;;  %v543_v24 = vld [vmem:[%s5019_s7 + $0x8] sm:$0xff] }
 0x199   : > { %3396 = vmatprep.subr.mxu1 %v583_v26 }
 0x19a   : > { %3397 = vmatpush3.msra.mxu1 %v583_v26 }
 0x19b   : > { %3399 = vmatmul.mubr.msk.f32.vlgmr.msra.gmra.mxu1 %vm587_vm0, %v535_v27  ;;  %v887_v27 = vsel %vm886_vm6, 65537, %v3611_v0  ;;  %vm1144_vm6 = vcmask 7168  }
 0x19c   : > { %3401 = vmatprep.mubr.msk.f32.mxu1 %vm587_vm0, %v536_v28  ;;  %v1023_v28 = vsel %vm1022_vm7, 65537, %v3611_v0 }
 0x19f   : > { %3402 = vmatmul.mubr.msk.f32.gmra.mxu1 %vm587_vm0, %v537_v29 }
 0x25b   : > { %v3821_v30 = vpop.f32.mrf.mxu1 }
 0x25c   : > { %v686_v37 = vmul.f32 %v3821_v30, %v3821_v30 }
 0x25d   : > { %v666_v31 = vpop.f32.mrf.mxu1 }
 0x25e   : > { %v685_v36 = vmul.f32 %v666_v31, %v666_v31 }
 0x25f   : > { %v3403_v32 = vpop.f32.mrf.mxu1 }
 0x260   : > { %v688_v33 = vmul.f32 %v3403_v32, %v3403_v32 }
 0x261   : > { %v676_v34 = vpop.f32.mrf.mxu1 }
 0x262   : > { %v687_v35 = vmul.f32 %v676_v34, %v676_v34  ;;  %699 = vrot.lane.b32.xlu1 %v688_v33, %s3612_s24 }
 0x264   : > { %697 = vrot.lane.b32.xlu0 %v687_v35, %s3612_s24 }
 0x266   : > { %693 = vrot.lane.b32.xlu1 %v685_v36, %s3612_s24 }
 0x26a   : > { %695 = vrot.lane.b32.xlu1 %v686_v37, %s3612_s24 }
 0x2d4   : > { %v700_v38 = vpop.permute.xlu1 %699 }
 0x2d5   : > { %v708_v39 = vsub.f32 %v3403_v32, %v700_v38 }
 0x2d6   : > { %v698_v40 = vpop.permute.xlu0 %697 }
 0x2d7   : > { %v712_v41 = vadd.f32 1e-05, %v708_v39  ;;  %v707_v42 = vsub.f32 %v676_v34, %v698_v40 }
 0x2d8   : > { %v694_v43 = vpop.permute.xlu1 %693 }
 0x2d9   : > { %3551 = vrsqrt.f32 %v712_v41  ;;  %v711_v44 = vadd.f32 1e-05, %v707_v42  ;;  %v705_v45 = vsub.f32 %v666_v31, %v694_v43 }
 0x2db   : > { %3553 = vrsqrt.f32 %v711_v44  ;;  %v709_v46 = vadd.f32 1e-05, %v705_v45 }
 0x2dc   : > { %v696_v47 = vpop.permute.xlu1 %695 }
 0x2dd   : > { %v706_v48 = vsub.f32 %v3821_v30, %v696_v47  ;;  %3555 = vrsqrt.f32 %v709_v46 }
 0x2df   : > { %v710_v49 = vadd.f32 1e-05, %v706_v48 }
 0x2e1   : > { %3557 = vrsqrt.f32 %v710_v49 }
 0x2e6   : > { %v3552_v50 = vpop.eup %3551 }
 0x2e7   : > { %727 = vrot.lane.b32.xlu1 %v3552_v50, %s3613_s25 }
 0x2e8   : > { %v3554_v57 = vpop.eup %3553 }
 0x2e9   : > { %725 = vrot.lane.b32.xlu0 %v3554_v57, %s3613_s25 }
 0x2ea   : > { %v3556_v58 = vpop.eup %3555 }
 0x2ed   : > { %721 = vrot.lane.b32.xlu0 %v3556_v58, %s3613_s25 }
 0x2ee   : > { %v3558_v60 = vpop.eup %3557 }
 0x2ef   : > { %723 = vrot.lane.b32.xlu1 %v3558_v60, %s3613_s25 }
 0x359   : > { %v728_v63 = vpop.permute.xlu1 %727 }
 0x35a   : > { %v736_v10 = vmul.f32 %v728_v63, %v541_v3 }
 0x35b   : > { %v726_v62 = vpop.permute.xlu0 %725 }
 0x35c   : > { %v735_v6 = vmul.f32 %v726_v62, %v540_v1  ;;  %v740_v16 = vmul.f32 %v3403_v32, %v736_v10 }
 0x35e   : > { %v739_v12 = vmul.f32 %v735_v6, %v676_v34  ;;  %v744_v23 = vsub.f32 %v545_v18, %v740_v16 }
 0x35f   : > { %v722_v4 = vpop.permute.xlu0 %721 }
 0x360   : > { %v733_v7 = vmul.f32 %v722_v4, %v538_v2  ;;  %v743_v20 = vsub.f32 %v544_v13, %v739_v12 }
 0x361   : > { %v724_v8 = vpop.permute.xlu1 %723 }
 0x362   : > { %v734_v11 = vmul.f32 %v724_v8, %v539_v5  ;;  %747 = vperm.xlu1 %3492, %v733_v7   ;;  %v737_v19 = vmul.f32 %v733_v7, %v666_v31 }
 0x364   : > { %752 = vperm.xlu0 %3491, %v734_v11   ;;  %v738_v22 = vmul.f32 %v3821_v30, %v734_v11  ;;  %v741_v25 = vsub.f32 %v542_v21, %v737_v19 }
 0x366   : > { %762 = vperm.xlu1 %3492, %v736_v10   ;;  %v742_v26 = vsub.f32 %v543_v24, %v738_v22 }
 0x368   : > { %757 = vperm.xlu0 %3491, %v735_v6  }
 0x36a   : > { %785 = vperm.xlu1 %3492, %v743_v20  }
 0x36c   : > { %790 = vperm.xlu0 %3491, %v744_v23  }
 0x36e   : > { %775 = vperm.xlu1 %3492, %v741_v25  }
 0x370   : > { %780 = vperm.xlu0 %3491, %v742_v26  }
 0x372   : > { %1096 = vrot.lane.b32.xlu1 %v887_v27, %s3613_s25 }
 0x374   : > { %1024 = vrot.lane.b32.xlu0 %v1023_v28, %s3614_s13 }
 0x376   : > { %888 = vrot.lane.b32.xlu1 %v887_v27, %s3615_s14 }
 0x378   : > { %1246 = vrot.lane.b32.xlu0 %v887_v27, %s3616_s15 }
 0x37a   : > { %1176 = vrot.lane.b32.xlu1 %v1023_v28, %s3612_s24 }
 0x37c   : > { %1373 = vrot.lane.b32.xlu0 %v1023_v28, %s3617_s16 }
 0x3dd   : > { %v748_v29 = vpop.permute.xlu1 %747 }
 0x3de   : > { %v765_v40 = vmul.f32 %v748_v29, %v3754_v51 }
 0x3df   : > { %v753_v30 = vpop.permute.xlu0 %752 }
 0x3e1   : > { %v763_v31 = vpop.permute.xlu1 %762 }
 0x3e2   : > { %v771_v36 = vmul.f32 %v763_v31, %v3770_v59  ;;  %v772_v37 = vmul.f32 %v763_v31, %v3774_v61  ;;  %v767_v59 = vmul.f32 %v753_v30, %v3758_v53  ;;  %v768_v61 = vmul.f32 %v753_v30, %v3760_v54 }
 0x3e3   : > { %v758_v32 = vpop.permute.xlu0 %757 }
 0x3e4   : > { %v769_v33 = vmul.f32 %v758_v32, %v3762_v55  ;;  %v770_v34 = vmul.f32 %v758_v32, %v3764_v56  ;;  %v766_v56 = vmul.f32 %v748_v29, %v3756_v52 }
 0x3e5   : > { %v786_v35 = vpop.permute.xlu1 %785 }
 0x3e6   : > { %v3873_v38 = vadd.f32 %v786_v35, %v769_v33  ;;  %v3875_v39 = vadd.f32 %v786_v35, %v770_v34 }
 0x3e7   : > { %v791_v41 = vpop.permute.xlu0 %790 }
 0x3e8   : > { %v805_v42 = vmax.f32 %v3873_v38, 0.0  ;;  %v806_v43 = vmax.f32 %v3875_v39, 0.0  ;;  %v3880_v44 = vadd.f32 %v791_v41, %v771_v36  ;;  %v3882_v55 = vadd.f32 %v791_v41, %v772_v37 }
 0x3e9   : > { %v776_v45 = vpop.permute.xlu1 %775 }
 0x3ea   : > { %v3891_v51 = vpack.c.bf16 %v806_v43, %v805_v42  ;;  %v807_v46 = vmax.f32 %v3880_v44, 0.0  ;;  %v808_v47 = vmax.f32 %v3882_v55, 0.0  ;;  %v3895_v48 = vadd.f32 %v776_v45, %v765_v40 }
 0x3eb   : > { %v3897_v49 = vadd.f32 %v776_v45, %v766_v56  ;;  %v781_v52 = vpop.permute.xlu0 %780 }
 0x3ec   : > { %843 = vst [vmem:[#allocation2 + $0x24] sm:$0xff] %v3891_v51  ;;  %v3904_v53 = vpack.c.bf16 %v808_v47, %v807_v46  ;;  %v801_v54 = vmax.f32 %v3895_v48, 0.0  ;;  %v3907_v50 = vadd.f32 %v781_v52, %v767_v59  ;;  %v3909_v57 = vadd.f32 %v781_v52, %v768_v61  ;;  %v3541_v48 = vld [vmem:[%s5014_s2 + $0x18] ss:$12 sps:$4 sm:$0xff]  }
 0x3ed   : > { %v802_v58 = vmax.f32 %v3897_v49, 0.0  ;;  %v1097_v2 = vpop.permute.xlu1 %1096  ;;  %v3535_v49 = vld [vmem:[%s5014_s2] ss:$12 sps:$4 sm:$0xff]  }
 0x3ee   : > { %844 = vst [vmem:[#allocation2 + $0x34] sm:$0xff] %v3904_v53  ;;  %v803_v60 = vmax.f32 %v3907_v50, 0.0  ;;  %v804_v62 = vmax.f32 %v3909_v57, 0.0  ;;  %v1098_v3 = vrot.slane %v1097_v2, 4  ;;  %v3538_v57 = vld [vmem:[%s5014_s2 + $0x8] ss:$12 sps:$4 sm:$0xff]  }
 0x3ef   : > { %v3919_v63 = vpack.c.bf16 %v802_v58, %v801_v54  ;;  %v1025_v4 = vpop.permute.xlu0 %1024 }
 0x3f0   : > { %v3925_v1 = vpack.c.bf16 %v804_v62, %v803_v60  ;;  %v3930_v5 = vsel %vm1099_vm8, %v1098_v3, %v1097_v2  ;;  %v1026_v6 = vrot.slane %v1025_v4, 4  ;;  %vm3938_vm11 = vcmp.ne.s16.totalorder %v1098_v3, 0 }
 0x3f1   : > { %841 = vst [vmem:[#allocation2 + $0x4] sm:$0xff] %v3919_v63  ;;  %vm1101_vm10 = vcmp.ne.s16.totalorder %v3930_v5, 0  ;;  %v889_v21 = vpop.permute.xlu1 %888  ;;  %v1315_v5 = vld [vmem:[#allocation2 + $0x3c] sm:$0xf]  ;;  %v3601_v39 = vpack.c.bf16 %v804_v62, %v802_v58 }
 0x3f2   : > { %842 = vst [vmem:[#allocation2 + $0x14] sm:$0xff] %v3925_v1  ;;  %v3943_v11 = vsel %vm1027_vm9, %v1026_v6, %v1025_v4  ;;  %vm3953_vm13 = vcmp.ne.s16.totalorder %v1026_v6, 0  ;;  %v890_v23 = vrot.slane %v889_v21, 4  ;;  %v3539_v58 = vld [vmem:[%s5014_s2 + $0x1c] ss:$12 sps:$4 sm:$0xff]  }
 0x3f3   : > { %vm1029_vm12 = vcmp.ne.s16.totalorder %v3943_v11, 0  ;;  %v958_v2 = vld [vmem:[#allocation2 + $0x28] sm:$0xf]  ;;  %v957_v3 = vld [vmem:[#allocation2 + $0x20] sm:$0xff] }
 0x3f4   : > { %v3973_v27 = vsel %vm891_vm14, %v890_v23, %v889_v21  ;;  %vm3982_vm2 = vcmp.ne.s16.totalorder %v890_v23, 0  ;;  %v1093_v4 = vld [vmem:[#allocation2 + $0x28] sm:$0xf]  ;;  %v1311_v21 = vld [vmem:[#allocation2 + $0x1c] sm:$0xf] }
 0x3f5   : > { %vm893_vm15 = vcmp.ne.s16.totalorder %v3973_v27, 0  ;;  %v960_v34 = vld [vmem:[#allocation2 + $0x38] sm:$0xf]  ;;  %v959_v35 = vld [vmem:[#allocation2 + $0x30] sm:$0xff]  ;;  %v1108_v6 = vsel %vm3938_vm11, %v1093_v4, 0 }
 0x3f6   : > { %v1095_v36 = vld [vmem:[#allocation2 + $0x38] sm:$0xf]  ;;  %v1109_v40 = vsel %vm1101_vm10, %v959_v35, 0  ;;  %v1037_v59 = vsel %vm1029_vm12, %v959_v35, 0  ;;  %v901_v52 = vsel %vm893_vm15, %v959_v35, 0 }
 0x3f7   : > { %v1110_v37 = vsel %vm3938_vm11, %v1095_v36, 0  ;;  %v1017_v41 = vld [vmem:[#allocation2 + $0x38] sm:$0xf]  ;;  %v1015_v10 = vld [vmem:[#allocation2 + $0x28] sm:$0xf] }
 0x3f8   : > { %v954_v19 = vld [vmem:[#allocation2 + $0x8] sm:$0xf]  ;;  %v953_v20 = vld [vmem:[#allocation2] sm:$0xff]  ;;  %v1038_v56 = vsel %vm3953_vm13, %v1017_v41, 0  ;;  %v881_v61 = vld [vmem:[#allocation2 + $0x38] sm:$0xf] }
 0x3f9   : > { %v956_v7 = vld [vmem:[#allocation2 + $0x18] sm:$0xf]  ;;  %v3932_v8 = vld [vmem:[#allocation2 + $0x10] sm:$0xff]  ;;  %v1089_v22 = vld [vmem:[#allocation2 + $0x8] sm:$0xf]  ;;  %v1103_v25 = vsel %vm1101_vm10, %v953_v20, 0 }
 0x3fa   : > { %975 = vrot.lane.b32.xlu0 %v956_v7, %s3618_s17  ;;  %973 = vrot.lane.b32.xlu1 %v3932_v8, %s3618_s17  ;;  %v1091_v9 = vld [vmem:[#allocation2 + $0x18] sm:$0xf]  ;;  %v1105_v13 = vsel %vm1101_vm10, %v3932_v8, 0  ;;  %v1033_v18 = vsel %vm1029_vm12, %v3932_v8, 0  ;;  %v1104_v24 = vsel %vm3938_vm11, %v1089_v22, 0  ;;  %v1031_v29 = vsel %vm1029_vm12, %v953_v20, 0 }
 0x3fb   : > { %v1106_v12 = vsel %vm3938_vm11, %v1091_v9, 0  ;;  %v1013_v14 = vld [vmem:[#allocation2 + $0x18] sm:$0xf]  ;;  %v1011_v26 = vld [vmem:[#allocation2 + $0x8] sm:$0xf]  ;;  %v895_v33 = vsel %vm893_vm15, %v953_v20, 0 }
 0x3fc   : > { %v1034_v16 = vsel %vm3953_vm13, %v1013_v14, 0  ;;  %v1032_v28 = vsel %vm3953_vm13, %v1011_v26, 0  ;;  %v875_v30 = vld [vmem:[#allocation2 + $0x8] sm:$0xf]  ;;  %v902_v45 = vsel %vm3982_vm2, %v881_v61, 0  ;;  %v1107_v7 = vsel %vm1101_vm10, %v957_v3, 0 }
 0x3fd   : > { %v896_v32 = vsel %vm3982_vm2, %v875_v30, 0  ;;  %v877_v9 = vld [vmem:[#allocation2 + $0x18] sm:$0xf]  ;;  %v1313_v14 = vld [vmem:[#allocation2 + $0x2c] sm:$0xf]  ;;  %v1177_v30 = vpop.permute.xlu1 %1176  ;;  %vm937_vm11 = vcmask 138240  }
 0x3fe   : > { %1125 = vrot.lane.b32.xlu0 %v1106_v12, %s3612_s24  ;;  %1123 = vrot.lane.b32.xlu1 %v1105_v13, %s3612_s24  ;;  %v898_v12 = vsel %vm3982_vm2, %v877_v9, 0  ;;  %v897_v13 = vsel %vm893_vm15, %v3932_v8, 0  ;;  %v1247_v8 = vpop.permute.xlu0 %1246  ;;  %v1243_v23 = vld [vmem:[#allocation2 + $0x2c] sm:$0xf]  ;;  %v1241_v36 = vld [vmem:[#allocation2 + $0x1c] sm:$0xf] }
 0x3ff   : > { %v1248_v22 = vrot.slane %v1247_v8, 4  ;;  %v1171_v9 = vld [vmem:[#allocation2 + $0x1c] sm:$0xf] }
 0x401   : > { %vm4036_vm4 = vcmp.ne.s16.totalorder %v1248_v22, 0  ;;  %v1249_v26 = vsel %vm1072_vm3, %v1248_v22, %v1247_v8  ;;  %v1370_v8 = vld [vmem:[#allocation2 + $0x2c] sm:$0xf] }
 0x402   : > { %1053 = vrot.lane.b32.xlu0 %v1034_v16, %s3616_s15  ;;  %1051 = vrot.lane.b32.xlu1 %v1033_v18, %s3616_s15  ;;  %v1036_v16 = vsel %vm3953_vm13, %v1015_v10, 0  ;;  %v1035_v18 = vsel %vm1029_vm12, %v957_v3, 0  ;;  %vm1250_vm5 = vcmp.ne.s16.totalorder %v1249_v26, 0  ;;  %v1255_v27 = vsel %vm4036_vm4, %v1241_v36, 0 }
 0x403   : > { %v1256_v10 = vsel %vm1250_vm5, %v3891_v51, 0 }
 0x406   : > { %971 = vrot.lane.b32.xlu0 %v954_v19, %s3618_s17  ;;  %969 = vrot.lane.b32.xlu1 %v953_v20, %s3618_s17  ;;  %v3493_v19 = vpack.i.bf16 %v1315_v5, %v1313_v14  ;;  %v1309_v20 = vld [vmem:[#allocation2 + $0xc] sm:$0xf] }
 0x407   : > { %v3498_v15 = vpack.i.bf16 %v1311_v21, %v1309_v20  ;;  %v1372_v20 = vld [vmem:[#allocation2 + $0x3c] sm:$0xf] }
 0x40a   : > { %1121 = vrot.lane.b32.xlu0 %v1104_v24, %s3612_s24  ;;  %1119 = vrot.lane.b32.xlu1 %v1103_v25, %s3612_s24  ;;  %v1245_v24 = vld [vmem:[#allocation2 + $0x3c] sm:$0xf]  ;;  %v879_v25 = vld [vmem:[#allocation2 + $0x28] sm:$0xf] }
 0x40e   : > { %1049 = vrot.lane.b32.xlu0 %v1032_v28, %s3616_s15  ;;  %1047 = vrot.lane.b32.xlu1 %v1031_v29, %s3616_s15  ;;  %v1257_v28 = vsel %vm4036_vm4, %v1243_v23, 0  ;;  %v1259_v29 = vsel %vm4036_vm4, %v1245_v24, 0 }
 0x412   : > { %913 = vrot.lane.b32.xlu0 %v896_v32, %s3617_s16  ;;  %911 = vrot.lane.b32.xlu1 %v895_v33, %s3617_s16  ;;  %v900_v32 = vsel %vm3982_vm2, %v879_v25, 0  ;;  %v899_v33 = vsel %vm893_vm15, %v957_v3, 0  ;;  %vm935_vm15 = vcmask 1043456   ;;  %vm994_vm2 = vcmask 130048  }
 0x416   : > { %983 = vrot.lane.b32.xlu0 %v960_v34, %s3618_s17  ;;  %981 = vrot.lane.b32.xlu1 %v959_v35, %s3618_s17  ;;  %v3503_v34 = vpack.i.bf16 %v1259_v29, %v1257_v28  ;;  %v1239_v35 = vld [vmem:[#allocation2 + $0xc] sm:$0xf]  ;;  %v1368_v29 = vld [vmem:[#allocation2 + $0x1c] sm:$0xf] }
 0x417   : > { %v1253_v31 = vsel %vm4036_vm4, %v1239_v35, 0  ;;  %v1366_v28 = vld [vmem:[#allocation2 + $0xc] sm:$0xf] }
 0x41a   : > { %1133 = vrot.lane.b32.xlu0 %v1110_v37, %s3612_s24  ;;  %1131 = vrot.lane.b32.xlu1 %v1109_v40, %s3612_s24  ;;  %v1178_v37 = vrot.slane %v1177_v30, 4  ;;  %v1258_v40 = vsel %vm1250_vm5, %v3904_v53, 0 }
 0x41c   : > { %v1179_v41 = vsel %vm1144_vm6, %v1178_v37, %v1177_v30  ;;  %vm4063_vm10 = vcmp.ne.s16.totalorder %v1178_v37, 0 }
 0x41d   : > { %vm1180_vm7 = vcmp.ne.s16.totalorder %v1179_v41, 0  ;;  %v1185_v5 = vsel %vm4063_vm10, %v1171_v9, 0 }
 0x41e   : > { %1061 = vrot.lane.b32.xlu0 %v1038_v56, %s3616_s15  ;;  %1059 = vrot.lane.b32.xlu1 %v1037_v59, %s3616_s15  ;;  %v3508_v56 = vpack.i.bf16 %v1255_v27, %v1253_v31  ;;  %v1252_v59 = vsel %vm1250_vm5, %v3919_v63, 0  ;;  %v1182_v21 = vsel %vm1180_vm7, %v3919_v63, 0  ;;  %v1186_v23 = vsel %vm1180_vm7, %v3891_v51, 0 }
 0x41f   : > { %v1184_v24 = vsel %vm1180_vm7, %v3925_v1, 0 }
 0x422   : > { %925 = vrot.lane.b32.xlu0 %v902_v45, %s3617_s16  ;;  %923 = vrot.lane.b32.xlu1 %v901_v52, %s3617_s16  ;;  %v1173_v45 = vld [vmem:[#allocation2 + $0x2c] sm:$0xf]  ;;  %v1175_v52 = vld [vmem:[#allocation2 + $0x3c] sm:$0xf] }
 0x423   : > { %v1187_v4 = vsel %vm4063_vm10, %v1173_v45, 0 }
 0x426   : > { %979 = vrot.lane.b32.xlu0 %v958_v2, %s3618_s17  ;;  %977 = vrot.lane.b32.xlu1 %v957_v3, %s3618_s17  ;;  %v1188_v2 = vsel %vm1180_vm7, %v3904_v53, 0  ;;  %v1254_v3 = vsel %vm1250_vm5, %v3925_v1, 0 }
 0x42a   : > { %1129 = vrot.lane.b32.xlu0 %v1108_v6, %s3612_s24  ;;  %1127 = vrot.lane.b32.xlu1 %v1107_v7, %s3612_s24  ;;  %v1189_v6 = vsel %vm4063_vm10, %v1175_v52, 0  ;;  %v1169_v7 = vld [vmem:[#allocation2 + $0xc] sm:$0xf] }
 0x42b   : > { %v1183_v14 = vsel %vm4063_vm10, %v1169_v7, 0 }
 0x42e   : > { %917 = vrot.lane.b32.xlu0 %v898_v12, %s3617_s16  ;;  %915 = vrot.lane.b32.xlu1 %v897_v13, %s3617_s16  ;;  %v1374_v12 = vpop.permute.xlu0 %1373  ;;  %v3513_v13 = vpack.i.bf16 %v1189_v6, %v1187_v4 }
 0x432   : > { %1057 = vrot.lane.b32.xlu0 %v1036_v16, %s3616_s15  ;;  %1055 = vrot.lane.b32.xlu1 %v1035_v18, %s3616_s15  ;;  %v1375_v16 = vrot.slane %v1374_v12, 4  ;;  %s4917_s15 = scalar_lea.vmem %s5024_s12, %s3336_s23 }
 0x434   : > { %vm4087_vm12 = vcmp.ne.s16.totalorder %v1375_v16, 0  ;;  %v1376_v22 = vsel %vm937_vm11, %v1375_v16, %v1374_v12 }
 0x435   : > { %v1386_v11 = vsel %vm4087_vm12, %v1372_v20, 0  ;;  %vm1377_vm13 = vcmp.ne.s16.totalorder %v1376_v22, 0 }
 0x436   : > { %3494 = vrot.lane.b32.xlu0 %v3493_v19, %s3619_s18  ;;  %1332 = vrot.lane.b32.xlu1 %v3891_v51, %s3619_s18  ;;  %v3518_v19 = vpack.i.bf16 %v1185_v5, %v1183_v14  ;;  %v1385_v26 = vsel %vm1377_vm13, %v3904_v53, 0  ;;  %v1383_v30 = vsel %vm1377_vm13, %v3891_v51, 0  ;;  %v1381_v51 = vsel %vm1377_vm13, %v3925_v1, 0 }
 0x43a   : > { %1324 = vrot.lane.b32.xlu0 %v3919_v63, %s3619_s18  ;;  %1336 = vrot.lane.b32.xlu1 %v3904_v53, %s3619_s18  ;;  %v3537_v53 = vld [vmem:[%s5014_s2 + $0x4] ss:$12 sps:$4 sm:$0xff]  }
 0x43b   : > { %1727 = vmatprep.mubr.bf16.mxu1 %v3537_v53 }
 0x43e   : > { %1328 = vrot.lane.b32.xlu0 %v3925_v1, %s3619_s18  ;;  %3499 = vrot.lane.b32.xlu1 %v3498_v15, %s3619_s18  ;;  %v1384_v15 = vsel %vm4087_vm12, %v1370_v8, 0 }
 0x43f   : > { %v3523_v25 = vpack.i.bf16 %v1386_v11, %v1384_v15 }
 0x442   : > { %921 = vrot.lane.b32.xlu0 %v900_v32, %s3617_s16  ;;  %919 = vrot.lane.b32.xlu1 %v899_v33, %s3617_s16  ;;  %v1379_v32 = vsel %vm1377_vm13, %v3919_v63, 0  ;;  %v1380_v33 = vsel %vm4087_vm12, %v1366_v28, 0 }
 0x446   : > { %3504 = vrot.lane.b32.xlu0 %v3503_v34, %s3614_s13  ;;  %1280 = vrot.lane.b32.xlu1 %v1258_v40, %s3614_s13  ;;  %v1382_v34 = vsel %vm4087_vm12, %v1368_v29, 0 }
 0x447   : > { %v3528_v35 = vpack.i.bf16 %v1382_v34, %v1380_v33 }
 0x44a   : > { %3509 = vrot.lane.b32.xlu1 %v3508_v56, %s3614_s13  ;;  %1268 = vrot.lane.b32.xlu0 %v1252_v59, %s3614_s13 }
 0x44e   : > { %1210 = vrot.lane.b32.xlu1 %v1188_v2, %s3613_s25  ;;  %1272 = vrot.lane.b32.xlu0 %v1254_v3, %s3614_s13 }
 0x452   : > { %1276 = vrot.lane.b32.xlu1 %v1256_v10, %s3614_s13  ;;  %3514 = vrot.lane.b32.xlu0 %v3513_v13, %s3613_s25 }
 0x456   : > { %3519 = vrot.lane.b32.xlu1 %v3518_v19, %s3613_s25  ;;  %1198 = vrot.lane.b32.xlu0 %v1182_v21, %s3613_s25 }
 0x45a   : > { %1206 = vrot.lane.b32.xlu1 %v1186_v23, %s3613_s25  ;;  %1202 = vrot.lane.b32.xlu0 %v1184_v24, %s3613_s25 }
 0x45e   : > { %3524 = vrot.lane.b32.xlu0 %v3523_v25, %s3615_s14  ;;  %1407 = vrot.lane.b32.xlu1 %v1385_v26, %s3615_s14 }
 0x462   : > { %1403 = vrot.lane.b32.xlu1 %v1383_v30, %s3615_s14  ;;  %1395 = vrot.lane.b32.xlu0 %v1379_v32, %s3615_s14 }
 0x466   : > { %3529 = vrot.lane.b32.xlu1 %v3528_v35, %s3615_s14  ;;  %1399 = vrot.lane.b32.xlu0 %v1381_v51, %s3615_s14 }
 0x46c   : > { %v4127_v63 = vpop.permute.xlu1 %973  ;;  %v4129_v36 = vpop.permute.xlu0 %975 }
 0x470   : > { %v1124_v37 = vpop.permute.xlu1 %1123  ;;  %v1126_v40 = vpop.permute.xlu0 %1125 }
 0x471   : > { %v1137_v20 = vrot.slane %v1124_v37, 4  ;;  %v1138_v21 = vrot.slane %v1126_v40, 4 }
 0x473   : > { %v1146_v26 = vsel %vm935_vm15, %v1137_v20, %v1138_v21 }
 0x474   : > { %v4131_v31 = vpop.permute.xlu1 %1051  ;;  %v4133_v27 = vpop.permute.xlu0 %1053 }
 0x478   : > { %v4135_v41 = vpop.permute.xlu1 %969  ;;  %v4137_v56 = vpop.permute.xlu0 %971 }
 0x47c   : > { %v1120_v59 = vpop.permute.xlu1 %1119  ;;  %v1122_v1 = vpop.permute.xlu0 %1121 }
 0x47d   : > { %v1135_v16 = vrot.slane %v1120_v59, 4  ;;  %v1136_v18 = vrot.slane %v1122_v1, 4 }
 0x47f   : > { %v1143_v11 = vsel %vm935_vm15, %v1135_v16, %v1136_v18  ;;  %v1147_v16 = vsel %vm1144_vm6, %v1124_v37, %v1146_v26  ;;  %v1065_v18 = vrot.slane %v4131_v31, 4 }
 0x480   : > { %v4139_v61 = vpop.permute.xlu1 %1047  ;;  %v1050_v45 = vpop.permute.xlu0 %1049  ;;  %v1145_v34 = vsel %vm1144_vm6, %v1120_v59, %v1143_v11 }
 0x481   : > { %v1063_v1 = vrot.slane %v4139_v61, 4  ;;  %v3288_v37 = vcombine.low %v1145_v34, %v1147_v16 }
 0x484   : > { %v4141_v52 = vpop.permute.xlu1 %911  ;;  %v4143_v2 = vpop.permute.xlu0 %913 }
 0x488   : > { %v4145_v3 = vpop.permute.xlu1 %981  ;;  %v4147_v4 = vpop.permute.xlu0 %983 }
 0x48c   : > { %v1132_v6 = vpop.permute.xlu1 %1131  ;;  %v1134_v7 = vpop.permute.xlu0 %1133 }
 0x48d   : > { %v1141_v19 = vrot.slane %v1132_v6, 4  ;;  %v1142_v8 = vrot.slane %v1134_v7, 4  ;;  %v1064_v7 = vrot.slane %v1050_v45, 4 }
 0x48f   : > { %v1150_v23 = vsel %vm935_vm15, %v1141_v19, %v1142_v8  ;;  %v1066_v19 = vrot.slane %v4133_v27, 4  ;;  %v3289_v8 = vcombine.high %v1145_v34, %v1147_v16 }
 0x490   : > { %v1060_v9 = vpop.permute.xlu1 %1059  ;;  %v1062_v12 = vpop.permute.xlu0 %1061  ;;  %v1151_v33 = vsel %vm1144_vm6, %v1132_v6, %v1150_v23  ;;  %v991_v23 = vrot.slane %v4145_v3, 4 }
 0x491   : > { %v1069_v53 = vrot.slane %v1060_v9, 4  ;;  %v1070_v35 = vrot.slane %v1062_v12, 4  ;;  %v1074_v11 = vsel %vm935_vm15, %v1065_v18, %v1066_v19 }
 0x493   : > { %v1078_v59 = vsel %vm935_vm15, %v1069_v53, %v1070_v35 }
 0x494   : > { %v4149_v13 = vpop.permute.xlu1 %923  ;;  %v4151_v10 = vpop.permute.xlu0 %925 }
 0x498   : > { %v4153_v14 = vpop.permute.xlu1 %977  ;;  %v980_v5 = vpop.permute.xlu0 %979 }
 0x499   : > { %v989_v45 = vrot.slane %v4153_v14, 4 }
 0x49c   : > { %v1128_v22 = vpop.permute.xlu1 %1127  ;;  %v1130_v15 = vpop.permute.xlu0 %1129 }
 0x49d   : > { %v1139_v24 = vrot.slane %v1128_v22, 4  ;;  %v1140_v25 = vrot.slane %v1130_v15, 4  ;;  %v990_v15 = vrot.slane %v980_v5, 4  ;;  %v986_v5 = vrot.slane %v4137_v56, 4 }
 0x49f   : > { %v1148_v28 = vsel %vm935_vm15, %v1139_v24, %v1140_v25  ;;  %v992_v24 = vrot.slane %v4147_v4, 4  ;;  %v998_v35 = vsel %vm935_vm15, %v989_v45, %v990_v15  ;;  %v987_v4 = vrot.slane %v4127_v63, 4 }
 0x4a0   : > { %v4159_v29 = vpop.permute.xlu1 %915  ;;  %v4161_v30 = vpop.permute.xlu0 %917  ;;  %v1149_v32 = vsel %vm1144_vm6, %v1128_v22, %v1148_v28  ;;  %v1071_v22 = vsel %vm935_vm15, %v1063_v1, %v1064_v7  ;;  %v1075_v1 = vsel %vm1072_vm3, %v4131_v31, %v1074_v11  ;;  %v999_v18 = vsel %vm994_vm2, %v4153_v14, %v998_v35 }
 0x4a1   : > { %v3290_v51 = vcombine.low %v1149_v32, %v1151_v33  ;;  %v3291_v40 = vcombine.high %v1149_v32, %v1151_v33  ;;  %v1079_v32 = vsel %vm1072_vm3, %v1060_v9, %v1078_v59  ;;  %v985_v33 = vrot.slane %v4135_v41, 4 }
 0x4a2   : > { %v1073_v53 = vsel %vm1072_vm3, %v4139_v61, %v1071_v22  ;;  %v1000_v9 = vsel %vm935_vm15, %v991_v23, %v992_v24  ;;  %v933_v14 = vrot.slane %v4149_v13, 4  ;;  %v934_v22 = vrot.slane %v4151_v10, 4 }
 0x4a3   : > { %1695 = vmatprep.subr.bf16.mxu1 %v3291_v40  ;;  %v988_v40 = vrot.slane %v4129_v36, 4  ;;  %v3285_v16 = vcombine.high %v1073_v53, %v1075_v1  ;;  %v993_v61 = vsel %vm935_vm15, %v985_v33, %v986_v5  ;;  %v3284_v19 = vcombine.low %v1073_v53, %v1075_v1 }
 0x4a4   : > { %v1056_v20 = vpop.permute.xlu1 %1055  ;;  %1696 = vmatpush1.bf16.msra.mxu1 %v3290_v51  ;;  %v1058_v6 = vpop.permute.xlu0 %1057  ;;  %v1001_v31 = vsel %vm994_vm2, %v4145_v3, %v1000_v9  ;;  %v929_v45 = vrot.slane %v4159_v29, 4  ;;  %v930_v15 = vrot.slane %v4161_v30, 4 }
 0x4a5   : > { %v1067_v21 = vrot.slane %v1056_v20, 4  ;;  %v1068_v12 = vrot.slane %v1058_v6, 4  ;;  %1697 = vmatprep.subr.bf16.mxu1 %v3289_v8  ;;  %v996_v36 = vsel %vm935_vm15, %v987_v4, %v988_v40  ;;  %v927_v8 = vrot.slane %v4141_v52, 4 }
 0x4a6   : > { %v939_v10 = vsel %vm935_vm15, %v929_v45, %v930_v15 }
 0x4a7   : > { %v1076_v27 = vsel %vm935_vm15, %v1067_v21, %v1068_v12  ;;  %v3283_v21 = vcombine.high %v999_v18, %v1001_v31  ;;  %v995_v12 = vsel %vm994_vm2, %v4135_v41, %v993_v61  ;;  %v940_v9 = vsel %vm937_vm11, %v4159_v29, %v939_v10 }
 0x4a8   : > { %v4177_v25 = vpop.permute.xlu1 %1332  ;;  %1698 = vmatpush1.bf16.msra.mxu1 %v3288_v37  ;;  %v3495_v26 = vpop.permute.xlu0 %3494  ;;  %v1077_v28 = vsel %vm1072_vm3, %v1056_v20, %v1076_v27  ;;  %v928_v20 = vrot.slane %v4143_v2, 4  ;;  %v3282_v37 = vcombine.low %v999_v18, %v1001_v31  ;;  %v997_v2 = vsel %vm994_vm2, %v4127_v63, %v996_v36 }
 0x4a9   : > { %v3286_v34 = vcombine.low %v1077_v28, %v1079_v32  ;;  %v3287_v51 = vcombine.high %v1077_v28, %v1079_v32  ;;  %v3497_v3 = vunpack.i.h.bf16 %v3495_v26  ;;  %v3496_v27 = vunpack.i.l.bf16 %v3495_v26 }
 0x4aa   : > { %v936_v11 = vsel %vm935_vm15, %v927_v8, %v928_v20  ;;  %v3281_v24 = vcombine.high %v995_v12, %v997_v2  ;;  %v943_v28 = vsel %vm935_vm15, %v933_v14, %v934_v22  ;;  %v3280_v35 = vcombine.low %v995_v12, %v997_v2 }
 0x4ab   : > { %1699 = vmatprep.subr.bf16.mxu1 %v3287_v51  ;;  %v1347_v33 = vrot.slane %v3497_v3, 4  ;;  %v1345_v26 = vrot.slane %v3496_v27, 4  ;;  %v944_v1 = vsel %vm937_vm11, %v4149_v13, %v943_v28  ;;  %v938_v18 = vsel %vm937_vm11, %v4141_v52, %v936_v11 }
 0x4ac   : > { %v4191_v7 = vpop.permute.xlu1 %1336  ;;  %v4193_v56 = vpop.permute.xlu0 %1324  ;;  %1700 = vmatpush1.bf16.msra.mxu1 %v3286_v34  ;;  %vm1349_vm3 = vcmask 916480   ;;  %v3277_v20 = vcombine.high %v938_v18, %v940_v9 }
 0x4ad   : > { %1701 = vmatprep.subr.bf16.mxu1 %v3285_v16  ;;  %v1346_v5 = vrot.slane %v4191_v7, 4  ;;  %v1344_v16 = vrot.slane %v4177_v25, 4  ;;  %v1340_v13 = vrot.slane %v4193_v56, 4 }
 0x4af   : > { %v1355_v36 = vsel %vm935_vm15, %v1346_v5, %v1347_v33 }
 0x4b0   : > { %v3500_v6 = vpop.permute.xlu1 %3499  ;;  %v4203_v59 = vpop.permute.xlu0 %1328  ;;  %1702 = vmatpush1.bf16.msra.mxu1 %v3284_v19  ;;  %v1356_v52 = vsel %vm1349_vm3, %v4191_v7, %v1355_v36 }
 0x4b1   : > { %1703 = vmatprep.subr.bf16.mxu1 %v3283_v21  ;;  %v3502_v34 = vunpack.i.h.bf16 %v3500_v6  ;;  %v3501_v53 = vunpack.i.l.bf16 %v3500_v6  ;;  %v1353_v6 = vsel %vm935_vm15, %v1344_v16, %v1345_v26  ;;  %v1342_v29 = vrot.slane %v4203_v59, 4 }
 0x4b2   : > { %v1354_v15 = vsel %vm1349_vm3, %v4177_v25, %v1353_v6 }
 0x4b3   : > { %v1343_v19 = vrot.slane %v3502_v34, 4  ;;  %v1341_v31 = vrot.slane %v3501_v53, 4 }
 0x4b4   : > { %v920_v23 = vpop.permute.xlu1 %919  ;;  %v922_v41 = vpop.permute.xlu0 %921  ;;  %1704 = vmatpush1.bf16.msra.mxu1 %v3282_v37  ;;  %v3276_v37 = vcombine.low %v938_v18, %v940_v9 }
 0x4b5   : > { %v931_v32 = vrot.slane %v920_v23, 4  ;;  %v932_v30 = vrot.slane %v922_v41, 4  ;;  %1705 = vmatprep.subr.bf16.mxu1 %v3281_v24  ;;  %v1348_v22 = vsel %vm935_vm15, %v1340_v13, %v1341_v31  ;;  %v1351_v45 = vsel %vm935_vm15, %v1342_v29, %v1343_v19 }
 0x4b6   : > { %v3307_v41 = vcombine.high %v1354_v15, %v1356_v52  ;;  %v1350_v24 = vsel %vm1349_vm3, %v4193_v56, %v1348_v22  ;;  %v1352_v7 = vsel %vm1349_vm3, %v4203_v59, %v1351_v45 }
 0x4b7   : > { %v941_v63 = vsel %vm935_vm15, %v931_v32, %v932_v30  ;;  %v3306_v30 = vcombine.low %v1354_v15, %v1356_v52 }
 0x4b8   : > { %v1281_v51 = vpop.permute.xlu1 %1280  ;;  %v3505_v4 = vpop.permute.xlu0 %3504  ;;  %v942_v40 = vsel %vm937_vm11, %v920_v23, %v941_v63  ;;  %1706 = vmatpush1.bf16.msra.mxu1 %v3280_v35  ;;  %v3305_v63 = vcombine.high %v1350_v24, %v1352_v7 }
 0x4b9   : > { %v3278_v61 = vcombine.low %v942_v40, %v944_v1  ;;  %v3279_v8 = vcombine.high %v942_v40, %v944_v1  ;;  %v3507_v21 = vunpack.i.h.bf16 %v3505_v4  ;;  %v3506_v28 = vunpack.i.l.bf16 %v3505_v4 }
 0x4ba   : > { %v1290_v32 = vrot.slane %v1281_v51, 4  ;;  %v3304_v4 = vcombine.low %v1350_v24, %v1352_v7 }
 0x4bb   : > { %1707 = vmatprep.subr.bf16.mxu1 %v3279_v8  ;;  %v1291_v2 = vrot.slane %v3507_v21, 4  ;;  %v1289_v35 = vrot.slane %v3506_v28, 4 }
 0x4bc   : > { %v3510_v12 = vpop.permute.xlu1 %3509  ;;  %v1269_v14 = vpop.permute.xlu0 %1268  ;;  %1708 = vmatpush1.bf16.msra.mxu1 %v3278_v61 }
 0x4bd   : > { %1709 = vmatprep.subr.bf16.mxu1 %v3277_v20  ;;  %v3512_v3 = vunpack.i.h.bf16 %v3510_v12  ;;  %v3511_v11 = vunpack.i.l.bf16 %v3510_v12  ;;  %v1298_v34 = vsel %vm935_vm15, %v1290_v32, %v1291_v2  ;;  %v1284_v59 = vrot.slane %v1269_v14, 4 }
 0x4be   : > { %v1299_v9 = vsel %vm1027_vm9, %v1281_v51, %v1298_v34 }
 0x4bf   : > { %v1287_v25 = vrot.slane %v3512_v3, 4  ;;  %v1285_v33 = vrot.slane %v3511_v11, 4 }
 0x4c0   : > { %v1211_v27 = vpop.permute.xlu1 %1210  ;;  %v1273_v23 = vpop.permute.xlu0 %1272  ;;  %1710 = vmatpush1.bf16.msra.mxu1 %v3276_v37 }
 0x4c1   : > { %v1286_v10 = vrot.slane %v1273_v23, 4  ;;  %1711 = vmatprep.subr.bf16.mxu1 %v3307_v41  ;;  %v1292_v16 = vsel %vm935_vm15, %v1284_v59, %v1285_v33  ;;  %v1220_v12 = vrot.slane %v1211_v27, 4 }
 0x4c2   : > { %v1293_v21 = vsel %vm1027_vm9, %v1269_v14, %v1292_v16 }
 0x4c3   : > { %v1294_v26 = vsel %vm935_vm15, %v1286_v10, %v1287_v25 }
 0x4c4   : > { %v1277_v5 = vpop.permute.xlu1 %1276  ;;  %v3515_v53 = vpop.permute.xlu0 %3514  ;;  %1712 = vmatpush2.bf16.msra.mxu1 %v3306_v30  ;;  %v1295_v61 = vsel %vm1027_vm9, %v1273_v23, %v1294_v26 }
 0x4c5   : > { %v1288_v56 = vrot.slane %v1277_v5, 4  ;;  %v3517_v40 = vunpack.i.h.bf16 %v3515_v53  ;;  %1713 = vmatprep.subr.bf16.mxu1 %v3305_v63  ;;  %v3516_v36 = vunpack.i.l.bf16 %v3515_v53  ;;  %v3301_v15 = vcombine.high %v1293_v21, %v1295_v61 }
 0x4c6   : > { %v3300_v41 = vcombine.low %v1293_v21, %v1295_v61 }
 0x4c7   : > { %v1296_v1 = vsel %vm935_vm15, %v1288_v56, %v1289_v35  ;;  %v1221_v20 = vrot.slane %v3517_v40, 4  ;;  %v1219_v52 = vrot.slane %v3516_v36, 4 }
 0x4c8   : > { %v1297_v18 = vsel %vm1027_vm9, %v1277_v5, %v1296_v1  ;;  %v3520_v19 = vpop.permute.xlu1 %3519  ;;  %v1199_v31 = vpop.permute.xlu0 %1198  ;;  %1714 = vmatpush2.bf16.msra.mxu1 %v3304_v4 }
 0x4c9   : > { %v3302_v8 = vcombine.low %v1297_v18, %v1299_v9  ;;  %v3522_v6 = vunpack.i.h.bf16 %v3520_v19  ;;  %v3521_v13 = vunpack.i.l.bf16 %v3520_v19  ;;  %v3303_v29 = vcombine.high %v1297_v18, %v1299_v9 }
 0x4ca   : > { %v1228_v2 = vsel %vm935_vm15, %v1220_v12, %v1221_v20  ;;  %v1214_v23 = vrot.slane %v1199_v31, 4 }
 0x4cb   : > { %v1215_v51 = vrot.slane %v3521_v13, 4  ;;  %1715 = vmatprep.subr.bf16.mxu1 %v3303_v29  ;;  %v1217_v3 = vrot.slane %v3522_v6, 4  ;;  %v1229_v10 = vsel %vm1099_vm8, %v1211_v27, %v1228_v2  ;;  %v3600_v13 = vpack.c.bf16 %v807_v46, %v805_v42 }
 0x4cc   : > { %v1207_v22 = vpop.permute.xlu1 %1206  ;;  %v1203_v45 = vpop.permute.xlu0 %1202  ;;  %1716 = vmatpush2.bf16.msra.mxu1 %v3302_v8  ;;  %v3602_v46 = vpack.c.bf16 %v803_v60, %v801_v54  ;;  %v3542_v54 = vld [vmem:[%s5014_s2 + $0x20] ss:$12 sps:$4 sm:$0xff]  }
 0x4cd   : > { %v1218_v37 = vrot.slane %v1207_v22, 4  ;;  %v1216_v11 = vrot.slane %v1203_v45, 4  ;;  %1717 = vmatprep.subr.bf16.mxu1 %v3301_v15  ;;  %v1222_v7 = vsel %vm935_vm15, %v1214_v23, %v1215_v51 }
 0x4ce   : > { %v1223_v63 = vsel %vm1099_vm8, %v1199_v31, %v1222_v7  ;;  %v3599_v31 = vpack.c.bf16 %v808_v47, %v806_v43 }
 0x4cf   : > { %v1226_v24 = vsel %vm935_vm15, %v1218_v37, %v1219_v52  ;;  %v1224_v14 = vsel %vm935_vm15, %v1216_v11, %v1217_v3 }
 0x4d0   : > { %v1227_v28 = vsel %vm1099_vm8, %v1207_v22, %v1226_v24  ;;  %v1408_v32 = vpop.permute.xlu1 %1407  ;;  %v3525_v30 = vpop.permute.xlu0 %3524  ;;  %v1225_v33 = vsel %vm1099_vm8, %v1203_v45, %v1224_v14  ;;  %1718 = vmatpush2.bf16.msra.mxu1 %v3300_v41 }
 0x4d1   : > { %v3298_v25 = vcombine.low %v1227_v28, %v1229_v10  ;;  %v3527_v5 = vunpack.i.h.bf16 %v3525_v30  ;;  %v3526_v34 = vunpack.i.l.bf16 %v3525_v30  ;;  %v3299_v53 = vcombine.high %v1227_v28, %v1229_v10 }
 0x4d2   : > { %v1417_v35 = vrot.slane %v1408_v32, 4  ;;  %v3297_v4 = vcombine.high %v1223_v63, %v1225_v33  ;;  %v3296_v9 = vcombine.low %v1223_v63, %v1225_v33 }
 0x4d3   : > { %v1418_v26 = vrot.slane %v3527_v5, 4  ;;  %v1416_v56 = vrot.slane %v3526_v34, 4  ;;  %1719 = vmatprep.subr.bf16.mxu1 %v3299_v53 }
 0x4d4   : > { %v1404_v40 = vpop.permute.xlu1 %1403  ;;  %v1396_v59 = vpop.permute.xlu0 %1395  ;;  %1720 = vmatpush2.bf16.msra.mxu1 %v3298_v25 }
 0x4d5   : > { %v1415_v1 = vrot.slane %v1404_v40, 4  ;;  %v1425_v27 = vsel %vm935_vm15, %v1417_v35, %v1418_v26  ;;  %1721 = vmatprep.subr.bf16.mxu1 %v3297_v4  ;;  %v1411_v21 = vrot.slane %v1396_v59, 4 }
 0x4d6   : > { %v1426_v18 = vsel %vm891_vm14, %v1408_v32, %v1425_v27 }
 0x4d7   : > { %v1423_v16 = vsel %vm935_vm15, %v1415_v1, %v1416_v56 }
 0x4d8   : > { %v1424_v61 = vsel %vm891_vm14, %v1404_v40, %v1423_v16  ;;  %v3530_v36 = vpop.permute.xlu1 %3529  ;;  %v1400_v19 = vpop.permute.xlu0 %1399  ;;  %1722 = vmatpush2.bf16.msra.mxu1 %v3296_v9 }
 0x4d9   : > { %v3310_v8 = vcombine.low %v1424_v61, %v1426_v18  ;;  %v3532_v20 = vunpack.i.h.bf16 %v3530_v36  ;;  %v3531_v6 = vunpack.i.l.bf16 %v3530_v36  ;;  %1723 = vmatprep.subr.bf16.mxu1 %v3599_v31  ;;  %v3311_v29 = vcombine.high %v1424_v61, %v1426_v18 }
 0x4da   : > { %v1413_v51 = vrot.slane %v1400_v19, 4 }
 0x4db   : > { %v1414_v12 = vrot.slane %v3532_v20, 4  ;;  %v1412_v52 = vrot.slane %v3531_v6, 4  ;;  %1760 = vmatprep.subr.bf16.mxu0 %v3311_v29 }
 0x4dc   : > { %1724 = vmatpush2.bf16.msra.mxu1 %v3600_v13  ;;  %1761 = vmatpush1.bf16.msra.mxu0 %v3310_v8  ;;  %v1801_v8 = vld [vmem:[%s5016_s4] sm:$0xff] }
 0x4dd   : > { %v1419_v43 = vsel %vm935_vm15, %v1411_v21, %v1412_v52  ;;  %v1421_v55 = vsel %vm935_vm15, %v1413_v51, %v1414_v12  ;;  %1725 = vmatprep.subr.bf16.mxu1 %v3601_v39 }
 0x4de   : > { %v1420_v38 = vsel %vm891_vm14, %v1396_v59, %v1419_v43  ;;  %v1422_v42 = vsel %vm891_vm14, %v1400_v19, %v1421_v55 }
 0x4df   : > { %v3308_v44 = vcombine.low %v1420_v38, %v1422_v42  ;;  %v3309_v47 = vcombine.high %v1420_v38, %v1422_v42  ;;  %v1802_v42 = vld [vmem:[%s5016_s4 + $0x8] sm:$0xff] }
 0x4e0   : > { %1726 = vmatpush2.bf16.msra.mxu1 %v3602_v46  ;;  %v1804_v46 = vld [vmem:[%s5016_s4 + $0x18] sm:$0xff] }
 0x4e1   : > { %1762 = vmatprep.subr.bf16.mxu0 %v3309_v47 }
 0x4e2   : > { %1763 = vmatpush1.bf16.msra.mxu0 %v3308_v44  ;;  %v1803_v44 = vld [vmem:[%s5016_s4 + $0x10] sm:$0xff] }
 0x4e3   : > { %1728 = vmatmul.mubr.bf16.vlgmr.msra.gmra.mxu1 %v3535_v49 }
 0x4e4   : > { %1737 = vmatprep.mubr.bf16.mxu1 %v3539_v58 }
 0x4e5   : > { %3312 = vmatmul.mubr.msk.bf16.vlgmr.msra.gmra.mxu0 %vm587_vm0, %v3538_v57 }
 0x4e6   : > { %1790 = vmatprep.mubr.bf16.mxu0 %v3611_v0 }
 0x4eb   : > { %1738 = vmatmul.mubr.bf16.gmra.mxu1 %v3541_v48 }
 0x4ed   : > { %3313 = vmatmul.mubr.msk.bf16.gmra.mxu0 %vm587_vm0, %v3542_v54 }
 0x4ee   : > { %3412 = vmatprep.mubr.msk.f32.mxu0 %vm587_vm0, %v1801_v8  ;;  %v1812_v8 = vld [vmem:[%s5021_s9 + $0x18] sm:$0xff] }
 0x5a3   : > { %v1729_v50 = vpop.f32.mrf.mxu1 }
 0x5a5   : > { %v1782_v60 = vpop.f32.mrf.mxu0  ;;  %v1731_v62 = vpop.f32.mrf.mxu1 }
 0x5a6   : > { %v4328_v9 = vadd.f32 %v1782_v60, %v1729_v50 }
 0x5a7   : > { %v1784_v22 = vpop.f32.mrf.mxu0  ;;  %v1733_v45 = vpop.f32.mrf.mxu1 }
 0x5a8   : > { %v4322_v59 = vadd.f32 %v1784_v22, %v1731_v62  ;;  %v1825_v19 = vmul.f32 %v4328_v9, %v4328_v9 }
 0x5a9   : > { %v1786_v15 = vpop.f32.mrf.mxu0  ;;  %v1735_v3 = vpop.f32.mrf.mxu1 }
 0x5aa   : > { %v4318_v56 = vadd.f32 %v1786_v15, %v1733_v45  ;;  %v1813_v18 = vadd.f32 %v4322_v59, %v4328_v9  ;;  %v1826_v36 = vmul.f32 %v4322_v59, %v4322_v59 }
 0x5ab   : > { %v1788_v37 = vpop.f32.mrf.mxu0  ;;  %v1739_v2 = vpop.f32.mrf.mxu1 }
 0x5ac   : > { %v4312_v53 = vadd.f32 %v1788_v37, %v1735_v3  ;;  %v1827_v16 = vmul.f32 %v4318_v56, %v4318_v56  ;;  %v1833_v31 = vadd.f32 %v1826_v36, %v1825_v19 }
 0x5ad   : > { %v1792_v11 = vpop.f32.mrf.mxu0  ;;  %v1741_v23 = vpop.f32.mrf.mxu1 }
 0x5ae   : > { %v4298_v24 = vadd.f32 %v1792_v11, %v1739_v2  ;;  %v1816_v1 = vadd.f32 %v4312_v53, %v4318_v56  ;;  %v1828_v27 = vmul.f32 %v4312_v53, %v4312_v53 }
 0x5af   : > { %v1794_v41 = vpop.f32.mrf.mxu0  ;;  %v1743_v14 = vpop.f32.mrf.mxu1 }
 0x5b0   : > { %v4300_v7 = vadd.f32 %v1794_v41, %v1741_v23  ;;  %v1829_v34 = vmul.f32 %v4298_v24, %v4298_v24  ;;  %v1836_v61 = vadd.f32 %v1828_v27, %v1827_v16 }
 0x5b1   : > { %v1796_v28 = vpop.f32.mrf.mxu0  ;;  %v1745_v30 = vpop.f32.mrf.mxu1 }
 0x5b2   : > { %v1819_v10 = vadd.f32 %v4300_v7, %v4298_v24  ;;  %v1830_v32 = vmul.f32 %v4300_v7, %v4300_v7  ;;  %v4306_v33 = vadd.f32 %v1796_v28, %v1743_v14 }
 0x5b3   : > { %v1798_v25 = vpop.f32.mrf.mxu0 }
 0x5b4   : > { %v4308_v5 = vadd.f32 %v1798_v25, %v1745_v30  ;;  %1820 = vadd.xlane.f32.xlu0 %v1819_v10  ;;  %v1839_v63 = vadd.f32 %v1830_v32, %v1829_v34  ;;  %v1831_v40 = vmul.f32 %v4306_v33, %v4306_v33 }
 0x5b6   : > { %v1822_v35 = vadd.f32 %v4308_v5, %v4306_v33  ;;  %v1832_v26 = vmul.f32 %v4308_v5, %v4308_v5 }
 0x5b8   : > { %1840 = vadd.xlane.f32.xlu0 %v1839_v63  ;;  %1823 = vadd.xlane.f32.xlu1 %v1822_v35  ;;  %v1842_v4 = vadd.f32 %v1832_v26, %v1831_v40  ;;  %v1808_v35 = vld [vmem:[%s5020_s8 + $0x18] sm:$0xff]  ;;  %v1807_v26 = vld [vmem:[%s5020_s8 + $0x10] sm:$0xff]  ;;  %v1806_v40 = vld [vmem:[%s5020_s8 + $0x8] sm:$0xff] }
 0x5bc   : > { %1843 = vadd.xlane.f32.xlu0 %v1842_v4  ;;  %1817 = vadd.xlane.f32.xlu1 %v1816_v1  ;;  %v1805_v4 = vld [vmem:[%s5020_s8] sm:$0xff] }
 0x5c0   : > { %1837 = vadd.xlane.f32.xlu0 %v1836_v61  ;;  %1814 = vadd.xlane.f32.xlu1 %v1813_v18 }
 0x5c4   : > { %1834 = vadd.xlane.f32.xlu0 %v1833_v31 }
 0x63d   : > { %v1821_v20 = vpop.xlane.xlu0 %1820 }
 0x641   : > { %v1841_v6 = vpop.xlane.xlu0 %1840  ;;  %v1824_v13 = vpop.xlane.xlu1 %1823 }
 0x642   : > { %v1847_v52 = vsel %vm580_vm1, %v1821_v20, %v1841_v6  ;;  %v1811_v20 = vld [vmem:[%s5021_s9 + $0x10] sm:$0xff] }
 0x645   : > { %v1844_v29 = vpop.xlane.xlu0 %1843  ;;  %v1818_v12 = vpop.xlane.xlu1 %1817 }
 0x646   : > { %v1848_v21 = vsel %vm580_vm1, %v1824_v13, %v1844_v29 }
 0x647   : > { %3404 = vmatprep.subr.mxu0 %v1848_v21 }
 0x648   : > { %3405 = vmatpush3.msra.mxu0 %v1848_v21 }
 0x649   : > { %v1838_v51 = vpop.xlane.xlu0 %1837  ;;  %3406 = vmatprep.subr.mxu0 %v1847_v52  ;;  %v1815_v43 = vpop.xlane.xlu1 %1814 }
 0x64a   : > { %3407 = vmatpush3.msra.mxu0 %v1847_v52  ;;  %v1846_v39 = vsel %vm580_vm1, %v1818_v12, %v1838_v51  ;;  %v1810_v12 = vld [vmem:[%s5021_s9 + $0x8] sm:$0xff]  ;;  %v1809_v52 = vld [vmem:[%s5021_s9] sm:$0xff] }
 0x64b   : > { %3408 = vmatprep.subr.mxu0 %v1846_v39 }
 0x64c   : > { %3409 = vmatpush3.msra.mxu0 %v1846_v39 }
 0x64d   : > { %v1835_v55 = vpop.xlane.xlu0 %1834 }
 0x64e   : > { %v1845_v38 = vsel %vm580_vm1, %v1815_v43, %v1835_v55 }
 0x64f   : > { %3410 = vmatprep.subr.mxu0 %v1845_v38 }
 0x650   : > { %3411 = vmatpush3.msra.mxu0 %v1845_v38 }
 0x651   : > { %3413 = vmatmul.mubr.msk.f32.vlgmr.msra.gmra.mxu0 %vm587_vm0, %v1802_v42 }
 0x652   : > { %3415 = vmatprep.mubr.msk.f32.mxu0 %vm587_vm0, %v1803_v44 }
 0x655   : > { %3416 = vmatmul.mubr.msk.f32.gmra.mxu0 %vm587_vm0, %v1804_v46 }
 0x656   : > { %2186 = vmatprep.mubr.bf16.mxu0 %v3611_v0 }
 0x711   : > { %v3414_v47 = vpop.f32.mrf.mxu0 }
 0x712   : > { %v1947_v60 = vmul.f32 %v3414_v47, %v3414_v47 }
 0x713   : > { %v1927_v49 = vpop.f32.mrf.mxu0 }
 0x714   : > { %v1946_v57 = vmul.f32 %v1927_v49, %v1927_v49 }
 0x715   : > { %v3417_v58 = vpop.f32.mrf.mxu0 }
 0x716   : > { %v1949_v48 = vmul.f32 %v3417_v58, %v3417_v58  ;;  %1954 = vrot.lane.b32.xlu1 %v1946_v57, %s3612_s24 }
 0x717   : > { %v1937_v54 = vpop.f32.mrf.mxu0 }
 0x718   : > { %v1948_v50 = vmul.f32 %v1937_v54, %v1937_v54  ;;  %1960 = vrot.lane.b32.xlu0 %v1949_v48, %s3612_s24 }
 0x71a   : > { %1958 = vrot.lane.b32.xlu1 %v1948_v50, %s3612_s24 }
 0x71e   : > { %1956 = vrot.lane.b32.xlu1 %v1947_v60, %s3612_s24 }
 0x788   : > { %v1955_v62 = vpop.permute.xlu1 %1954 }
 0x789   : > { %v1966_v15 = vsub.f32 %v1927_v49, %v1955_v62 }
 0x78a   : > { %v1961_v22 = vpop.permute.xlu0 %1960 }
 0x78b   : > { %v1969_v45 = vsub.f32 %v3417_v58, %v1961_v22  ;;  %v1970_v23 = vadd.f32 1e-05, %v1966_v15 }
 0x78c   : > { %v1959_v3 = vpop.permute.xlu1 %1958 }
 0x78d   : > { %v1973_v37 = vadd.f32 1e-05, %v1969_v45  ;;  %v1968_v2 = vsub.f32 %v1937_v54, %v1959_v3 }
 0x78f   : > { %3559 = vrsqrt.f32 %v1973_v37  ;;  %v1972_v11 = vadd.f32 1e-05, %v1968_v2 }
 0x790   : > { %v1957_v41 = vpop.permute.xlu1 %1956 }
 0x791   : > { %3561 = vrsqrt.f32 %v1972_v11  ;;  %v1967_v14 = vsub.f32 %v3414_v47, %v1957_v41 }
 0x792   : > { %3563 = vrsqrt.f32 %v1970_v23 }
 0x793   : > { %v1971_v28 = vadd.f32 1e-05, %v1967_v14 }
 0x795   : > { %3565 = vrsqrt.f32 %v1971_v28 }
 0x79c   : > { %v3560_v10 = vpop.eup %3559 }
 0x79d   : > { %1988 = vrot.lane.b32.xlu0 %v3560_v10, %s3613_s25 }
 0x79e   : > { %v3562_v32 = vpop.eup %3561 }
 0x79f   : > { %1986 = vrot.lane.b32.xlu1 %v3562_v32, %s3613_s25  ;;  %v3564_v30 = vpop.eup %3563 }
 0x7a2   : > { %v3566_v25 = vpop.eup %3565 }
 0x7a3   : > { %1982 = vrot.lane.b32.xlu1 %v3564_v30, %s3613_s25  ;;  %1984 = vrot.lane.b32.xlu0 %v3566_v25, %s3613_s25  ;;  %v3544_v25 = vld [vmem:[%s5015_s3 + $0x8] sm:$0xff]  }
 0x80f   : > { %v1989_v34 = vpop.permute.xlu0 %1988 }
 0x810   : > { %v1997_v16 = vmul.f32 %v1989_v34, %v1808_v35  ;;  %v3545_v34 = vld [vmem:[%s5015_s3 + $0x10] sm:$0xff]   ;;  %v3547_v35 = vld [vmem:[%s5015_s3 + $0x20] sm:$0xff]  }
 0x811   : > { %v1987_v63 = vpop.permute.xlu1 %1986 }
 0x812   : > { %v1996_v61 = vmul.f32 %v1987_v63, %v1807_v26  ;;  %v2001_v19 = vmul.f32 %v3417_v58, %v1997_v16  ;;  %v3546_v63 = vld [vmem:[%s5015_s3 + $0x18] sm:$0xff]   ;;  %v3548_v26 = vld [vmem:[%s5015_s3 + $0x28] sm:$0xff]  }
 0x814   : > { %v2000_v31 = vmul.f32 %v1996_v61, %v1937_v54  ;;  %v2005_v6 = vsub.f32 %v1812_v8, %v2001_v19 }
 0x815   : > { %v1985_v1 = vpop.permute.xlu0 %1984  ;;  %v1983_v27 = vpop.permute.xlu1 %1982 }
 0x816   : > { %v1995_v18 = vmul.f32 %v1985_v1, %v1806_v40  ;;  %v1994_v36 = vmul.f32 %v1983_v27, %v1805_v4  ;;  %v2004_v13 = vsub.f32 %v1811_v20, %v2000_v31  ;;  %v3549_v40 = vld [vmem:[%s5015_s3 + $0x30] sm:$0xff]   ;;  %v3550_v4 = vld [vmem:[%s5015_s3 + $0x38] sm:$0xff]  }
 0x818   : > { %2013 = vperm.xlu0 %3491, %v1995_v18   ;;  %2008 = vperm.xlu1 %3492, %v1994_v36   ;;  %v1999_v29 = vmul.f32 %v3414_v47, %v1995_v18  ;;  %v1998_v21 = vmul.f32 %v1994_v36, %v1927_v49 }
 0x81a   : > { %v2003_v51 = vsub.f32 %v1810_v12, %v1999_v29  ;;  %v2002_v39 = vsub.f32 %v1809_v52, %v1998_v21 }
 0x81c   : > { %2023 = vperm.xlu0 %3491, %v1997_v16   ;;  %2018 = vperm.xlu1 %3492, %v1996_v61  }
 0x820   : > { %2051 = vperm.xlu0 %3491, %v2005_v6   ;;  %2046 = vperm.xlu1 %3492, %v2004_v13  }
 0x824   : > { %2041 = vperm.xlu0 %3491, %v2003_v51   ;;  %2036 = vperm.xlu1 %3492, %v2002_v39  }
 0x893   : > { %v2014_v43 = vpop.permute.xlu0 %2013  ;;  %v2009_v55 = vpop.permute.xlu1 %2008 }
 0x894   : > { %v2028_v62 = vmul.f32 %v2014_v43, %v4318_v56  ;;  %v2029_v22 = vmul.f32 %v2014_v43, %v4312_v53  ;;  %v2026_v45 = vmul.f32 %v2009_v55, %v4328_v9 }
 0x897   : > { %v2024_v38 = vpop.permute.xlu0 %2023  ;;  %v2019_v42 = vpop.permute.xlu1 %2018 }
 0x898   : > { %v2032_v44 = vmul.f32 %v2024_v38, %v4306_v33  ;;  %v2033_v46 = vmul.f32 %v2024_v38, %v4308_v5  ;;  %v2030_v47 = vmul.f32 %v2019_v42, %v4298_v24  ;;  %v2031_v49 = vmul.f32 %v2019_v42, %v4300_v7 }
 0x899   : > { %v2027_v24 = vmul.f32 %v2009_v55, %v4322_v59  ;;  %v3543_v59 = vld [vmem:[%s5015_s3] sm:$0xff]  }
 0x89b   : > { %v2052_v57 = vpop.permute.xlu0 %2051  ;;  %v2047_v58 = vpop.permute.xlu1 %2046 }
 0x89c   : > { %v2060_v48 = vadd.f32 %v2052_v57, %v2032_v44  ;;  %v2061_v54 = vadd.f32 %v2052_v57, %v2033_v46  ;;  %v2058_v50 = vadd.f32 %v2047_v58, %v2030_v47  ;;  %v2059_v60 = vadd.f32 %v2047_v58, %v2031_v49 }
 0x89e   : > { %v2068_v15 = vmax.f32 %v2060_v48, 0.0  ;;  %v2069_v33 = vmax.f32 %v2061_v54, 0.0  ;;  %v2066_v3 = vmax.f32 %v2058_v50, 0.0  ;;  %v2067_v5 = vmax.f32 %v2059_v60, 0.0 }
 0x89f   : > { %v2042_v37 = vpop.permute.xlu0 %2041  ;;  %v2037_v7 = vpop.permute.xlu1 %2036 }
 0x8a0   : > { %v2088_v2 = vpack.c.bf16 %v2068_v15, %v2066_v3  ;;  %v2056_v11 = vadd.f32 %v2042_v37, %v2028_v62  ;;  %v2057_v23 = vadd.f32 %v2042_v37, %v2029_v22  ;;  %v2054_v41 = vadd.f32 %v2037_v7, %v2026_v45 }
 0x8a1   : > { %v2055_v14 = vadd.f32 %v2037_v7, %v2027_v24  ;;  %v2089_v28 = vpack.c.bf16 %v2069_v33, %v2067_v5 }
 0x8a2   : > { %v2064_v10 = vmax.f32 %v2056_v11, 0.0  ;;  %v2065_v56 = vmax.f32 %v2057_v23, 0.0  ;;  %v2062_v32 = vmax.f32 %v2054_v41, 0.0 }
 0x8a3   : > { %v2063_v53 = vmax.f32 %v2055_v14, 0.0  ;;  %2166 = vmatprep.subr.bf16.mxu0 %v2089_v28 }
 0x8a4   : > { %v2086_v9 = vpack.c.bf16 %v2064_v10, %v2062_v32  ;;  %2167 = vmatpush1.bf16.msra.mxu0 %v2088_v2 }
 0x8a5   : > { %v2087_v30 = vpack.c.bf16 %v2065_v56, %v2063_v53 }
 0x8a7   : > { %2168 = vmatprep.subr.bf16.mxu0 %v2087_v30 }
 0x8a8   : > { %2169 = vmatpush1.bf16.msra.mxu0 %v2086_v9 }
 0x8ab   : > { %3326 = vmatmul.mubr.msk.bf16.vlgmr.msra.gmra.mxu0 %vm587_vm0, %v3543_v59 }
 0x8ac   : > { %2196 = vmatprep.mubr.bf16.mxu0 %v3611_v0 }
 0x8b3   : > { %3327 = vmatmul.mubr.msk.bf16.gmra.mxu0 %vm587_vm0, %v3544_v25 }
 0x8b4   : > { %2206 = vmatprep.mubr.bf16.mxu0 %v3611_v0 }
 0x8bb   : > { %3328 = vmatmul.mubr.msk.bf16.gmra.mxu0 %vm587_vm0, %v3545_v34 }
 0x8bc   : > { %2216 = vmatprep.mubr.bf16.mxu0 %v3611_v0 }
 0x8c3   : > { %3329 = vmatmul.mubr.msk.bf16.gmra.mxu0 %vm587_vm0, %v3546_v63 }
 0x8c4   : > { %2226 = vmatprep.mubr.bf16.mxu0 %v3611_v0 }
 0x8cb   : > { %3330 = vmatmul.mubr.msk.bf16.gmra.mxu0 %vm587_vm0, %v3547_v35 }
 0x8cc   : > { %2236 = vmatprep.mubr.bf16.mxu0 %v3611_v0 }
 0x8d3   : > { %3331 = vmatmul.mubr.msk.bf16.gmra.mxu0 %vm587_vm0, %v3548_v26 }
 0x8d4   : > { %2246 = vmatprep.mubr.bf16.mxu0 %v3611_v0 }
 0x8db   : > { %3332 = vmatmul.mubr.msk.bf16.gmra.mxu0 %vm587_vm0, %v3549_v40 }
 0x8dc   : > { %2256 = vmatprep.mubr.bf16.mxu0 %v3611_v0 }
 0x8e3   : > { %3333 = vmatmul.mubr.msk.bf16.gmra.mxu0 %vm587_vm0, %v3550_v4 }
 0x96b   : > { %v4442_v1 = vpop.f32.mrf.mxu0 }
 0x96d   : > { %v4444_v27 = vpop.f32.mrf.mxu0 }
 0x96f   : > { %v4446_v16 = vpop.f32.mrf.mxu0 }
 0x971   : > { %v4448_v61 = vpop.f32.mrf.mxu0 }
 0x973   : > { %v4450_v18 = vpop.f32.mrf.mxu0 }
 0x975   : > { %v4452_v36 = vpop.f32.mrf.mxu0 }
 0x977   : > { %v4454_v19 = vpop.f32.mrf.mxu0 }
 0x979   : > { %v4456_v0 = vpop.f32.mrf.mxu0 }
 0x97b   : > { %v4458_v31 = vpop.f32.mrf.mxu0 }
 0x97d   : > { %v4460_v8 = vpop.f32.mrf.mxu0 }
 0x97f   : > { %v4462_v20 = vpop.f32.mrf.mxu0 }
 0x981   : > { %v4464_v6 = vpop.f32.mrf.mxu0 }
 0x983   : > { %v4466_v13 = vpop.f32.mrf.mxu0 }
 0x985   : > { %v4468_v29 = vpop.f32.mrf.mxu0 }
 0x987   : > { %v4470_v21 = vpop.f32.mrf.mxu0 }
 0x989   : > { %v4472_v12 = vpop.f32.mrf.mxu0 }
 0x98a   : > { %v2336_v4 = vadd.f32 %v4472_v12, %v4470_v21 }
 0x98b   : > { %v4474_v52 = vpop.f32.mrf.mxu0 }
 0x98c   : > { %v2379_v39 = vmul.f32 %v4474_v52, %v4474_v52 }
 0x98d   : > { %v4476_v51 = vpop.f32.mrf.mxu0 }
 0x98e   : > { %v2339_v43 = vadd.f32 %v4476_v51, %v4474_v52  ;;  %v2380_v55 = vmul.f32 %v4476_v51, %v4476_v51 }
 0x98f   : > { %v4484_v38 = vpop.f32.mrf.mxu0 }
 0x990   : > { %2340 = vadd.xlane.f32.xlu1 %v2339_v43  ;;  %v2419_v42 = vadd.f32 %v2380_v55, %v2379_v39  ;;  %v2381_v46 = vmul.f32 %v4484_v38, %v4484_v38  ;;  %v2378_v43 = vmul.f32 %v4472_v12, %v4472_v12 }
 0x991   : > { %v4486_v44 = vpop.f32.mrf.mxu0 }
 0x992   : > { %v2342_v47 = vadd.f32 %v4486_v44, %v4484_v38  ;;  %v2382_v49 = vmul.f32 %v4486_v44, %v4486_v44  ;;  %2420 = vadd.xlane.f32.xlu0 %v2419_v42  ;;  %v2333_v42 = vadd.f32 %v4468_v29, %v4466_v13 }
 0x993   : > { %v4494_v57 = vpop.f32.mrf.mxu0 }
 0x994   : > { %2343 = vadd.xlane.f32.xlu1 %v2342_v47  ;;  %v2422_v58 = vadd.f32 %v2382_v49, %v2381_v46  ;;  %v2383_v54 = vmul.f32 %v4494_v57, %v4494_v57  ;;  %v2377_v46 = vmul.f32 %v4470_v21, %v4470_v21  ;;  %v2376_v47 = vmul.f32 %v4468_v29, %v4468_v29 }
 0x995   : > { %v4496_v48 = vpop.f32.mrf.mxu0 }
 0x996   : > { %v2345_v50 = vadd.f32 %v4496_v48, %v4494_v57  ;;  %v2384_v60 = vmul.f32 %v4496_v48, %v4496_v48  ;;  %2423 = vadd.xlane.f32.xlu0 %v2422_v58  ;;  %v2416_v49 = vadd.f32 %v2378_v43, %v2377_v46  ;;  %v2330_v58 = vadd.f32 %v4464_v6, %v4462_v20 }
 0x997   : > { %v4504_v62 = vpop.f32.mrf.mxu0 }
 0x998   : > { %2346 = vadd.xlane.f32.xlu1 %v2345_v50  ;;  %v2425_v22 = vadd.f32 %v2384_v60, %v2383_v54  ;;  %v2385_v15 = vmul.f32 %v4504_v62, %v4504_v62  ;;  %v2375_v54 = vmul.f32 %v4466_v13, %v4466_v13  ;;  %v2374_v50 = vmul.f32 %v4464_v6, %v4464_v6 }
 0x999   : > { %v4506_v45 = vpop.f32.mrf.mxu0 }
 0x99a   : > { %v2348_v33 = vadd.f32 %v4506_v45, %v4504_v62  ;;  %v2386_v3 = vmul.f32 %v4506_v45, %v4506_v45  ;;  %2426 = vadd.xlane.f32.xlu0 %v2425_v22  ;;  %v2413_v60 = vadd.f32 %v2376_v47, %v2375_v54  ;;  %v2327_v22 = vadd.f32 %v4460_v8, %v4458_v31 }
 0x99b   : > { %v4514_v5 = vpop.f32.mrf.mxu0 }
 0x99c   : > { %2349 = vadd.xlane.f32.xlu1 %v2348_v33  ;;  %v2428_v24 = vadd.f32 %v2386_v3, %v2385_v15  ;;  %v2387_v7 = vmul.f32 %v4514_v5, %v4514_v5  ;;  %v2373_v15 = vmul.f32 %v4462_v20, %v4462_v20  ;;  %v2372_v33 = vmul.f32 %v4460_v8, %v4460_v8 }
 0x99d   : > { %v4516_v37 = vpop.f32.mrf.mxu0 }
 0x99e   : > { %v2351_v2 = vadd.f32 %v4516_v37, %v4514_v5  ;;  %v2388_v11 = vmul.f32 %v4516_v37, %v4516_v37  ;;  %2429 = vadd.xlane.f32.xlu0 %v2428_v24  ;;  %v2410_v3 = vadd.f32 %v2374_v50, %v2373_v15  ;;  %v2324_v24 = vadd.f32 %v4456_v0, %v4454_v19 }
 0x99f   : > { %v4524_v23 = vpop.f32.mrf.mxu0 }
 0x9a0   : > { %2352 = vadd.xlane.f32.xlu1 %v2351_v2  ;;  %v2431_v41 = vadd.f32 %v2388_v11, %v2387_v7  ;;  %v2389_v28 = vmul.f32 %v4524_v23, %v4524_v23  ;;  %v2371_v7 = vmul.f32 %v4458_v31, %v4458_v31  ;;  %v2370_v2 = vmul.f32 %v4456_v0, %v4456_v0 }
 0x9a1   : > { %v4526_v14 = vpop.f32.mrf.mxu0 }
 0x9a2   : > { %v2354_v10 = vadd.f32 %v4526_v14, %v4524_v23  ;;  %v2390_v56 = vmul.f32 %v4526_v14, %v4526_v14  ;;  %2432 = vadd.xlane.f32.xlu0 %v2431_v41  ;;  %v2407_v11 = vadd.f32 %v2372_v33, %v2371_v7  ;;  %v2321_v41 = vadd.f32 %v4452_v36, %v4450_v18 }
 0x9a3   : > { %v4534_v32 = vpop.f32.mrf.mxu0 }
 0x9a4   : > { %2355 = vadd.xlane.f32.xlu1 %v2354_v10  ;;  %v2434_v53 = vadd.f32 %v2390_v56, %v2389_v28  ;;  %v2391_v59 = vmul.f32 %v4534_v32, %v4534_v32  ;;  %v2369_v28 = vmul.f32 %v4454_v19, %v4454_v19  ;;  %v2368_v10 = vmul.f32 %v4452_v36, %v4452_v36 }
 0x9a5   : > { %v4536_v9 = vpop.f32.mrf.mxu0 }
 0x9a6   : > { %2435 = vadd.xlane.f32.xlu0 %v2434_v53  ;;  %v2357_v25 = vadd.f32 %v4536_v9, %v4534_v32  ;;  %v2392_v34 = vmul.f32 %v4536_v9, %v4536_v9  ;;  %v2404_v56 = vadd.f32 %v2370_v2, %v2369_v28  ;;  %v2318_v53 = vadd.f32 %v4448_v61, %v4446_v16 }
 0x9a7   : > { %v4538_v30 = vpop.f32.mrf.mxu0 }
 0x9a8   : > { %v2437_v40 = vadd.f32 %v2392_v34, %v2391_v59  ;;  %v2393_v39 = vmul.f32 %v4538_v30, %v4538_v30  ;;  %v2367_v59 = vmul.f32 %v4450_v18, %v4450_v18 }
 0x9a9   : > { %v4546_v63 = vpop.f32.mrf.mxu0 }
 0x9aa   : > { %v2360_v35 = vadd.f32 %v4546_v63, %v4538_v30  ;;  %2358 = vadd.xlane.f32.xlu0 %v2357_v25  ;;  %v2394_v26 = vmul.f32 %v4546_v63, %v4546_v63  ;;  %v2366_v25 = vmul.f32 %v4448_v61, %v4448_v61  ;;  %v2401_v34 = vadd.f32 %v2368_v10, %v2367_v59 }
 0x9ac   : > { %2361 = vadd.xlane.f32.xlu1 %v2360_v35  ;;  %v2440_v55 = vadd.f32 %v2394_v26, %v2393_v39  ;;  %v2315_v35 = vadd.f32 %v4444_v27, %v4442_v1  ;;  %v2365_v26 = vmul.f32 %v4446_v16, %v4446_v16  ;;  %v2363_v39 = vmul.f32 %v4442_v1, %v4442_v1 }
 0x9ae   : > { %2438 = vadd.xlane.f32.xlu0 %v2437_v40  ;;  %v2364_v40 = vmul.f32 %v4444_v27, %v4444_v27 }
 0x9b0   : > { %2337 = vadd.xlane.f32.xlu1 %v2336_v4  ;;  %v2398_v4 = vadd.f32 %v2366_v25, %v2365_v26  ;;  %v2395_v43 = vadd.f32 %v2364_v40, %v2363_v39 }
 0x9b2   : > { %2441 = vadd.xlane.f32.xlu0 %v2440_v55  ;;  %v2267_v55 = vld [vmem:[%s5017_s5] sm:$0xff] }
 0x9b3   : > { %3450 = vmatprep.mubr.f32.mxu1 %v2267_v55 }
 0x9b4   : > { %2334 = vadd.xlane.f32.xlu1 %v2333_v42 }
 0x9b6   : > { %2417 = vadd.xlane.f32.xlu0 %v2416_v49 }
 0x9b8   : > { %2331 = vadd.xlane.f32.xlu1 %v2330_v58 }
 0x9ba   : > { %2414 = vadd.xlane.f32.xlu0 %v2413_v60 }
 0x9bc   : > { %2328 = vadd.xlane.f32.xlu1 %v2327_v22 }
 0x9be   : > { %2411 = vadd.xlane.f32.xlu0 %v2410_v3 }
 0x9c0   : > { %2325 = vadd.xlane.f32.xlu1 %v2324_v24 }
 0x9c2   : > { %2408 = vadd.xlane.f32.xlu0 %v2407_v11 }
 0x9c4   : > { %2322 = vadd.xlane.f32.xlu1 %v2321_v41 }
 0x9c6   : > { %2405 = vadd.xlane.f32.xlu0 %v2404_v56 }
 0x9c8   : > { %2319 = vadd.xlane.f32.xlu1 %v2318_v53 }
 0x9ca   : > { %2402 = vadd.xlane.f32.xlu0 %v2401_v34 }
 0x9cc   : > { %2316 = vadd.xlane.f32.xlu1 %v2315_v35 }
 0x9ce   : > { %2399 = vadd.xlane.f32.xlu0 %v2398_v4 }
 0x9d2   : > { %2396 = vadd.xlane.f32.xlu0 %v2395_v43 }
 0xa19   : > { %v2341_v42 = vpop.xlane.xlu1 %2340 }
 0xa1b   : > { %v2421_v46 = vpop.xlane.xlu0 %2420 }
 0xa1d   : > { %v2344_v47 = vpop.xlane.xlu1 %2343 }
 0xa1f   : > { %v2424_v49 = vpop.xlane.xlu0 %2423 }
 0xa20   : > { %v2452_v43 = vsel %vm580_vm1, %v2344_v47, %v2424_v49 }
 0xa21   : > { %v2347_v58 = vpop.xlane.xlu1 %2346 }
 0xa23   : > { %v2427_v54 = vpop.xlane.xlu0 %2426 }
 0xa24   : > { %v2453_v4 = vsel %vm580_vm1, %v2347_v58, %v2427_v54 }
 0xa25   : > { %v2350_v50 = vpop.xlane.xlu1 %2349 }
 0xa27   : > { %v2430_v60 = vpop.xlane.xlu0 %2429 }
 0xa28   : > { %v2454_v26 = vsel %vm580_vm1, %v2350_v50, %v2430_v60 }
 0xa29   : > { %v2353_v22 = vpop.xlane.xlu1 %2352 }
 0xa2b   : > { %v2433_v15 = vpop.xlane.xlu0 %2432 }
 0xa2c   : > { %v2455_v34 = vsel %vm580_vm1, %v2353_v22, %v2433_v15  ;;  %v2451_v22 = vsel %vm580_vm1, %v2341_v42, %v2421_v46 }
 0xa2d   : > { %v2356_v3 = vpop.xlane.xlu1 %2355 }
 0xa2f   : > { %v2436_v33 = vpop.xlane.xlu0 %2435 }
 0xa30   : > { %v2456_v59 = vsel %vm580_vm1, %v2356_v3, %v2436_v33 }
 0xa33   : > { %v2359_v24 = vpop.xlane.xlu0 %2358 }
 0xa35   : > { %v2362_v7 = vpop.xlane.xlu1 %2361 }
 0xa37   : > { %v2439_v2 = vpop.xlane.xlu0 %2438 }
 0xa38   : > { %v2457_v56 = vsel %vm580_vm1, %v2359_v24, %v2439_v2 }
 0xa39   : > { %v2338_v11 = vpop.xlane.xlu1 %2337 }
 0xa3b   : > { %v2442_v41 = vpop.xlane.xlu0 %2441 }
 0xa3c   : > { %v2458_v28 = vsel %vm580_vm1, %v2362_v7, %v2442_v41 }
 0xa3d   : > { %3418 = vmatprep.subr.mxu1 %v2458_v28  ;;  %v2335_v10 = vpop.xlane.xlu1 %2334 }
 0xa3e   : > { %3419 = vmatpush3.msra.mxu1 %v2458_v28  ;;  %v2268_v28 = vld [vmem:[%s5017_s5 + $0x8] sm:$0xff] }
 0xa3f   : > { %v2418_v53 = vpop.xlane.xlu0 %2417  ;;  %3420 = vmatprep.subr.mxu1 %v2457_v56 }
 0xa40   : > { %3421 = vmatpush3.msra.mxu1 %v2457_v56  ;;  %v2450_v50 = vsel %vm580_vm1, %v2338_v11, %v2418_v53  ;;  %v2270_v56 = vld [vmem:[%s5017_s5 + $0x18] sm:$0xff]  ;;  %v2272_v53 = vld [vmem:[%s5017_s5 + $0x28] sm:$0xff] }
 0xa41   : > { %3422 = vmatprep.subr.mxu1 %v2456_v59  ;;  %v2332_v25 = vpop.xlane.xlu1 %2331 }
 0xa42   : > { %3423 = vmatpush3.msra.mxu1 %v2456_v59  ;;  %v2273_v59 = vld [vmem:[%s5017_s5 + $0x30] sm:$0xff] }
 0xa43   : > { %v2415_v35 = vpop.xlane.xlu0 %2414  ;;  %3424 = vmatprep.subr.mxu1 %v2455_v34 }
 0xa44   : > { %3425 = vmatpush3.msra.mxu1 %v2455_v34  ;;  %v2449_v58 = vsel %vm580_vm1, %v2335_v10, %v2415_v35  ;;  %v2269_v10 = vld [vmem:[%s5017_s5 + $0x10] sm:$0xff]  ;;  %v2275_v34 = vld [vmem:[%s5017_s5 + $0x40] sm:$0xff]  ;;  %v2276_v35 = vld [vmem:[%s5017_s5 + $0x48] sm:$0xff] }
 0xa45   : > { %3426 = vmatprep.subr.mxu1 %v2454_v26  ;;  %v2329_v40 = vpop.xlane.xlu1 %2328 }
 0xa46   : > { %3427 = vmatpush3.msra.mxu1 %v2454_v26  ;;  %v2277_v26 = vld [vmem:[%s5017_s5 + $0x50] sm:$0xff] }
 0xa47   : > { %v2412_v39 = vpop.xlane.xlu0 %2411  ;;  %3428 = vmatprep.subr.mxu1 %v2453_v4 }
 0xa48   : > { %3429 = vmatpush3.msra.mxu1 %v2453_v4  ;;  %v2448_v47 = vsel %vm580_vm1, %v2332_v25, %v2412_v39  ;;  %v2274_v25 = vld [vmem:[%s5017_s5 + $0x38] sm:$0xff]  ;;  %v2279_v4 = vld [vmem:[%s5017_s5 + $0x60] sm:$0xff]  ;;  %v2280_v39 = vld [vmem:[%s5017_s5 + $0x68] sm:$0xff] }
 0xa49   : > { %3430 = vmatprep.subr.mxu1 %v2452_v43  ;;  %v2326_v55 = vpop.xlane.xlu1 %2325 }
 0xa4a   : > { %3431 = vmatpush3.msra.mxu1 %v2452_v43  ;;  %v2281_v43 = vld [vmem:[%s5017_s5 + $0x70] sm:$0xff] }
 0xa4b   : > { %v2409_v15 = vpop.xlane.xlu0 %2408  ;;  %3432 = vmatprep.subr.mxu1 %v2451_v22 }
 0xa4c   : > { %3433 = vmatpush3.msra.mxu1 %v2451_v22  ;;  %v2447_v42 = vsel %vm580_vm1, %v2329_v40, %v2409_v15  ;;  %v2278_v40 = vld [vmem:[%s5017_s5 + $0x58] sm:$0xff] }
 0xa4d   : > { %3434 = vmatprep.subr.mxu1 %v2450_v50  ;;  %v2323_v54 = vpop.xlane.xlu1 %2322 }
 0xa4e   : > { %3435 = vmatpush3.msra.mxu1 %v2450_v50 }
 0xa4f   : > { %v2406_v60 = vpop.xlane.xlu0 %2405  ;;  %3436 = vmatprep.subr.mxu1 %v2449_v58 }
 0xa50   : > { %3437 = vmatpush3.msra.mxu1 %v2449_v58  ;;  %v2446_v49 = vsel %vm580_vm1, %v2326_v55, %v2406_v60  ;;  %v2282_v55 = vld [vmem:[%s5017_s5 + $0x78] sm:$0xff] }
 0xa51   : > { %3438 = vmatprep.subr.mxu1 %v2448_v47  ;;  %v2320_v33 = vpop.xlane.xlu1 %2319 }
 0xa52   : > { %3439 = vmatpush3.msra.mxu1 %v2448_v47 }
 0xa53   : > { %v2403_v46 = vpop.xlane.xlu0 %2402  ;;  %3440 = vmatprep.subr.mxu1 %v2447_v42 }
 0xa54   : > { %3441 = vmatpush3.msra.mxu1 %v2447_v42  ;;  %v2445_v3 = vsel %vm580_vm1, %v2323_v54, %v2403_v46 }
 0xa55   : > { %3442 = vmatprep.subr.mxu1 %v2446_v49  ;;  %v2317_v2 = vpop.xlane.xlu1 %2316 }
 0xa56   : > { %3443 = vmatpush3.msra.mxu1 %v2446_v49 }
 0xa57   : > { %v2400_v24 = vpop.xlane.xlu0 %2399  ;;  %3444 = vmatprep.subr.mxu1 %v2445_v3 }
 0xa58   : > { %3445 = vmatpush3.msra.mxu1 %v2445_v3  ;;  %v2444_v7 = vsel %vm580_vm1, %v2320_v33, %v2400_v24 }
 0xa59   : > { %3446 = vmatprep.subr.mxu1 %v2444_v7 }
 0xa5a   : > { %3447 = vmatpush3.msra.mxu1 %v2444_v7 }
 0xa5b   : > { %v2397_v11 = vpop.xlane.xlu0 %2396 }
 0xa5c   : > { %v2443_v41 = vsel %vm580_vm1, %v2317_v2, %v2397_v11 }
 0xa5d   : > { %3448 = vmatprep.subr.mxu1 %v2443_v41 }
 0xa5e   : > { %3449 = vmatpush3.msra.mxu1 %v2443_v41 }
 0xa5f   : > { %3451 = vmatmul.mubr.f32.vlgmr.msra.gmra.mxu1 %v2268_v28 }
 0xa60   : > { %3453 = vmatprep.mubr.f32.mxu1 %v2269_v10 }
 0xa63   : > { %3454 = vmatmul.mubr.f32.gmra.mxu1 %v2270_v56 }
 0xa64   : > { %3456 = vmatprep.mubr.f32.mxu1 %v2271_v17 }
 0xa67   : > { %3457 = vmatmul.mubr.f32.gmra.mxu1 %v2272_v53 }
 0xa68   : > { %3459 = vmatprep.mubr.f32.mxu1 %v2273_v59 }
 0xa6b   : > { %3460 = vmatmul.mubr.f32.gmra.mxu1 %v2274_v25 }
 0xa6c   : > { %3462 = vmatprep.mubr.f32.mxu1 %v2275_v34 }
 0xa6f   : > { %3463 = vmatmul.mubr.f32.gmra.mxu1 %v2276_v35 }
 0xa70   : > { %3465 = vmatprep.mubr.f32.mxu1 %v2277_v26 }
 0xa73   : > { %3466 = vmatmul.mubr.f32.gmra.mxu1 %v2278_v40 }
 0xa74   : > { %3468 = vmatprep.mubr.f32.mxu1 %v2279_v4 }
 0xa77   : > { %3469 = vmatmul.mubr.f32.gmra.mxu1 %v2280_v39 }
 0xa78   : > { %3471 = vmatprep.mubr.f32.mxu1 %v2281_v43 }
 0xa7b   : > { %3472 = vmatmul.mubr.f32.gmra.mxu1 %v2282_v55 }
 0xb1f   : > { %v4682_v22 = vpop.f32.mrf.mxu1 }
 0xb20   : > { %v2605_v15 = vmul.f32 %v4682_v22, %v4682_v22 }
 0xb21   : > { %v4686_v50 = vpop.f32.mrf.mxu1 }
 0xb22   : > { %v2604_v58 = vmul.f32 %v4686_v50, %v4686_v50  ;;  %2638 = vrot.lane.b32.xlu0 %v2605_v15, %s3612_s24 }
 0xb23   : > { %v4691_v54 = vpop.f32.mrf.mxu1 }
 0xb24   : > { %v2607_v60 = vmul.f32 %v4691_v54, %v4691_v54  ;;  %2636 = vrot.lane.b32.xlu1 %v2604_v58, %s3612_s24 }
 0xb25   : > { %v4696_v47 = vpop.f32.mrf.mxu1 }
 0xb26   : > { %v2606_v33 = vmul.f32 %v4696_v47, %v4696_v47 }
 0xb27   : > { %v4698_v42 = vpop.f32.mrf.mxu1 }
 0xb28   : > { %v2609_v46 = vmul.f32 %v4698_v42, %v4698_v42  ;;  %2642 = vrot.lane.b32.xlu1 %v2607_v60, %s3612_s24 }
 0xb29   : > { %v4703_v49 = vpop.f32.mrf.mxu1 }
 0xb2a   : > { %2646 = vrot.lane.b32.xlu0 %v2609_v46, %s3612_s24  ;;  %v2608_v24 = vmul.f32 %v4703_v49, %v4703_v49 }
 0xb2b   : > { %v4708_v3 = vpop.f32.mrf.mxu1 }
 0xb2c   : > { %v2611_v7 = vmul.f32 %v4708_v3, %v4708_v3  ;;  %2640 = vrot.lane.b32.xlu1 %v2606_v33, %s3612_s24 }
 0xb2d   : > { %v4715_v2 = vpop.f32.mrf.mxu1 }
 0xb2e   : > { %2650 = vrot.lane.b32.xlu0 %v2611_v7, %s3612_s24  ;;  %v2610_v41 = vmul.f32 %v4715_v2, %v4715_v2 }
 0xb2f   : > { %v4718_v11 = vpop.f32.mrf.mxu1 }
 0xb30   : > { %v2613_v28 = vmul.f32 %v4718_v11, %v4718_v11  ;;  %2644 = vrot.lane.b32.xlu1 %v2608_v24, %s3612_s24 }
 0xb31   : > { %v4725_v10 = vpop.f32.mrf.mxu1 }
 0xb32   : > { %2654 = vrot.lane.b32.xlu0 %v2613_v28, %s3612_s24  ;;  %v2612_v17 = vmul.f32 %v4725_v10, %v4725_v10 }
 0xb33   : > { %v4728_v56 = vpop.f32.mrf.mxu1 }
 0xb34   : > { %v2615_v53 = vmul.f32 %v4728_v56, %v4728_v56  ;;  %2648 = vrot.lane.b32.xlu1 %v2610_v41, %s3612_s24 }
 0xb35   : > { %v4735_v59 = vpop.f32.mrf.mxu1 }
 0xb36   : > { %2658 = vrot.lane.b32.xlu0 %v2615_v53, %s3612_s24  ;;  %v2614_v34 = vmul.f32 %v4735_v59, %v4735_v59 }
 0xb37   : > { %v4738_v25 = vpop.f32.mrf.mxu1 }
 0xb38   : > { %v2617_v35 = vmul.f32 %v4738_v25, %v4738_v25  ;;  %2652 = vrot.lane.b32.xlu1 %v2612_v17, %s3612_s24 }
 0xb39   : > { %v4745_v26 = vpop.f32.mrf.mxu1 }
 0xb3a   : > { %2662 = vrot.lane.b32.xlu0 %v2617_v35, %s3612_s24  ;;  %v2616_v4 = vmul.f32 %v4745_v26, %v4745_v26 }
 0xb3b   : > { %v4748_v40 = vpop.f32.mrf.mxu1 }
 0xb3c   : > { %v2619_v39 = vmul.f32 %v4748_v40, %v4748_v40  ;;  %2656 = vrot.lane.b32.xlu1 %v2614_v34, %s3612_s24 }
 0xb3d   : > { %v4755_v43 = vpop.f32.mrf.mxu1 }
 0xb3e   : > { %2666 = vrot.lane.b32.xlu0 %v2619_v39, %s3612_s24  ;;  %v2618_v55 = vmul.f32 %v4755_v43, %v4755_v43 }
 0xb40   : > { %2660 = vrot.lane.b32.xlu1 %v2616_v4, %s3612_s24 }
 0xb44   : > { %2664 = vrot.lane.b32.xlu1 %v2618_v55, %s3612_s24 }
 0xb94   : > { %v2639_v15 = vpop.permute.xlu0 %2638 }
 0xb95   : > { %v2685_v58 = vsub.f32 %v4682_v22, %v2639_v15 }
 0xb96   : > { %v2637_v60 = vpop.permute.xlu1 %2636 }
 0xb97   : > { %v2701_v46 = vadd.f32 1e-05, %v2685_v58  ;;  %v2684_v33 = vsub.f32 %v4686_v50, %v2637_v60 }
 0xb99   : > { %3567 = vrsqrt.f32 %v2701_v46  ;;  %v2700_v24 = vadd.f32 1e-05, %v2684_v33 }
 0xb9a   : > { %v2643_v7 = vpop.permute.xlu1 %2642 }
 0xb9b   : > { %3569 = vrsqrt.f32 %v2700_v24  ;;  %v2687_v41 = vsub.f32 %v4691_v54, %v2643_v7 }
 0xb9c   : > { %v2647_v28 = vpop.permute.xlu0 %2646 }
 0xb9d   : > { %v2703_v17 = vadd.f32 1e-05, %v2687_v41  ;;  %v2689_v53 = vsub.f32 %v4698_v42, %v2647_v28 }
 0xb9e   : > { %v2641_v34 = vpop.permute.xlu1 %2640 }
 0xb9f   : > { %3571 = vrsqrt.f32 %v2703_v17  ;;  %v2705_v35 = vadd.f32 1e-05, %v2689_v53  ;;  %v2686_v4 = vsub.f32 %v4696_v47, %v2641_v34 }
 0xba0   : > { %v2651_v39 = vpop.permute.xlu0 %2650 }
 0xba1   : > { %v2702_v55 = vadd.f32 1e-05, %v2686_v4  ;;  %v2691_v15 = vsub.f32 %v4708_v3, %v2651_v39  ;;  %3573 = vrsqrt.f32 %v2705_v35 }
 0xba2   : > { %v2645_v58 = vpop.permute.xlu1 %2644 }
 0xba3   : > { %3575 = vrsqrt.f32 %v2702_v55  ;;  %v2707_v60 = vadd.f32 1e-05, %v2691_v15  ;;  %v2688_v46 = vsub.f32 %v4703_v49, %v2645_v58 }
 0xba4   : > { %v2655_v33 = vpop.permute.xlu0 %2654 }
 0xba5   : > { %v2704_v24 = vadd.f32 1e-05, %v2688_v46  ;;  %v2693_v7 = vsub.f32 %v4718_v11, %v2655_v33  ;;  %3577 = vrsqrt.f32 %v2707_v60 }
 0xba6   : > { %v3568_v41 = vpop.eup %3567  ;;  %v2649_v28 = vpop.permute.xlu1 %2648 }
 0xba7   : > { %3579 = vrsqrt.f32 %v2704_v24  ;;  %v2709_v17 = vadd.f32 1e-05, %v2693_v7  ;;  %v2690_v53 = vsub.f32 %v4715_v2, %v2649_v28  ;;  %2750 = vrot.lane.b32.xlu0 %v3568_v41, %s3613_s25 }
 0xba8   : > { %v3570_v34 = vpop.eup %3569  ;;  %v2659_v35 = vpop.permute.xlu0 %2658 }
 0xba9   : > { %v2706_v4 = vadd.f32 1e-05, %v2690_v53  ;;  %v2695_v39 = vsub.f32 %v4728_v56, %v2659_v35  ;;  %2748 = vrot.lane.b32.xlu1 %v3570_v34, %s3613_s25  ;;  %3581 = vrsqrt.f32 %v2709_v17 }
 0xbaa   : > { %v2653_v55 = vpop.permute.xlu1 %2652 }
 0xbab   : > { %3583 = vrsqrt.f32 %v2706_v4  ;;  %v2711_v15 = vadd.f32 1e-05, %v2695_v39  ;;  %v2692_v58 = vsub.f32 %v4725_v10, %v2653_v55 }
 0xbac   : > { %v3572_v60 = vpop.eup %3571  ;;  %v2663_v46 = vpop.permute.xlu0 %2662 }
 0xbad   : > { %v2708_v33 = vadd.f32 1e-05, %v2692_v58  ;;  %v2697_v24 = vsub.f32 %v4738_v25, %v2663_v46  ;;  %2754 = vrot.lane.b32.xlu0 %v3572_v60, %s3613_s25  ;;  %3585 = vrsqrt.f32 %v2711_v15 }
 0xbae   : > { %v2657_v7 = vpop.permute.xlu1 %2656  ;;  %v3574_v41 = vpop.eup %3573 }
 0xbaf   : > { %3587 = vrsqrt.f32 %v2708_v33  ;;  %v2713_v28 = vadd.f32 1e-05, %v2697_v24  ;;  %v2694_v53 = vsub.f32 %v4735_v59, %v2657_v7 }
 0xbb0   : > { %v3576_v17 = vpop.eup %3575  ;;  %v2667_v34 = vpop.permute.xlu0 %2666 }
 0xbb1   : > { %v2710_v35 = vadd.f32 1e-05, %v2694_v53  ;;  %v2699_v4 = vsub.f32 %v4748_v40, %v2667_v34  ;;  %2758 = vrot.lane.b32.xlu0 %v3574_v41, %s3613_s25  ;;  %2752 = vrot.lane.b32.xlu1 %v3576_v17, %s3613_s25  ;;  %3589 = vrsqrt.f32 %v2713_v28 }
 0xbb2   : > { %v2661_v39 = vpop.permute.xlu1 %2660  ;;  %v3578_v55 = vpop.eup %3577 }
 0xbb3   : > { %3591 = vrsqrt.f32 %v2710_v35  ;;  %v2715_v15 = vadd.f32 1e-05, %v2699_v4  ;;  %v2696_v58 = vsub.f32 %v4745_v26, %v2661_v39 }
 0xbb4   : > { %v3580_v60 = vpop.eup %3579 }
 0xbb5   : > { %v2712_v46 = vadd.f32 1e-05, %v2696_v58  ;;  %2762 = vrot.lane.b32.xlu0 %v3578_v55, %s3613_s25  ;;  %2756 = vrot.lane.b32.xlu1 %v3580_v60, %s3613_s25  ;;  %3593 = vrsqrt.f32 %v2715_v15  ;;  %v2284_v15 = vld [vmem:[%s5022_s10 + $0x8] sm:$0xff]  ;;  %v2283_v60 = vld [vmem:[%s5022_s10] sm:$0xff] }
 0xbb6   : > { %v2665_v33 = vpop.permute.xlu1 %2664  ;;  %v3582_v24 = vpop.eup %3581 }
 0xbb7   : > { %3595 = vrsqrt.f32 %v2712_v46  ;;  %v2698_v7 = vsub.f32 %v4755_v43, %v2665_v33 }
 0xbb8   : > { %v3584_v41 = vpop.eup %3583 }
 0xbb9   : > { %v2714_v28 = vadd.f32 1e-05, %v2698_v7  ;;  %2766 = vrot.lane.b32.xlu0 %v3582_v24, %s3613_s25  ;;  %2760 = vrot.lane.b32.xlu1 %v3584_v41, %s3613_s25  ;;  %v2286_v7 = vld [vmem:[%s5022_s10 + $0x18] sm:$0xff] }
 0xbba   : > { %v3586_v53 = vpop.eup %3585 }
 0xbbb   : > { %3597 = vrsqrt.f32 %v2714_v28 }
 0xbbc   : > { %v3588_v17 = vpop.eup %3587 }
 0xbbd   : > { %2770 = vrot.lane.b32.xlu0 %v3586_v53, %s3613_s25  ;;  %2764 = vrot.lane.b32.xlu1 %v3588_v17, %s3613_s25  ;;  %v2300_v17 = vld [vmem:[%s5023_s11 + $0x8] sm:$0xff] }
 0xbbe   : > { %v3590_v34 = vpop.eup %3589 }
 0xbc0   : > { %v3592_v35 = vpop.eup %3591 }
 0xbc1   : > { %2774 = vrot.lane.b32.xlu0 %v3590_v34, %s3613_s25  ;;  %2768 = vrot.lane.b32.xlu1 %v3592_v35, %s3613_s25  ;;  %v2285_v34 = vld [vmem:[%s5022_s10 + $0x10] sm:$0xff] }
 0xbc2   : > { %v3594_v4 = vpop.eup %3593 }
 0xbc4   : > { %v3596_v39 = vpop.eup %3595 }
 0xbc5   : > { %2778 = vrot.lane.b32.xlu0 %v3594_v4, %s3613_s25  ;;  %2772 = vrot.lane.b32.xlu1 %v3596_v39, %s3613_s25 }
 0xbc8   : > { %v3598_v55 = vpop.eup %3597 }
 0xbc9   : > { %2776 = vrot.lane.b32.xlu1 %v3598_v55, %s3613_s25 }
 0xc19   : > { %v2751_v58 = vpop.permute.xlu0 %2750 }
 0xc1a   : > { %v2797_v46 = vmul.f32 %v2751_v58, %v2284_v15  ;;  %v2299_v15 = vld [vmem:[%s5023_s11] sm:$0xff] }
 0xc1b   : > { %v2749_v33 = vpop.permute.xlu1 %2748 }
 0xc1c   : > { %v2796_v24 = vmul.f32 %v2749_v33, %v2283_v60  ;;  %2851 = vperm.xlu0 %3491, %v2797_v46   ;;  %v2813_v28 = vmul.f32 %v4682_v22, %v2797_v46  ;;  %v2288_v22 = vld [vmem:[%s5022_s10 + $0x28] sm:$0xff] }
 0xc1e   : > { %2846 = vperm.xlu1 %3492, %v2796_v24   ;;  %v2829_v4 = vsub.f32 %v2300_v17, %v2813_v28  ;;  %v2812_v39 = vmul.f32 %v2796_v24, %v4686_v50  ;;  %v2302_v50 = vld [vmem:[%s5023_s11 + $0x18] sm:$0xff]  ;;  %v2287_v24 = vld [vmem:[%s5022_s10 + $0x20] sm:$0xff] }
 0xc1f   : > { %v2755_v41 = vpop.permute.xlu0 %2754 }
 0xc20   : > { %v2799_v53 = vmul.f32 %v2755_v41, %v2286_v7  ;;  %v2828_v60 = vsub.f32 %v2299_v15, %v2812_v39 }
 0xc22   : > { %2861 = vperm.xlu0 %3491, %v2799_v53   ;;  %v2815_v46 = vmul.f32 %v4691_v54, %v2799_v53  ;;  %v2301_v54 = vld [vmem:[%s5023_s11 + $0x10] sm:$0xff]  ;;  %v2290_v53 = vld [vmem:[%s5022_s10 + $0x38] sm:$0xff] }
 0xc23   : > { %v2753_v35 = vpop.permute.xlu1 %2752  ;;  %v2759_v58 = vpop.permute.xlu0 %2758 }
 0xc24   : > { %v2798_v55 = vmul.f32 %v2753_v35, %v2285_v34  ;;  %v2801_v33 = vmul.f32 %v2759_v58, %v2288_v22  ;;  %v2831_v41 = vsub.f32 %v2302_v50, %v2815_v46  ;;  %v2292_v46 = vld [vmem:[%s5022_s10 + $0x48] sm:$0xff] }
 0xc26   : > { %2963 = vperm.xlu0 %3491, %v2829_v4   ;;  %2856 = vperm.xlu1 %3492, %v2798_v55   ;;  %v2814_v28 = vmul.f32 %v2798_v55, %v4696_v47  ;;  %v2817_v35 = vmul.f32 %v4698_v42, %v2801_v33  ;;  %v2304_v47 = vld [vmem:[%s5023_s11 + $0x28] sm:$0xff]  ;;  %v2289_v55 = vld [vmem:[%s5022_s10 + $0x30] sm:$0xff]  ;;  %v2303_v42 = vld [vmem:[%s5023_s11 + $0x20] sm:$0xff] }
 0xc27   : > { %v2757_v7 = vpop.permute.xlu1 %2756  ;;  %v2763_v34 = vpop.permute.xlu0 %2762 }
 0xc28   : > { %v2800_v17 = vmul.f32 %v2757_v7, %v2287_v24  ;;  %v2830_v4 = vsub.f32 %v2301_v54, %v2814_v28  ;;  %v2803_v39 = vmul.f32 %v2763_v34, %v2290_v53  ;;  %v2833_v22 = vsub.f32 %v2304_v47, %v2817_v35  ;;  %v2294_v34 = vld [vmem:[%s5022_s10 + $0x58] sm:$0xff] }
 0xc2a   : > { %2871 = vperm.xlu0 %3491, %v2801_v33   ;;  %2958 = vperm.xlu1 %3492, %v2828_v60   ;;  %v2816_v58 = vmul.f32 %v2800_v17, %v4703_v49  ;;  %v2819_v50 = vmul.f32 %v4708_v3, %v2803_v39  ;;  %v2306_v49 = vld [vmem:[%s5023_s11 + $0x38] sm:$0xff]  ;;  %v2305_v3 = vld [vmem:[%s5023_s11 + $0x30] sm:$0xff] }
 0xc2b   : > { %v2761_v15 = vpop.permute.xlu1 %2760  ;;  %v2767_v33 = vpop.permute.xlu0 %2766 }
 0xc2c   : > { %v2802_v60 = vmul.f32 %v2761_v15, %v2289_v55  ;;  %v2832_v24 = vsub.f32 %v2303_v42, %v2816_v58  ;;  %v2805_v7 = vmul.f32 %v2767_v33, %v2292_v46  ;;  %v2293_v55 = vld [vmem:[%s5022_s10 + $0x50] sm:$0xff]  ;;  %v2296_v42 = vld [vmem:[%s5022_s10 + $0x68] sm:$0xff] }
 0xc2e   : > { %2973 = vperm.xlu0 %3491, %v2831_v41   ;;  %2866 = vperm.xlu1 %3492, %v2800_v17   ;;  %v2291_v41 = vld [vmem:[%s5022_s10 + $0x40] sm:$0xff]  ;;  %v2835_v17 = vsub.f32 %v2306_v49, %v2819_v50  ;;  %v2818_v54 = vmul.f32 %v2802_v60, %v4715_v2  ;;  %v2308_v2 = vld [vmem:[%s5023_s11 + $0x48] sm:$0xff] }
 0xc2f   : > { %v2765_v28 = vpop.permute.xlu1 %2764  ;;  %v2771_v35 = vpop.permute.xlu0 %2770 }
 0xc30   : > { %v2804_v53 = vmul.f32 %v2765_v28, %v2291_v41  ;;  %v2807_v47 = vmul.f32 %v2771_v35, %v2294_v34 }
 0xc32   : > { %2881 = vperm.xlu0 %3491, %v2803_v39   ;;  %2968 = vperm.xlu1 %3492, %v2830_v4   ;;  %v2821_v4 = vmul.f32 %v4718_v11, %v2805_v7  ;;  %v2834_v39 = vsub.f32 %v2305_v3, %v2818_v54  ;;  %v2820_v58 = vmul.f32 %v2804_v53, %v4725_v10  ;;  %v2307_v11 = vld [vmem:[%s5023_s11 + $0x40] sm:$0xff]  ;;  %v2310_v10 = vld [vmem:[%s5023_s11 + $0x58] sm:$0xff] }
 0xc33   : > { %v2769_v15 = vpop.permute.xlu1 %2768  ;;  %v2775_v46 = vpop.permute.xlu0 %2774  ;;  %v2823_v33 = vmul.f32 %v4728_v56, %v2807_v47  ;;  %v2309_v56 = vld [vmem:[%s5023_s11 + $0x50] sm:$0xff]  ;;  %v2298_v54 = vld [vmem:[%s5022_s10 + $0x78] sm:$0xff] }
 0xc34   : > { %v2836_v50 = vsub.f32 %v2307_v11, %v2820_v58 }
 0xc35   : > { %v2839_v41 = vsub.f32 %v2310_v10, %v2823_v33  ;;  %v3070_v10 = vld [vmem:[%s3712_s26 + $0x10] sm:$0xff] }
 0xc36   : > { %2983 = vperm.xlu0 %3491, %v2833_v22   ;;  %2876 = vperm.xlu1 %3492, %v2802_v60   ;;  %v2837_v22 = vsub.f32 %v2308_v2, %v2821_v4  ;;  %v2806_v60 = vmul.f32 %v2769_v15, %v2293_v55  ;;  %v2297_v4 = vld [vmem:[%s5022_s10 + $0x70] sm:$0xff] }
 0xc37   : > { %v2773_v49 = vpop.permute.xlu1 %2772 }
 0xc38   : > { %v2822_v28 = vmul.f32 %v2806_v60, %v4735_v59  ;;  %v2312_v59 = vld [vmem:[%s5023_s11 + $0x68] sm:$0xff] }
 0xc3a   : > { %2891 = vperm.xlu0 %3491, %v2805_v7   ;;  %2978 = vperm.xlu1 %3492, %v2832_v24   ;;  %v2809_v24 = vmul.f32 %v2775_v46, %v2296_v42  ;;  %v2295_v7 = vld [vmem:[%s5022_s10 + $0x60] sm:$0xff]  ;;  %v2838_v34 = vsub.f32 %v2309_v56, %v2822_v28 }
 0xc3c   : > { %v2825_v3 = vmul.f32 %v4738_v25, %v2809_v24  ;;  %v2314_v25 = vld [vmem:[%s5023_s11 + $0x78] sm:$0xff] }
 0xc3e   : > { %2993 = vperm.xlu0 %3491, %v2835_v17   ;;  %2886 = vperm.xlu1 %3492, %v2804_v53   ;;  %v2808_v17 = vmul.f32 %v2773_v49, %v2295_v7  ;;  %v2779_v53 = vpop.permute.xlu0 %2778 }
 0xc3f   : > { %v2811_v35 = vmul.f32 %v2779_v53, %v2298_v54 }
 0xc40   : > { %v2824_v55 = vmul.f32 %v2808_v17, %v4745_v26  ;;  %v2313_v26 = vld [vmem:[%s5023_s11 + $0x70] sm:$0xff] }
 0xc41   : > { %v2827_v2 = vmul.f32 %v4748_v40, %v2811_v35 }
 0xc42   : > { %2901 = vperm.xlu0 %3491, %v2807_v47   ;;  %2988 = vperm.xlu1 %3492, %v2834_v39   ;;  %v2777_v39 = vpop.permute.xlu1 %2776  ;;  %v2841_v47 = vsub.f32 %v2312_v59, %v2825_v3  ;;  %v3069_v59 = vld [vmem:[%s3712_s26 + $0x8] sm:$0xff] }
 0xc43   : > { %v2810_v15 = vmul.f32 %v2777_v39, %v2297_v4  ;;  %v2843_v58 = vsub.f32 %v2314_v25, %v2827_v2 }
 0xc45   : > { %v2826_v11 = vmul.f32 %v2810_v15, %v4755_v43  ;;  %v3071_v43 = vld [vmem:[%s3712_s26 + $0x18] sm:$0xff] }
 0xc46   : > { %3003 = vperm.xlu0 %3491, %v2837_v22   ;;  %2896 = vperm.xlu1 %3492, %v2806_v60   ;;  %v2311_v22 = vld [vmem:[%s5023_s11 + $0x60] sm:$0xff] }
 0xc47   : > { %v2840_v60 = vsub.f32 %v2311_v22, %v2824_v55  ;;  %v2842_v40 = vsub.f32 %v2313_v26, %v2826_v11  ;;  %v3074_v55 = vld [vmem:[%s3712_s26 + $0x30] sm:$0xff] }
 0xc4a   : > { %2911 = vperm.xlu0 %3491, %v2809_v24   ;;  %2998 = vperm.xlu1 %3492, %v2836_v50  }
 0xc4e   : > { %3013 = vperm.xlu0 %3491, %v2839_v41   ;;  %2906 = vperm.xlu1 %3492, %v2808_v17  }
 0xc52   : > { %2921 = vperm.xlu0 %3491, %v2811_v35   ;;  %3008 = vperm.xlu1 %3492, %v2838_v34   ;;  %v3068_v35 = vld [vmem:[%s3712_s26] sm:$0xff] }
 0xc56   : > { %3023 = vperm.xlu0 %3491, %v2841_v47   ;;  %2916 = vperm.xlu1 %3492, %v2810_v15   ;;  %v3075_v15 = vld [vmem:[%s3712_s26 + $0x38] sm:$0xff] }
 0xc5a   : > { %3033 = vperm.xlu0 %3491, %v2843_v58   ;;  %3018 = vperm.xlu1 %3492, %v2840_v60  }
 0xc5e   : > { %3028 = vperm.xlu1 %3492, %v2842_v40  }
 0xc97   : > { %v2852_v42 = vpop.permute.xlu0 %2851 }
 0xc98   : > { %v2926_v50 = vmul.f32 %v2852_v42, %v4446_v16  ;;  %v2927_v24 = vmul.f32 %v2852_v42, %v4448_v61 }
 0xc99   : > { %v2847_v46 = vpop.permute.xlu1 %2846 }
 0xc9a   : > { %v2924_v54 = vmul.f32 %v2847_v46, %v4442_v1  ;;  %v2925_v53 = vmul.f32 %v2847_v46, %v4444_v27 }
 0xc9d   : > { %v2862_v33 = vpop.permute.xlu0 %2861 }
 0xc9e   : > { %v2930_v27 = vmul.f32 %v2862_v33, %v4454_v19  ;;  %v2931_v39 = vmul.f32 %v2862_v33, %v4456_v0 }
 0xca1   : > { %v2964_v7 = vpop.permute.xlu0 %2963  ;;  %v2857_v49 = vpop.permute.xlu1 %2856 }
 0xca2   : > { %v3038_v41 = vadd.f32 %v2964_v7, %v2926_v50  ;;  %v3039_v28 = vadd.f32 %v2964_v7, %v2927_v24  ;;  %v2928_v0 = vmul.f32 %v2857_v49, %v4450_v18  ;;  %v2929_v42 = vmul.f32 %v2857_v49, %v4452_v36  ;;  %v3078_v49 = vld [vmem:[%s3712_s26 + $0x50] sm:$0xff] }
 0xca4   : > { %v3102_v17 = vadd.f32 %v3070_v10, %v3038_v41  ;;  %v3103_v56 = vadd.f32 %v3071_v43, %v3039_v28  ;;  %v3072_v10 = vld [vmem:[%s3712_s26 + $0x20] sm:$0xff]  ;;  %v3073_v43 = vld [vmem:[%s3712_s26 + $0x28] sm:$0xff] }
 0xca5   : > { %v2872_v16 = vpop.permute.xlu0 %2871  ;;  %v2959_v61 = vpop.permute.xlu1 %2958 }
 0xca6   : > { %v3134_v3 = vmax.f32 %v3102_v17, 0.0  ;;  %v3135_v34 = vmax.f32 %v3103_v56, 0.0  ;;  %v3036_v4 = vadd.f32 %v2959_v61, %v2924_v54  ;;  %v3037_v1 = vadd.f32 %v2959_v61, %v2925_v53  ;;  %v3079_v56 = vld [vmem:[%s3712_s26 + $0x58] sm:$0xff] }
 0xca7   : > { %v2934_v28 = vmul.f32 %v2872_v16, %v4462_v20  ;;  %v2935_v17 = vmul.f32 %v2872_v16, %v4464_v6 }
 0xca8   : > { %3166 = vst [vmem:[%s4917_s15 + $0x10] sm:$0xff] %v3134_v3  ;;  %3167 = vst [vmem:[%s4917_s15 + $0x18] sm:$0xff] %v3135_v34  ;;  %v3100_v47 = vadd.f32 %v3068_v35, %v3036_v4  ;;  %v3101_v2 = vadd.f32 %v3069_v59, %v3037_v1 }
 0xca9   : > { %v2974_v25 = vpop.permute.xlu0 %2973  ;;  %v2867_v22 = vpop.permute.xlu1 %2866 }
 0xcaa   : > { %v3042_v58 = vadd.f32 %v2974_v25, %v2930_v27  ;;  %v3043_v60 = vadd.f32 %v2974_v25, %v2931_v39  ;;  %v3132_v11 = vmax.f32 %v3100_v47, 0.0  ;;  %v3133_v26 = vmax.f32 %v3101_v2, 0.0  ;;  %v3076_v47 = vld [vmem:[%s3712_s26 + $0x40] sm:$0xff]  ;;  %v3077_v2 = vld [vmem:[%s3712_s26 + $0x48] sm:$0xff] }
 0xcab   : > { %v2932_v6 = vmul.f32 %v2867_v22, %v4458_v31  ;;  %v2933_v16 = vmul.f32 %v2867_v22, %v4460_v8  ;;  %v3082_v22 = vld [vmem:[%s3712_s26 + $0x70] sm:$0xff] }
 0xcac   : > { %v3106_v40 = vadd.f32 %v3074_v55, %v3042_v58  ;;  %v3107_v19 = vadd.f32 %v3075_v15, %v3043_v60  ;;  %3164 = vst [vmem:[%s4917_s15] sm:$0xff] %v3132_v11  ;;  %3165 = vst [vmem:[%s4917_s15 + $0x8] sm:$0xff] %v3133_v26  ;;  %v3083_v60 = vld [vmem:[%s3712_s26 + $0x78] sm:$0xff] }
 0xcad   : > { %v2882_v46 = vpop.permute.xlu0 %2881  ;;  %v2969_v33 = vpop.permute.xlu1 %2968 }
 0xcae   : > { %v3138_v50 = vmax.f32 %v3106_v40, 0.0  ;;  %v3139_v24 = vmax.f32 %v3107_v19, 0.0  ;;  %v3040_v7 = vadd.f32 %v2969_v33, %v2928_v0  ;;  %v3041_v41 = vadd.f32 %v2969_v33, %v2929_v42 }
 0xcaf   : > { %v2938_v25 = vmul.f32 %v2882_v46, %v4470_v21  ;;  %v2939_v58 = vmul.f32 %v2882_v46, %v4472_v12 }
 0xcb0   : > { %3170 = vst [vmem:[%s4917_s15 + $0x30] sm:$0xff] %v3138_v50  ;;  %3171 = vst [vmem:[%s4917_s15 + $0x38] sm:$0xff] %v3139_v24  ;;  %v3104_v18 = vadd.f32 %v3072_v10, %v3040_v7  ;;  %v3105_v36 = vadd.f32 %v3073_v43, %v3041_v41  ;;  %v3080_v7 = vld [vmem:[%s3712_s26 + $0x60] sm:$0xff]  ;;  %v3081_v41 = vld [vmem:[%s3712_s26 + $0x68] sm:$0xff] }
 0xcb1   : > { %v2984_v54 = vpop.permute.xlu0 %2983  ;;  %v2877_v53 = vpop.permute.xlu1 %2876 }
 0xcb2   : > { %v3046_v61 = vadd.f32 %v2984_v54, %v2934_v28  ;;  %v3047_v3 = vadd.f32 %v2984_v54, %v2935_v17  ;;  %v3136_v34 = vmax.f32 %v3104_v18, 0.0  ;;  %v3137_v35 = vmax.f32 %v3105_v36, 0.0 }
 0xcb3   : > { %v2936_v12 = vmul.f32 %v2877_v53, %v4466_v13  ;;  %v2937_v46 = vmul.f32 %v2877_v53, %v4468_v29 }
 0xcb4   : > { %v3110_v59 = vadd.f32 %v3078_v49, %v3046_v61  ;;  %v3111_v20 = vadd.f32 %v3079_v56, %v3047_v3  ;;  %3168 = vst [vmem:[%s4917_s15 + $0x20] sm:$0xff] %v3136_v34  ;;  %3169 = vst [vmem:[%s4917_s15 + $0x28] sm:$0xff] %v3137_v35  ;;  %v3086_v49 = vld [vmem:[%s3712_s26 + $0x90] sm:$0xff]  ;;  %v3087_v56 = vld [vmem:[%s3712_s26 + $0x98] sm:$0xff] }
 0xcb5   : > { %v2892_v4 = vpop.permute.xlu0 %2891  ;;  %v2979_v1 = vpop.permute.xlu1 %2978 }
 0xcb6   : > { %v3142_v27 = vmax.f32 %v3110_v59, 0.0  ;;  %v3143_v39 = vmax.f32 %v3111_v20, 0.0  ;;  %v3044_v55 = vadd.f32 %v2979_v1, %v2932_v6  ;;  %v3045_v15 = vadd.f32 %v2979_v1, %v2933_v16 }
 0xcb7   : > { %v2942_v18 = vmul.f32 %v2892_v4, %v4484_v38  ;;  %v2943_v36 = vmul.f32 %v2892_v4, %v4486_v44 }
 0xcb8   : > { %3174 = vst [vmem:[%s4917_s15 + $0x50] sm:$0xff] %v3142_v27  ;;  %3175 = vst [vmem:[%s4917_s15 + $0x58] sm:$0xff] %v3143_v39  ;;  %v3108_v31 = vadd.f32 %v3076_v47, %v3044_v55  ;;  %v3109_v8 = vadd.f32 %v3077_v2, %v3045_v15  ;;  %v3084_v27 = vld [vmem:[%s3712_s26 + $0x80] sm:$0xff]  ;;  %v3085_v39 = vld [vmem:[%s3712_s26 + $0x88] sm:$0xff] }
 0xcb9   : > { %v2994_v11 = vpop.permute.xlu0 %2993  ;;  %v2887_v26 = vpop.permute.xlu1 %2886 }
 0xcba   : > { %v3050_v40 = vadd.f32 %v2994_v11, %v2938_v25  ;;  %v3051_v19 = vadd.f32 %v2994_v11, %v2939_v58  ;;  %v3140_v0 = vmax.f32 %v3108_v31, 0.0  ;;  %v3141_v42 = vmax.f32 %v3109_v8, 0.0  ;;  %v3090_v25 = vld [vmem:[%s3712_s26 + $0xb0] sm:$0xff]  ;;  %v3091_v58 = vld [vmem:[%s3712_s26 + $0xb8] sm:$0xff] }
 0xcbb   : > { %v2940_v44 = vmul.f32 %v2887_v26, %v4474_v52  ;;  %v2941_v20 = vmul.f32 %v2887_v26, %v4476_v51 }
 0xcbc   : > { %v3114_v33 = vadd.f32 %v3082_v22, %v3050_v40  ;;  %v3115_v21 = vadd.f32 %v3083_v60, %v3051_v19  ;;  %3172 = vst [vmem:[%s4917_s15 + $0x40] sm:$0xff] %v3140_v0  ;;  %3173 = vst [vmem:[%s4917_s15 + $0x48] sm:$0xff] %v3141_v42 }
 0xcbd   : > { %v2902_v50 = vpop.permute.xlu0 %2901  ;;  %v2989_v24 = vpop.permute.xlu1 %2988 }
 0xcbe   : > { %v3146_v10 = vmax.f32 %v3114_v33, 0.0  ;;  %v3147_v43 = vmax.f32 %v3115_v21, 0.0  ;;  %v3048_v28 = vadd.f32 %v2989_v24, %v2936_v12  ;;  %v3049_v17 = vadd.f32 %v2989_v24, %v2937_v46  ;;  %v3088_v12 = vld [vmem:[%s3712_s26 + $0xa0] sm:$0xff]  ;;  %v3089_v46 = vld [vmem:[%s3712_s26 + $0xa8] sm:$0xff] }
 0xcbf   : > { %v2946_v55 = vmul.f32 %v2902_v50, %v4504_v62  ;;  %v2947_v15 = vmul.f32 %v2902_v50, %v4506_v45 }
 0xcc0   : > { %3178 = vst [vmem:[%s4917_s15 + $0x70] sm:$0xff] %v3146_v10  ;;  %3179 = vst [vmem:[%s4917_s15 + $0x78] sm:$0xff] %v3147_v43  ;;  %v3112_v13 = vadd.f32 %v3080_v7, %v3048_v28  ;;  %v3113_v29 = vadd.f32 %v3081_v41, %v3049_v17  ;;  %v3094_v7 = vld [vmem:[%s3712_s26 + $0xd0] sm:$0xff]  ;;  %v3095_v41 = vld [vmem:[%s3712_s26 + $0xd8] sm:$0xff] }
 0xcc1   : > { %v3004_v54 = vpop.permute.xlu0 %3003  ;;  %v2897_v53 = vpop.permute.xlu1 %2896 }
 0xcc2   : > { %v3054_v61 = vadd.f32 %v3004_v54, %v2942_v18  ;;  %v3055_v3 = vadd.f32 %v3004_v54, %v2943_v36  ;;  %v3144_v34 = vmax.f32 %v3112_v13, 0.0  ;;  %v3145_v35 = vmax.f32 %v3113_v29, 0.0 }
 0xcc3   : > { %v2944_v45 = vmul.f32 %v2897_v53, %v4494_v57  ;;  %v2945_v19 = vmul.f32 %v2897_v53, %v4496_v48 }
 0xcc4   : > { %v3118_v59 = vadd.f32 %v3086_v49, %v3054_v61  ;;  %v3119_v38 = vadd.f32 %v3087_v56, %v3055_v3  ;;  %3176 = vst [vmem:[%s4917_s15 + $0x60] sm:$0xff] %v3144_v34  ;;  %3177 = vst [vmem:[%s4917_s15 + $0x68] sm:$0xff] %v3145_v35  ;;  %v3098_v61 = vld [vmem:[%s3712_s26 + $0xf0] sm:$0xff]  ;;  %v3099_v3 = vld [vmem:[%s3712_s26 + $0xf8] sm:$0xff] }
 0xcc5   : > { %v2912_v6 = vpop.permute.xlu0 %2911  ;;  %v2999_v16 = vpop.permute.xlu1 %2998 }
 0xcc6   : > { %v3150_v4 = vmax.f32 %v3118_v59, 0.0  ;;  %v3151_v1 = vmax.f32 %v3119_v38, 0.0  ;;  %v3052_v47 = vadd.f32 %v2999_v16, %v2940_v44  ;;  %v3053_v2 = vadd.f32 %v2999_v16, %v2941_v20  ;;  %v3092_v44 = vld [vmem:[%s3712_s26 + $0xc0] sm:$0xff]  ;;  %v3093_v20 = vld [vmem:[%s3712_s26 + $0xc8] sm:$0xff] }
 0xcc7   : > { %v2950_v10 = vmul.f32 %v2912_v6, %v4524_v23  ;;  %v2951_v43 = vmul.f32 %v2912_v6, %v4526_v14 }
 0xcc8   : > { %3182 = vst [vmem:[%s4917_s15 + $0x90] sm:$0xff] %v3150_v4  ;;  %3183 = vst [vmem:[%s4917_s15 + $0x98] sm:$0xff] %v3151_v1  ;;  %v3116_v52 = vadd.f32 %v3084_v27, %v3052_v47  ;;  %v3117_v51 = vadd.f32 %v3085_v39, %v3053_v2  ;;  %v3096_v47 = vld [vmem:[%s3712_s26 + $0xe0] sm:$0xff]  ;;  %v3097_v2 = vld [vmem:[%s3712_s26 + $0xe8] sm:$0xff] }
 0xcc9   : > { %v3014_v31 = vpop.permute.xlu0 %3013  ;;  %v2907_v8 = vpop.permute.xlu1 %2906 }
 0xcca   : > { %v3058_v22 = vadd.f32 %v3014_v31, %v2946_v55  ;;  %v3059_v60 = vadd.f32 %v3014_v31, %v2947_v15  ;;  %v3148_v11 = vmax.f32 %v3116_v52, 0.0  ;;  %v3149_v26 = vmax.f32 %v3117_v51, 0.0 }
 0xccb   : > { %v2948_v54 = vmul.f32 %v2907_v8, %v4514_v5  ;;  %v2949_v53 = vmul.f32 %v2907_v8, %v4516_v37 }
 0xccc   : > { %v3122_v40 = vadd.f32 %v3090_v25, %v3058_v22  ;;  %v3123_v62 = vadd.f32 %v3091_v58, %v3059_v60  ;;  %3180 = vst [vmem:[%s4917_s15 + $0x80] sm:$0xff] %v3148_v11  ;;  %3181 = vst [vmem:[%s4917_s15 + $0x88] sm:$0xff] %v3149_v26 }
 0xccd   : > { %v2922_v0 = vpop.permute.xlu0 %2921  ;;  %v3009_v42 = vpop.permute.xlu1 %3008 }
 0xcce   : > { %v3154_v33 = vmax.f32 %v3122_v40, 0.0  ;;  %v3155_v21 = vmax.f32 %v3123_v62, 0.0  ;;  %v3056_v50 = vadd.f32 %v3009_v42, %v2944_v45  ;;  %v3057_v24 = vadd.f32 %v3009_v42, %v2945_v19 }
 0xccf   : > { %v2954_v23 = vmul.f32 %v2922_v0, %v4538_v30  ;;  %v2955_v14 = vmul.f32 %v2922_v0, %v4546_v63 }
 0xcd0   : > { %3186 = vst [vmem:[%s4917_s15 + $0xb0] sm:$0xff] %v3154_v33  ;;  %3187 = vst [vmem:[%s4917_s15 + $0xb8] sm:$0xff] %v3155_v21  ;;  %v3120_v57 = vadd.f32 %v3088_v12, %v3056_v50  ;;  %v3121_v48 = vadd.f32 %v3089_v46, %v3057_v24 }
 0xcd1   : > { %v3024_v28 = vpop.permute.xlu0 %3023  ;;  %v2917_v17 = vpop.permute.xlu1 %2916 }
 0xcd2   : > { %v3062_v18 = vadd.f32 %v3024_v28, %v2950_v10  ;;  %v3063_v36 = vadd.f32 %v3024_v28, %v2951_v43  ;;  %v3152_v13 = vmax.f32 %v3120_v57, 0.0  ;;  %v3153_v29 = vmax.f32 %v3121_v48, 0.0 }
 0xcd3   : > { %v2952_v37 = vmul.f32 %v2917_v17, %v4534_v32  ;;  %v2953_v16 = vmul.f32 %v2917_v17, %v4536_v9 }
 0xcd4   : > { %v3126_v49 = vadd.f32 %v3094_v7, %v3062_v18  ;;  %v3127_v56 = vadd.f32 %v3095_v41, %v3063_v36  ;;  %3184 = vst [vmem:[%s4917_s15 + $0xa0] sm:$0xff] %v3152_v13  ;;  %3185 = vst [vmem:[%s4917_s15 + $0xa8] sm:$0xff] %v3153_v29 }
 0xcd5   : > { %v3034_v34 = vpop.permute.xlu0 %3033  ;;  %v3019_v35 = vpop.permute.xlu1 %3018 }
 0xcd6   : > { %v3158_v59 = vmax.f32 %v3126_v49, 0.0  ;;  %v3159_v30 = vmax.f32 %v3127_v56, 0.0  ;;  %v3066_v63 = vadd.f32 %v3034_v34, %v2954_v23  ;;  %v3067_v38 = vadd.f32 %v3034_v34, %v2955_v14 }
 0xcd7   : > { %v3060_v6 = vadd.f32 %v3019_v35, %v2948_v54  ;;  %v3061_v5 = vadd.f32 %v3019_v35, %v2949_v53 }
 0xcd8   : > { %3190 = vst [vmem:[%s4917_s15 + $0xd0] sm:$0xff] %v3158_v59  ;;  %3191 = vst [vmem:[%s4917_s15 + $0xd8] sm:$0xff] %v3159_v30  ;;  %v3130_v4 = vadd.f32 %v3098_v61, %v3066_v63  ;;  %v3131_v1 = vadd.f32 %v3099_v3, %v3067_v38 }
 0xcd9   : > { %v3124_v27 = vadd.f32 %v3092_v44, %v3060_v6  ;;  %v3125_v39 = vadd.f32 %v3093_v20, %v3061_v5  ;;  %v3029_v55 = vpop.permute.xlu1 %3028 }
 0xcda   : > { %v3162_v15 = vmax.f32 %v3130_v4, 0.0  ;;  %v3163_v52 = vmax.f32 %v3131_v1, 0.0  ;;  %v3064_v51 = vadd.f32 %v3029_v55, %v2952_v37  ;;  %v3065_v25 = vadd.f32 %v3029_v55, %v2953_v16 }
 0xcdb   : > { %v3156_v58 = vmax.f32 %v3124_v27, 0.0  ;;  %v3157_v32 = vmax.f32 %v3125_v39, 0.0 }
 0xcdc   : > { %3194 = vst [vmem:[%s4917_s15 + $0xf0] sm:$0xff] %v3162_v15  ;;  %3195 = vst [vmem:[%s4917_s15 + $0xf8] sm:$0xff] %v3163_v52  ;;  %v3128_v9 = vadd.f32 %v3096_v47, %v3064_v51  ;;  %v3129_v31 = vadd.f32 %v3097_v2, %v3065_v25 }
 0xcdd   : > { %3188 = vst [vmem:[%s4917_s15 + $0xc0] sm:$0xff] %v3156_v58  ;;  %3189 = vst [vmem:[%s4917_s15 + $0xc8] sm:$0xff] %v3157_v32 }
 0xcde   : > { %v3160_v8 = vmax.f32 %v3128_v9, 0.0  ;;  %v3161_v22 = vmax.f32 %v3129_v31, 0.0 }
 0xce0   : > { %3192 = vst [vmem:[%s4917_s15 + $0xe0] sm:$0xff] %v3160_v8  ;;  %3193 = vst [vmem:[%s4917_s15 + $0xe8] sm:$0xff] %v3161_v22 }
 0xce1 PF: > { %s22_s21 = sadd.s32 1, %s3609_s21  }
 0xce2   : > { %p19_p4 = scmp.ge.s32.totalorder %s22_s21, 4  }
 0xce4   :  { %21 = sbr.rel (!%p19_p4) target bundleno = 1 (0x1), region = 98 }

</bundles_post_ra>
